<compile_context>
chip_gen: v7x
topology: tpu7x:2x2x1
jax: 0.10.0
libtpu: 0.0.40
codegen_flags: <defaults>
</compile_context>

<pallas_src>
import functools

import numpy as np
import jax
import jax.numpy as jnp
from jax.experimental import pallas as pl
from jax.experimental.pallas import tpu as pltpu


# ----------------------------------------------------------------------------
# In-kernel helpers
# ----------------------------------------------------------------------------
def _layer_norm(x, g, b, eps=1e-5):
    mu = jnp.mean(x, axis=-1, keepdims=True)
    xc = x - mu
    var = jnp.mean(xc * xc, axis=-1, keepdims=True)
    return xc * jax.lax.rsqrt(var + eps) * g + b


# ----------------------------------------------------------------------------
# Fused forward kernel: one grid step per batch element.
# ----------------------------------------------------------------------------
def _fused_forward_kernel(
        # per-batch inputs
        patches_ref, eeg_ref,
        # embedding weights
        proj_w_ref, proj_b_ref, pool_place_ref, up_m_ref, place_eeg_ref, add_ref,
        # stacked encoder-layer weights (leading axis = layer)
        wqkv_ref, bqkv_ref, wo_ref, bo_ref,
        g1_ref, be1_ref, w1_ref, b1_ref, w2_ref, b2_ref, g2_ref, be2_ref,
        # classification head
        fc1_w_ref, fc1_b_ref, fc2_w_ref, fc2_b_ref,
        # output
        o_ref,
        *, num_heads, seq_len, num_layers):
    S_pad, E = add_ref.shape
    d = E // num_heads
    scale = 1.0 / float(d) ** 0.5

    # --- patch embedding (Conv2d stride=patch as matmul) ---
    img_emb = jnp.dot(patches_ref[...], proj_w_ref[...],
                      preferred_element_type=jnp.float32) + proj_b_ref[...]   # (npatch, E)

    # --- EEG nn.Upsample(linear) as matmul against interpolation matrix ---
    eeg_tok = jnp.dot(eeg_ref[...], up_m_ref[...],
                      preferred_element_type=jnp.float32)                     # (n_eeg, E)

    # --- assemble [cls | eeg | image] + pos_embed, zero-padded to S_pad ---
    # pool_place folds adaptive-avg-pool AND row placement; place_eeg is a
    # one-hot row placement.  add = cls+pos (pad rows zero).  Pure MXU work,
    # no scratch buffer, no partial sublane stores.
    x0 = (add_ref[...]
          + jnp.dot(pool_place_ref[...], img_emb, preferred_element_type=jnp.float32)
          + jnp.dot(place_eeg_ref[...], eeg_tok, preferred_element_type=jnp.float32))

    # padded key columns are excluded from every attention softmax
    key_mask = jax.lax.broadcasted_iota(jnp.int32, (S_pad, S_pad), 1) < seq_len

    def layer(l, x):
        wqkv, bqkv = wqkv_ref[l], bqkv_ref[l]
        wo, bo = wo_ref[l], bo_ref[l]

        # fused QKV projection over the whole (padded) token block
        qkv = jnp.dot(x, wqkv, preferred_element_type=jnp.float32) + bqkv

        attn = jnp.zeros_like(x)
        for h in range(num_heads):              # static unrolled head loop
            q = qkv[:, h * d:(h + 1) * d]
            k = qkv[:, E + h * d:E + (h + 1) * d]
            v = qkv[:, 2 * E + h * d:2 * E + (h + 1) * d]
            s = jnp.dot(q, k.T, preferred_element_type=jnp.float32) * scale
            s = jnp.where(key_mask, s, -1e30)
            s = s - jnp.max(s, axis=-1, keepdims=True)
            p = jnp.exp(s)
            p = p * pl.reciprocal(jnp.sum(p, axis=-1, keepdims=True), approx=True)
            ctx = jnp.dot(p, v, preferred_element_type=jnp.float32)
            # out-projection folded per head: sum_h ctx_h @ wo[h*d:(h+1)*d, :]
            attn = attn + jnp.dot(ctx, wo[h * d:(h + 1) * d, :],
                                  preferred_element_type=jnp.float32)
        attn = attn + bo

        # post-norm layer (PyTorch default norm_first=False, relu FFN)
        h1 = _layer_norm(x + attn, g1_ref[l], be1_ref[l])
        f = jnp.dot(h1, w1_ref[l], preferred_element_type=jnp.float32) + b1_ref[l]
        f = jnp.maximum(f, 0.0)
        f = jnp.dot(f, w2_ref[l], preferred_element_type=jnp.float32) + b2_ref[l]
        return _layer_norm(h1 + f, g2_ref[l], be2_ref[l])

    x = jax.lax.fori_loop(0, num_layers, layer, x0, unroll=True)

    # --- classification head on the cls token ---
    cls = x[0:1, :]
    hid = jnp.dot(cls, fc1_w_ref[...], preferred_element_type=jnp.float32) + fc1_b_ref[...]
    hid = jnp.maximum(hid, 0.0)                      # dropout = identity (eval)
    logits = jnp.dot(hid, fc2_w_ref[...], preferred_element_type=jnp.float32) + fc2_b_ref[...]
    o_ref[...] = logits.astype(o_ref.dtype)


def _const_spec(shape):
    """Full-array block, constant index map (weight stays VMEM-resident)."""
    nd = len(shape)
    return pl.BlockSpec(shape, lambda b, _nd=nd: (0,) * _nd)


# ----------------------------------------------------------------------------
# Glue helpers (deterministic, built once outside the kernel)
# ----------------------------------------------------------------------------
def adaptive_pool_matrix(in_size, out_size):
    """AdaptiveAvgPool pooling matrix (in_size, out_size), PyTorch semantics."""
    m = np.zeros((in_size, out_size), np.float32)
    for i in range(out_size):
        start = (i * in_size) // out_size
        end = -((-(i + 1) * in_size) // out_size)      # ceil((i+1)*in/out)
        m[start:end, i] = 1.0 / (end - start)
    return jnp.asarray(m)


def linear_upsample_matrix(in_size, out_size):
    """nn.Upsample(mode='linear', align_corners=False) as (in_size, out_size)."""
    m = np.zeros((in_size, out_size), np.float32)
    scale = in_size / out_size
    for i in range(out_size):
        src = max((i + 0.5) * scale - 0.5, 0.0)
        i0 = min(int(np.floor(src)), in_size - 1)
        lam = src - i0
        i1 = min(i0 + 1, in_size - 1)
        m[i0, i] += 1.0 - lam
        m[i1, i] += lam
    return jnp.asarray(m)


def init_params(key, cfg):
    E, F, P, C = cfg['embed'], cfg['ffn'], cfg['patch'], cfg['in_c']
    L, S, S_pad = cfg['layers'], cfg['seq'], cfg['seq_pad']
    n_eeg = cfg['eeg_ch']
    nH = nW = cfg['img'] // P
    npatch = nH * nW
    npool = cfg['pool_h'] * cfg['pool_w']
    keys = jax.random.split(key, 10)

    def nrm(k, shape, std=0.02):
        return std * jax.random.normal(k, shape, jnp.float32)

    # cls token + positional embedding, pre-added and zero-padded to S_pad
    cls = nrm(keys[0], (E,))
    pos = nrm(keys[1], (S, E))
    add = jnp.zeros((S_pad, E), jnp.float32).at[:S, :].set(pos).at[0, :].add(cls)

    # separable adaptive-pool matrices folded into one (npool, npatch) matrix,
    # then folded again with the row-placement into (S_pad, npatch)
    mh = adaptive_pool_matrix(nH, cfg['pool_h'])
    mw = adaptive_pool_matrix(nW, cfg['pool_w'])
    pool_t = jnp.einsum('hi,wj->hwij', mh, mw).reshape(npatch, npool).T   # (npool, npatch)
    pool_place = jnp.zeros((S_pad, npatch), jnp.float32).at[1 + n_eeg:S, :].set(pool_t)

    # one-hot row placement for the EEG tokens (rows 1 .. 1+n_eeg-1)
    place_eeg = jnp.zeros((S_pad, n_eeg), jnp.float32).at[
        1 + jnp.arange(n_eeg), jnp.arange(n_eeg)].set(1.0)

    return {
        'proj_w': nrm(keys[2], (C * P * P, E)),
        'proj_b': jnp.zeros((1, E), jnp.float32),
        'pool_place': pool_place,                            # (S_pad, npatch)
        'up_m': linear_upsample_matrix(cfg['eeg_len'], E),
        'place_eeg': place_eeg,                              # (S_pad, n_eeg)
        'add': add,
        # stacked encoder layers (leading axis = layer)
        'wqkv': nrm(keys[3], (L, E, 3 * E)),
        'bqkv': jnp.zeros((L, 1, 3 * E), jnp.float32),
        'wo': nrm(keys[4], (L, E, E)),
        'bo': jnp.zeros((L, 1, E), jnp.float32),
        'g1': jnp.ones((L, 1, E), jnp.float32),
        'be1': jnp.zeros((L, 1, E), jnp.float32),
        'w1': nrm(keys[5], (L, E, F)),
        'b1': jnp.zeros((L, 1, F), jnp.float32),
        'w2': nrm(keys[6], (L, F, E)),
        'b2': jnp.zeros((L, 1, E), jnp.float32),
        'g2': jnp.ones((L, 1, E), jnp.float32),
        'be2': jnp.zeros((L, 1, E), jnp.float32),
        # head
        'fc1_w': nrm(keys[7], (E, cfg['fc1'])),
        'fc1_b': jnp.zeros((1, cfg['fc1']), jnp.float32),
        'fc2_w': nrm(keys[8], (cfg['fc1'], cfg['classes'])),
        'fc2_b': jnp.zeros((1, cfg['classes']), jnp.float32),
    }


# ----------------------------------------------------------------------------
# Forward pass (mirrors MultiModalClassifier.forward, eval-mode dropout)
# ----------------------------------------------------------------------------
def multimodal_classifier(eeg, img, params, cfg):
    B, C, H, W = img.shape
    P, E = cfg['patch'], cfg['embed']
    nH, nW = H // P, W // P
    npatch, cpp = nH * nW, C * P * P
    npool = cfg['pool_h'] * cfg['pool_w']
    NC = cfg['classes']
    S_pad = params['add'].shape[0]

    # layout glue only: NCHW -> non-overlapping patches (B, nH*nW, C*P*P),
    # row order (c, kh, kw) to match the flattened Conv2d weight.
    patches = img.reshape(B, C, nH, P, nW, P).transpose(0, 2, 4, 1, 3, 5)
    patches = patches.reshape(B, npatch, cpp)

    weights = [params[n] for n in (
        'proj_w', 'proj_b', 'pool_place', 'up_m', 'place_eeg', 'add',
        'wqkv', 'bqkv', 'wo', 'bo', 'g1', 'be1', 'w1', 'b1',
        'w2', 'b2', 'g2', 'be2',
        'fc1_w', 'fc1_b', 'fc2_w', 'fc2_b')]

    in_specs = [
        pl.BlockSpec((None, npatch, cpp), lambda b: (b, 0, 0)),
        pl.BlockSpec((None, eeg.shape[1], eeg.shape[2]), lambda b: (b, 0, 0)),
    ]
    in_specs += [_const_spec(tuple(w.shape)) for w in weights]

    # advisory cost estimate for the XLA scheduler
    flops = B * (2 * npatch * cpp * E + 2 * S_pad * npatch * E
                 + 2 * eeg.shape[1] * eeg.shape[2] * E + 2 * S_pad * eeg.shape[1] * E
                 + cfg['layers'] * (6 * S_pad * E * E + 4 * S_pad * S_pad * E
                                    + 2 * S_pad * E * E + 4 * S_pad * E * cfg['ffn'])
                 + 2 * E * cfg['fc1'] + 2 * cfg['fc1'] * NC)
    transcendentals = B * cfg['layers'] * cfg['heads'] * S_pad * S_pad
    bytes_accessed = sum(int(a.size) * 4 for a in [patches, eeg] + weights) + B * NC * 4

    out = pl.pallas_call(
        functools.partial(_fused_forward_kernel,
                          num_heads=cfg['heads'],
                          seq_len=cfg['seq'],
                          num_layers=cfg['layers']),
        grid=(B,),
        in_specs=in_specs,
        out_specs=pl.BlockSpec((None, 1, NC), lambda b: (b, 0, 0)),
        out_shape=jax.ShapeDtypeStruct((B, 1, NC), jnp.float32),
        compiler_params=pltpu.CompilerParams(dimension_semantics=("parallel",)),
        cost_estimate=pl.CostEstimate(flops=flops,
                                      transcendentals=transcendentals,
                                      bytes_accessed=bytes_accessed),
    )(patches, eeg, *weights)
    return out[:, 0, :]


# ----------------------------------------------------------------------------
# Driver
# ----------------------------------------------------------------------------
if __name__ == "__main__":
    # Small shapes consistent with the module (scaled down from 768/224/16):
    cfg = dict(in_c=3, img=32, patch=8, embed=32,
               pool_h=4, pool_w=3,
               eeg_ch=4, eeg_len=16,
               heads=4, ffn=64, layers=2,
               fc1=64, classes=3)
    cfg['seq'] = 1 + cfg['eeg_ch'] + cfg['pool_h'] * cfg['pool_w']   # cls+eeg+img = 17
    cfg['seq_pad'] = ((cfg['seq'] + 7) // 8) * 8                     # pad to 24

    key = jax.random.PRNGKey(0)
    k_eeg, k_img, k_par = jax.random.split(key, 3)

    eeg_data = jax.random.normal(k_eeg, (2, cfg['eeg_ch'], cfg['eeg_len']), jnp.float32)
    image_data = jax.random.normal(k_img, (2, cfg['in_c'], cfg['img'], cfg['img']),
                                   jnp.float32)
    params = init_params(k_par, cfg)

    fwd = jax.jit(lambda e, i: multimodal_classifier(e, i, params, cfg))
    logits = fwd(eeg_data, image_data)
    jax.block_until_ready(logits)
    assert logits.shape == (2, cfg['classes'])
    print("KERNEL_OK")
</pallas_src>

<mosaic_0001>
module attributes {stable_mosaic.version = 11 : i64} {
  func.func @_fused_forward_kernel(%arg0: i32, %arg1: memref<1x16x192xf32, #tpu.memory_space<vmem>>, %arg2: memref<1x4x16xf32, #tpu.memory_space<vmem>>, %arg3: memref<192x32xf32, #tpu.memory_space<vmem>>, %arg4: memref<1x32xf32, #tpu.memory_space<vmem>>, %arg5: memref<24x16xf32, #tpu.memory_space<vmem>>, %arg6: memref<16x32xf32, #tpu.memory_space<vmem>>, %arg7: memref<24x4xf32, #tpu.memory_space<vmem>>, %arg8: memref<24x32xf32, #tpu.memory_space<vmem>>, %arg9: memref<2x32x96xf32, #tpu.memory_space<vmem>>, %arg10: memref<2x1x96xf32, #tpu.memory_space<vmem>>, %arg11: memref<2x32x32xf32, #tpu.memory_space<vmem>>, %arg12: memref<2x1x32xf32, #tpu.memory_space<vmem>>, %arg13: memref<2x1x32xf32, #tpu.memory_space<vmem>>, %arg14: memref<2x1x32xf32, #tpu.memory_space<vmem>>, %arg15: memref<2x32x64xf32, #tpu.memory_space<vmem>>, %arg16: memref<2x1x64xf32, #tpu.memory_space<vmem>>, %arg17: memref<2x64x32xf32, #tpu.memory_space<vmem>>, %arg18: memref<2x1x32xf32, #tpu.memory_space<vmem>>, %arg19: memref<2x1x32xf32, #tpu.memory_space<vmem>>, %arg20: memref<2x1x32xf32, #tpu.memory_space<vmem>>, %arg21: memref<32x64xf32, #tpu.memory_space<vmem>>, %arg22: memref<1x64xf32, #tpu.memory_space<vmem>>, %arg23: memref<64x3xf32, #tpu.memory_space<vmem>>, %arg24: memref<1x3xf32, #tpu.memory_space<vmem>>, %arg25: memref<1x1x3xf32, #tpu.memory_space<vmem>>) attributes {dimension_semantics = [#tpu.dimension_semantics<parallel>], iteration_bounds = array<i64: 2>, scalar_prefetch = 0 : i64, scratch_operands = 0 : i64, tpu.core_type = #tpu.core_type<tc>, window_params = [{transform_indices = @transform_0, window_bounds = array<i64: 1, 16, 192>}, {transform_indices = @transform_1, window_bounds = array<i64: 1, 4, 16>}, {pipeline_mode = #tpu.pipeline_mode<synchronous>, transform_indices = @transform_2, window_bounds = array<i64: 192, 32>}, {pipeline_mode = #tpu.pipeline_mode<synchronous>, transform_indices = @transform_3, window_bounds = array<i64: 1, 32>}, {pipeline_mode = #tpu.pipeline_mode<synchronous>, transform_indices = @transform_4, window_bounds = array<i64: 24, 16>}, {pipeline_mode = #tpu.pipeline_mode<synchronous>, transform_indices = @transform_5, window_bounds = array<i64: 16, 32>}, {pipeline_mode = #tpu.pipeline_mode<synchronous>, transform_indices = @transform_6, window_bounds = array<i64: 24, 4>}, {pipeline_mode = #tpu.pipeline_mode<synchronous>, transform_indices = @transform_7, window_bounds = array<i64: 24, 32>}, {pipeline_mode = #tpu.pipeline_mode<synchronous>, transform_indices = @transform_8, window_bounds = array<i64: 2, 32, 96>}, {pipeline_mode = #tpu.pipeline_mode<synchronous>, transform_indices = @transform_9, window_bounds = array<i64: 2, 1, 96>}, {pipeline_mode = #tpu.pipeline_mode<synchronous>, transform_indices = @transform_10, window_bounds = array<i64: 2, 32, 32>}, {pipeline_mode = #tpu.pipeline_mode<synchronous>, transform_indices = @transform_11, window_bounds = array<i64: 2, 1, 32>}, {pipeline_mode = #tpu.pipeline_mode<synchronous>, transform_indices = @transform_12, window_bounds = array<i64: 2, 1, 32>}, {pipeline_mode = #tpu.pipeline_mode<synchronous>, transform_indices = @transform_13, window_bounds = array<i64: 2, 1, 32>}, {pipeline_mode = #tpu.pipeline_mode<synchronous>, transform_indices = @transform_14, window_bounds = array<i64: 2, 32, 64>}, {pipeline_mode = #tpu.pipeline_mode<synchronous>, transform_indices = @transform_15, window_bounds = array<i64: 2, 1, 64>}, {pipeline_mode = #tpu.pipeline_mode<synchronous>, transform_indices = @transform_16, window_bounds = array<i64: 2, 64, 32>}, {pipeline_mode = #tpu.pipeline_mode<synchronous>, transform_indices = @transform_17, window_bounds = array<i64: 2, 1, 32>}, {pipeline_mode = #tpu.pipeline_mode<synchronous>, transform_indices = @transform_18, window_bounds = array<i64: 2, 1, 32>}, {pipeline_mode = #tpu.pipeline_mode<synchronous>, transform_indices = @transform_19, window_bounds = array<i64: 2, 1, 32>}, {pipeline_mode = #tpu.pipeline_mode<synchronous>, transform_indices = @transform_20, window_bounds = array<i64: 32, 64>}, {pipeline_mode = #tpu.pipeline_mode<synchronous>, transform_indices = @transform_21, window_bounds = array<i64: 1, 64>}, {pipeline_mode = #tpu.pipeline_mode<synchronous>, transform_indices = @transform_22, window_bounds = array<i64: 64, 3>}, {pipeline_mode = #tpu.pipeline_mode<synchronous>, transform_indices = @transform_23, window_bounds = array<i64: 1, 3>}, {transform_indices = @transform_24, window_bounds = array<i64: 1, 1, 3>}]} {
    %c0 = arith.constant 0 : index
    %c0_0 = arith.constant 0 : index
    %c0_1 = arith.constant 0 : index
    %0 = vector.load %arg1[%c0, %c0_0, %c0_1] : memref<1x16x192xf32, #tpu.memory_space<vmem>>, vector<1x16x192xf32>
    %1 = vector.shape_cast %0 : vector<1x16x192xf32> to vector<16x192xf32>
    %c0_2 = arith.constant 0 : index
    %c0_3 = arith.constant 0 : index
    %2 = vector.load %arg3[%c0_2, %c0_3] : memref<192x32xf32, #tpu.memory_space<vmem>>, vector<192x32xf32>
    %cst = arith.constant dense<0.000000e+00> : vector<16x32xf32>
    %3 = tpu.matmul %1, %2, %cst {dimension_numbers = #tpu.dot_dimension_numbers<[1], [0], [0], [1], [0, 0, 1, 1], [], []>} : vector<16x192xf32>, vector<192x32xf32>, vector<16x32xf32> -> vector<16x32xf32>
    %c0_4 = arith.constant 0 : index
    %c0_5 = arith.constant 0 : index
    %4 = vector.load %arg4[%c0_4, %c0_5] : memref<1x32xf32, #tpu.memory_space<vmem>>, vector<1x32xf32>
    %5 = vector.broadcast %4 : vector<1x32xf32> to vector<16x32xf32>
    %6 = arith.addf %3, %5 : vector<16x32xf32>
    %c0_6 = arith.constant 0 : index
    %c0_7 = arith.constant 0 : index
    %c0_8 = arith.constant 0 : index
    %7 = vector.load %arg2[%c0_6, %c0_7, %c0_8] : memref<1x4x16xf32, #tpu.memory_space<vmem>>, vector<1x4x16xf32>
    %8 = vector.shape_cast %7 : vector<1x4x16xf32> to vector<4x16xf32>
    %c0_9 = arith.constant 0 : index
    %c0_10 = arith.constant 0 : index
    %9 = vector.load %arg6[%c0_9, %c0_10] : memref<16x32xf32, #tpu.memory_space<vmem>>, vector<16x32xf32>
    %cst_11 = arith.constant dense<0.000000e+00> : vector<4x32xf32>
    %10 = tpu.matmul %8, %9, %cst_11 {dimension_numbers = #tpu.dot_dimension_numbers<[1], [0], [0], [1], [0, 0, 1, 1], [], []>} : vector<4x16xf32>, vector<16x32xf32>, vector<4x32xf32> -> vector<4x32xf32>
    %c0_12 = arith.constant 0 : index
    %c0_13 = arith.constant 0 : index
    %11 = vector.load %arg8[%c0_12, %c0_13] : memref<24x32xf32, #tpu.memory_space<vmem>>, vector<24x32xf32>
    %c0_14 = arith.constant 0 : index
    %c0_15 = arith.constant 0 : index
    %12 = vector.load %arg5[%c0_14, %c0_15] : memref<24x16xf32, #tpu.memory_space<vmem>>, vector<24x16xf32>
    %cst_16 = arith.constant dense<0.000000e+00> : vector<24x32xf32>
    %13 = tpu.matmul %12, %6, %cst_16 {dimension_numbers = #tpu.dot_dimension_numbers<[1], [0], [0], [1], [0, 0, 1, 1], [], []>} : vector<24x16xf32>, vector<16x32xf32>, vector<24x32xf32> -> vector<24x32xf32>
    %14 = arith.addf %11, %13 : vector<24x32xf32>
    %c0_17 = arith.constant 0 : index
    %c0_18 = arith.constant 0 : index
    %15 = vector.load %arg7[%c0_17, %c0_18] : memref<24x4xf32, #tpu.memory_space<vmem>>, vector<24x4xf32>
    %cst_19 = arith.constant dense<0.000000e+00> : vector<24x32xf32>
    %16 = tpu.matmul %15, %10, %cst_19 {dimension_numbers = #tpu.dot_dimension_numbers<[1], [0], [0], [1], [0, 0, 1, 1], [], []>} : vector<24x4xf32>, vector<4x32xf32>, vector<24x32xf32> -> vector<24x32xf32>
    %17 = arith.addf %14, %16 : vector<24x32xf32>
    %18 = tpu.iota {dimensions = array<i32: 1>} : vector<24x24xi32>
    %c17_i32 = arith.constant 17 : i32
    %19 = vector.broadcast %c17_i32 : i32 to vector<24x24xi32>
    %20 = arith.cmpi slt, %18, %19 : vector<24x24xi32>
    %c0_i32 = arith.constant 0 : i32
    %21 = arith.index_cast %c0_i32 : i32 to index
    %c0_20 = arith.constant 0 : index
    %c0_21 = arith.constant 0 : index
    %22 = vector.load %arg9[%21, %c0_20, %c0_21] : memref<2x32x96xf32, #tpu.memory_space<vmem>>, vector<1x32x96xf32>
    %23 = vector.shape_cast %22 : vector<1x32x96xf32> to vector<32x96xf32>
    %24 = arith.index_cast %c0_i32 : i32 to index
    %c0_22 = arith.constant 0 : index
    %c0_23 = arith.constant 0 : index
    %25 = vector.load %arg10[%24, %c0_22, %c0_23] : memref<2x1x96xf32, #tpu.memory_space<vmem>>, vector<1x1x96xf32>
    %26 = vector.shape_cast %25 : vector<1x1x96xf32> to vector<1x96xf32>
    %27 = arith.index_cast %c0_i32 : i32 to index
    %c0_24 = arith.constant 0 : index
    %c0_25 = arith.constant 0 : index
    %28 = vector.load %arg11[%27, %c0_24, %c0_25] : memref<2x32x32xf32, #tpu.memory_space<vmem>>, vector<1x32x32xf32>
    %29 = vector.shape_cast %28 : vector<1x32x32xf32> to vector<32x32xf32>
    %30 = arith.index_cast %c0_i32 : i32 to index
    %c0_26 = arith.constant 0 : index
    %c0_27 = arith.constant 0 : index
    %31 = vector.load %arg12[%30, %c0_26, %c0_27] : memref<2x1x32xf32, #tpu.memory_space<vmem>>, vector<1x1x32xf32>
    %32 = vector.shape_cast %31 : vector<1x1x32xf32> to vector<1x32xf32>
    %cst_28 = arith.constant dense<0.000000e+00> : vector<24x96xf32>
    %33 = tpu.matmul %17, %23, %cst_28 {dimension_numbers = #tpu.dot_dimension_numbers<[1], [0], [0], [1], [0, 0, 1, 1], [], []>} : vector<24x32xf32>, vector<32x96xf32>, vector<24x96xf32> -> vector<24x96xf32>
    %34 = vector.broadcast %26 : vector<1x96xf32> to vector<24x96xf32>
    %35 = arith.addf %33, %34 : vector<24x96xf32>
    %cst_29 = arith.constant 0.000000e+00 : f32
    %36 = vector.broadcast %cst_29 : f32 to vector<24x32xf32>
    %37 = vector.extract_strided_slice %35 {offsets = [0, 0], sizes = [24, 8], strides = [1, 1]} : vector<24x96xf32> to vector<24x8xf32>
    %38 = vector.extract_strided_slice %35 {offsets = [0, 32], sizes = [24, 8], strides = [1, 1]} : vector<24x96xf32> to vector<24x8xf32>
    %39 = vector.extract_strided_slice %35 {offsets = [0, 64], sizes = [24, 8], strides = [1, 1]} : vector<24x96xf32> to vector<24x8xf32>
    %40 = tpu.transpose %38, [1, 0] : vector<24x8xf32> -> vector<8x24xf32>
    %cst_30 = arith.constant dense<0.000000e+00> : vector<24x24xf32>
    %41 = tpu.matmul %37, %40, %cst_30 {dimension_numbers = #tpu.dot_dimension_numbers<[1], [0], [0], [1], [0, 0, 1, 1], [], []>} : vector<24x8xf32>, vector<8x24xf32>, vector<24x24xf32> -> vector<24x24xf32>
    %cst_31 = arith.constant 0.353553385 : f32
    %42 = vector.broadcast %cst_31 : f32 to vector<24x24xf32>
    %43 = arith.mulf %41, %42 : vector<24x24xf32>
    %cst_32 = arith.constant -1.000000e+30 : f32
    %44 = vector.broadcast %cst_32 : f32 to vector<24x24xf32>
    %45 = arith.select %20, %43, %44 : vector<24x24xi1>, vector<24x24xf32>
    %cst_33 = arith.constant dense<0xFF800000> : vector<24xf32>
    %46 = vector.multi_reduction <maximumf>, %45, %cst_33 [1] : vector<24x24xf32> to vector<24xf32>
    %47 = vector.shape_cast %46 : vector<24xf32> to vector<24x1xf32>
    %48 = vector.broadcast %47 : vector<24x1xf32> to vector<24x24xf32>
    %49 = arith.subf %45, %48 : vector<24x24xf32>
    %50 = math.exp %49 : vector<24x24xf32>
    %cst_34 = arith.constant dense<0.000000e+00> : vector<24xf32>
    %51 = vector.multi_reduction <add>, %50, %cst_34 [1] : vector<24x24xf32> to vector<24xf32>
    %52 = vector.shape_cast %51 : vector<24xf32> to vector<24x1xf32>
    %53 = tpu.reciprocal %52 {approx = true} : vector<24x1xf32> -> vector<24x1xf32>
    %54 = vector.broadcast %53 : vector<24x1xf32> to vector<24x24xf32>
    %55 = arith.mulf %50, %54 : vector<24x24xf32>
    %cst_35 = arith.constant dense<0.000000e+00> : vector<24x8xf32>
    %56 = tpu.matmul %55, %39, %cst_35 {dimension_numbers = #tpu.dot_dimension_numbers<[1], [0], [0], [1], [0, 0, 1, 1], [], []>} : vector<24x24xf32>, vector<24x8xf32>, vector<24x8xf32> -> vector<24x8xf32>
    %57 = vector.extract_strided_slice %29 {offsets = [0, 0], sizes = [8, 32], strides = [1, 1]} : vector<32x32xf32> to vector<8x32xf32>
    %cst_36 = arith.constant dense<0.000000e+00> : vector<24x32xf32>
    %58 = tpu.matmul %56, %57, %cst_36 {dimension_numbers = #tpu.dot_dimension_numbers<[1], [0], [0], [1], [0, 0, 1, 1], [], []>} : vector<24x8xf32>, vector<8x32xf32>, vector<24x32xf32> -> vector<24x32xf32>
    %59 = arith.addf %36, %58 : vector<24x32xf32>
    %60 = vector.extract_strided_slice %35 {offsets = [0, 8], sizes = [24, 8], strides = [1, 1]} : vector<24x96xf32> to vector<24x8xf32>
    %61 = vector.extract_strided_slice %35 {offsets = [0, 40], sizes = [24, 8], strides = [1, 1]} : vector<24x96xf32> to vector<24x8xf32>
    %62 = vector.extract_strided_slice %35 {offsets = [0, 72], sizes = [24, 8], strides = [1, 1]} : vector<24x96xf32> to vector<24x8xf32>
    %63 = tpu.transpose %61, [1, 0] : vector<24x8xf32> -> vector<8x24xf32>
    %cst_37 = arith.constant dense<0.000000e+00> : vector<24x24xf32>
    %64 = tpu.matmul %60, %63, %cst_37 {dimension_numbers = #tpu.dot_dimension_numbers<[1], [0], [0], [1], [0, 0, 1, 1], [], []>} : vector<24x8xf32>, vector<8x24xf32>, vector<24x24xf32> -> vector<24x24xf32>
    %cst_38 = arith.constant 0.353553385 : f32
    %65 = vector.broadcast %cst_38 : f32 to vector<24x24xf32>
    %66 = arith.mulf %64, %65 : vector<24x24xf32>
    %cst_39 = arith.constant -1.000000e+30 : f32
    %67 = vector.broadcast %cst_39 : f32 to vector<24x24xf32>
    %68 = arith.select %20, %66, %67 : vector<24x24xi1>, vector<24x24xf32>
    %cst_40 = arith.constant dense<0xFF800000> : vector<24xf32>
    %69 = vector.multi_reduction <maximumf>, %68, %cst_40 [1] : vector<24x24xf32> to vector<24xf32>
    %70 = vector.shape_cast %69 : vector<24xf32> to vector<24x1xf32>
    %71 = vector.broadcast %70 : vector<24x1xf32> to vector<24x24xf32>
    %72 = arith.subf %68, %71 : vector<24x24xf32>
    %73 = math.exp %72 : vector<24x24xf32>
    %cst_41 = arith.constant dense<0.000000e+00> : vector<24xf32>
    %74 = vector.multi_reduction <add>, %73, %cst_41 [1] : vector<24x24xf32> to vector<24xf32>
    %75 = vector.shape_cast %74 : vector<24xf32> to vector<24x1xf32>
    %76 = tpu.reciprocal %75 {approx = true} : vector<24x1xf32> -> vector<24x1xf32>
    %77 = vector.broadcast %76 : vector<24x1xf32> to vector<24x24xf32>
    %78 = arith.mulf %73, %77 : vector<24x24xf32>
    %cst_42 = arith.constant dense<0.000000e+00> : vector<24x8xf32>
    %79 = tpu.matmul %78, %62, %cst_42 {dimension_numbers = #tpu.dot_dimension_numbers<[1], [0], [0], [1], [0, 0, 1, 1], [], []>} : vector<24x24xf32>, vector<24x8xf32>, vector<24x8xf32> -> vector<24x8xf32>
    %80 = vector.extract_strided_slice %29 {offsets = [8, 0], sizes = [8, 32], strides = [1, 1]} : vector<32x32xf32> to vector<8x32xf32>
    %cst_43 = arith.constant dense<0.000000e+00> : vector<24x32xf32>
    %81 = tpu.matmul %79, %80, %cst_43 {dimension_numbers = #tpu.dot_dimension_numbers<[1], [0], [0], [1], [0, 0, 1, 1], [], []>} : vector<24x8xf32>, vector<8x32xf32>, vector<24x32xf32> -> vector<24x32xf32>
    %82 = arith.addf %59, %81 : vector<24x32xf32>
    %83 = vector.extract_strided_slice %35 {offsets = [0, 16], sizes = [24, 8], strides = [1, 1]} : vector<24x96xf32> to vector<24x8xf32>
    %84 = vector.extract_strided_slice %35 {offsets = [0, 48], sizes = [24, 8], strides = [1, 1]} : vector<24x96xf32> to vector<24x8xf32>
    %85 = vector.extract_strided_slice %35 {offsets = [0, 80], sizes = [24, 8], strides = [1, 1]} : vector<24x96xf32> to vector<24x8xf32>
    %86 = tpu.transpose %84, [1, 0] : vector<24x8xf32> -> vector<8x24xf32>
    %cst_44 = arith.constant dense<0.000000e+00> : vector<24x24xf32>
    %87 = tpu.matmul %83, %86, %cst_44 {dimension_numbers = #tpu.dot_dimension_numbers<[1], [0], [0], [1], [0, 0, 1, 1], [], []>} : vector<24x8xf32>, vector<8x24xf32>, vector<24x24xf32> -> vector<24x24xf32>
    %cst_45 = arith.constant 0.353553385 : f32
    %88 = vector.broadcast %cst_45 : f32 to vector<24x24xf32>
    %89 = arith.mulf %87, %88 : vector<24x24xf32>
    %cst_46 = arith.constant -1.000000e+30 : f32
    %90 = vector.broadcast %cst_46 : f32 to vector<24x24xf32>
    %91 = arith.select %20, %89, %90 : vector<24x24xi1>, vector<24x24xf32>
    %cst_47 = arith.constant dense<0xFF800000> : vector<24xf32>
    %92 = vector.multi_reduction <maximumf>, %91, %cst_47 [1] : vector<24x24xf32> to vector<24xf32>
    %93 = vector.shape_cast %92 : vector<24xf32> to vector<24x1xf32>
    %94 = vector.broadcast %93 : vector<24x1xf32> to vector<24x24xf32>
    %95 = arith.subf %91, %94 : vector<24x24xf32>
    %96 = math.exp %95 : vector<24x24xf32>
    %cst_48 = arith.constant dense<0.000000e+00> : vector<24xf32>
    %97 = vector.multi_reduction <add>, %96, %cst_48 [1] : vector<24x24xf32> to vector<24xf32>
    %98 = vector.shape_cast %97 : vector<24xf32> to vector<24x1xf32>
    %99 = tpu.reciprocal %98 {approx = true} : vector<24x1xf32> -> vector<24x1xf32>
    %100 = vector.broadcast %99 : vector<24x1xf32> to vector<24x24xf32>
    %101 = arith.mulf %96, %100 : vector<24x24xf32>
    %cst_49 = arith.constant dense<0.000000e+00> : vector<24x8xf32>
    %102 = tpu.matmul %101, %85, %cst_49 {dimension_numbers = #tpu.dot_dimension_numbers<[1], [0], [0], [1], [0, 0, 1, 1], [], []>} : vector<24x24xf32>, vector<24x8xf32>, vector<24x8xf32> -> vector<24x8xf32>
    %103 = vector.extract_strided_slice %29 {offsets = [16, 0], sizes = [8, 32], strides = [1, 1]} : vector<32x32xf32> to vector<8x32xf32>
    %cst_50 = arith.constant dense<0.000000e+00> : vector<24x32xf32>
    %104 = tpu.matmul %102, %103, %cst_50 {dimension_numbers = #tpu.dot_dimension_numbers<[1], [0], [0], [1], [0, 0, 1, 1], [], []>} : vector<24x8xf32>, vector<8x32xf32>, vector<24x32xf32> -> vector<24x32xf32>
    %105 = arith.addf %82, %104 : vector<24x32xf32>
    %106 = vector.extract_strided_slice %35 {offsets = [0, 24], sizes = [24, 8], strides = [1, 1]} : vector<24x96xf32> to vector<24x8xf32>
    %107 = vector.extract_strided_slice %35 {offsets = [0, 56], sizes = [24, 8], strides = [1, 1]} : vector<24x96xf32> to vector<24x8xf32>
    %108 = vector.extract_strided_slice %35 {offsets = [0, 88], sizes = [24, 8], strides = [1, 1]} : vector<24x96xf32> to vector<24x8xf32>
    %109 = tpu.transpose %107, [1, 0] : vector<24x8xf32> -> vector<8x24xf32>
    %cst_51 = arith.constant dense<0.000000e+00> : vector<24x24xf32>
    %110 = tpu.matmul %106, %109, %cst_51 {dimension_numbers = #tpu.dot_dimension_numbers<[1], [0], [0], [1], [0, 0, 1, 1], [], []>} : vector<24x8xf32>, vector<8x24xf32>, vector<24x24xf32> -> vector<24x24xf32>
    %cst_52 = arith.constant 0.353553385 : f32
    %111 = vector.broadcast %cst_52 : f32 to vector<24x24xf32>
    %112 = arith.mulf %110, %111 : vector<24x24xf32>
    %cst_53 = arith.constant -1.000000e+30 : f32
    %113 = vector.broadcast %cst_53 : f32 to vector<24x24xf32>
    %114 = arith.select %20, %112, %113 : vector<24x24xi1>, vector<24x24xf32>
    %cst_54 = arith.constant dense<0xFF800000> : vector<24xf32>
    %115 = vector.multi_reduction <maximumf>, %114, %cst_54 [1] : vector<24x24xf32> to vector<24xf32>
    %116 = vector.shape_cast %115 : vector<24xf32> to vector<24x1xf32>
    %117 = vector.broadcast %116 : vector<24x1xf32> to vector<24x24xf32>
    %118 = arith.subf %114, %117 : vector<24x24xf32>
    %119 = math.exp %118 : vector<24x24xf32>
    %cst_55 = arith.constant dense<0.000000e+00> : vector<24xf32>
    %120 = vector.multi_reduction <add>, %119, %cst_55 [1] : vector<24x24xf32> to vector<24xf32>
    %121 = vector.shape_cast %120 : vector<24xf32> to vector<24x1xf32>
    %122 = tpu.reciprocal %121 {approx = true} : vector<24x1xf32> -> vector<24x1xf32>
    %123 = vector.broadcast %122 : vector<24x1xf32> to vector<24x24xf32>
    %124 = arith.mulf %119, %123 : vector<24x24xf32>
    %cst_56 = arith.constant dense<0.000000e+00> : vector<24x8xf32>
    %125 = tpu.matmul %124, %108, %cst_56 {dimension_numbers = #tpu.dot_dimension_numbers<[1], [0], [0], [1], [0, 0, 1, 1], [], []>} : vector<24x24xf32>, vector<24x8xf32>, vector<24x8xf32> -> vector<24x8xf32>
    %126 = vector.extract_strided_slice %29 {offsets = [24, 0], sizes = [8, 32], strides = [1, 1]} : vector<32x32xf32> to vector<8x32xf32>
    %cst_57 = arith.constant dense<0.000000e+00> : vector<24x32xf32>
    %127 = tpu.matmul %125, %126, %cst_57 {dimension_numbers = #tpu.dot_dimension_numbers<[1], [0], [0], [1], [0, 0, 1, 1], [], []>} : vector<24x8xf32>, vector<8x32xf32>, vector<24x32xf32> -> vector<24x32xf32>
    %128 = arith.addf %105, %127 : vector<24x32xf32>
    %129 = vector.broadcast %32 : vector<1x32xf32> to vector<24x32xf32>
    %130 = arith.addf %128, %129 : vector<24x32xf32>
    %131 = arith.addf %17, %130 : vector<24x32xf32>
    %132 = arith.index_cast %c0_i32 : i32 to index
    %c0_58 = arith.constant 0 : index
    %c0_59 = arith.constant 0 : index
    %133 = vector.load %arg13[%132, %c0_58, %c0_59] : memref<2x1x32xf32, #tpu.memory_space<vmem>>, vector<1x1x32xf32>
    %134 = vector.shape_cast %133 : vector<1x1x32xf32> to vector<1x32xf32>
    %135 = arith.index_cast %c0_i32 : i32 to index
    %c0_60 = arith.constant 0 : index
    %c0_61 = arith.constant 0 : index
    %136 = vector.load %arg14[%135, %c0_60, %c0_61] : memref<2x1x32xf32, #tpu.memory_space<vmem>>, vector<1x1x32xf32>
    %137 = vector.shape_cast %136 : vector<1x1x32xf32> to vector<1x32xf32>
    %cst_62 = arith.constant dense<0.000000e+00> : vector<24xf32>
    %138 = vector.multi_reduction <add>, %131, %cst_62 [1] : vector<24x32xf32> to vector<24xf32>
    %139 = vector.shape_cast %138 : vector<24xf32> to vector<24x1xf32>
    %cst_63 = arith.constant 3.200000e+01 : f32
    %140 = vector.broadcast %cst_63 : f32 to vector<24x1xf32>
    %141 = arith.divf %139, %140 : vector<24x1xf32>
    %142 = vector.broadcast %141 : vector<24x1xf32> to vector<24x32xf32>
    %143 = arith.subf %131, %142 : vector<24x32xf32>
    %144 = arith.mulf %143, %143 : vector<24x32xf32>
    %cst_64 = arith.constant dense<0.000000e+00> : vector<24xf32>
    %145 = vector.multi_reduction <add>, %144, %cst_64 [1] : vector<24x32xf32> to vector<24xf32>
    %146 = vector.shape_cast %145 : vector<24xf32> to vector<24x1xf32>
    %cst_65 = arith.constant 3.200000e+01 : f32
    %147 = vector.broadcast %cst_65 : f32 to vector<24x1xf32>
    %148 = arith.divf %146, %147 : vector<24x1xf32>
    %cst_66 = arith.constant 9.99999974E-6 : f32
    %149 = vector.broadcast %cst_66 : f32 to vector<24x1xf32>
    %150 = arith.addf %148, %149 : vector<24x1xf32>
    %151 = math.rsqrt %150 : vector<24x1xf32>
    %152 = vector.broadcast %151 : vector<24x1xf32> to vector<24x32xf32>
    %153 = arith.mulf %143, %152 : vector<24x32xf32>
    %154 = vector.broadcast %134 : vector<1x32xf32> to vector<24x32xf32>
    %155 = arith.mulf %153, %154 : vector<24x32xf32>
    %156 = vector.broadcast %137 : vector<1x32xf32> to vector<24x32xf32>
    %157 = arith.addf %155, %156 : vector<24x32xf32>
    %158 = arith.index_cast %c0_i32 : i32 to index
    %c0_67 = arith.constant 0 : index
    %c0_68 = arith.constant 0 : index
    %159 = vector.load %arg15[%158, %c0_67, %c0_68] : memref<2x32x64xf32, #tpu.memory_space<vmem>>, vector<1x32x64xf32>
    %160 = vector.shape_cast %159 : vector<1x32x64xf32> to vector<32x64xf32>
    %cst_69 = arith.constant dense<0.000000e+00> : vector<24x64xf32>
    %161 = tpu.matmul %157, %160, %cst_69 {dimension_numbers = #tpu.dot_dimension_numbers<[1], [0], [0], [1], [0, 0, 1, 1], [], []>} : vector<24x32xf32>, vector<32x64xf32>, vector<24x64xf32> -> vector<24x64xf32>
    %162 = arith.index_cast %c0_i32 : i32 to index
    %c0_70 = arith.constant 0 : index
    %c0_71 = arith.constant 0 : index
    %163 = vector.load %arg16[%162, %c0_70, %c0_71] : memref<2x1x64xf32, #tpu.memory_space<vmem>>, vector<1x1x64xf32>
    %164 = vector.shape_cast %163 : vector<1x1x64xf32> to vector<1x64xf32>
    %165 = vector.broadcast %164 : vector<1x64xf32> to vector<24x64xf32>
    %166 = arith.addf %161, %165 : vector<24x64xf32>
    %cst_72 = arith.constant 0.000000e+00 : f32
    %167 = vector.broadcast %cst_72 : f32 to vector<24x64xf32>
    %168 = arith.maximumf %166, %167 : vector<24x64xf32>
    %169 = arith.index_cast %c0_i32 : i32 to index
    %c0_73 = arith.constant 0 : index
    %c0_74 = arith.constant 0 : index
    %170 = vector.load %arg17[%169, %c0_73, %c0_74] : memref<2x64x32xf32, #tpu.memory_space<vmem>>, vector<1x64x32xf32>
    %171 = vector.shape_cast %170 : vector<1x64x32xf32> to vector<64x32xf32>
    %cst_75 = arith.constant dense<0.000000e+00> : vector<24x32xf32>
    %172 = tpu.matmul %168, %171, %cst_75 {dimension_numbers = #tpu.dot_dimension_numbers<[1], [0], [0], [1], [0, 0, 1, 1], [], []>} : vector<24x64xf32>, vector<64x32xf32>, vector<24x32xf32> -> vector<24x32xf32>
    %173 = arith.index_cast %c0_i32 : i32 to index
    %c0_76 = arith.constant 0 : index
    %c0_77 = arith.constant 0 : index
    %174 = vector.load %arg18[%173, %c0_76, %c0_77] : memref<2x1x32xf32, #tpu.memory_space<vmem>>, vector<1x1x32xf32>
    %175 = vector.shape_cast %174 : vector<1x1x32xf32> to vector<1x32xf32>
    %176 = vector.broadcast %175 : vector<1x32xf32> to vector<24x32xf32>
    %177 = arith.addf %172, %176 : vector<24x32xf32>
    %178 = arith.addf %157, %177 : vector<24x32xf32>
    %179 = arith.index_cast %c0_i32 : i32 to index
    %c0_78 = arith.constant 0 : index
    %c0_79 = arith.constant 0 : index
    %180 = vector.load %arg19[%179, %c0_78, %c0_79] : memref<2x1x32xf32, #tpu.memory_space<vmem>>, vector<1x1x32xf32>
    %181 = vector.shape_cast %180 : vector<1x1x32xf32> to vector<1x32xf32>
    %182 = arith.index_cast %c0_i32 : i32 to index
    %c0_80 = arith.constant 0 : index
    %c0_81 = arith.constant 0 : index
    %183 = vector.load %arg20[%182, %c0_80, %c0_81] : memref<2x1x32xf32, #tpu.memory_space<vmem>>, vector<1x1x32xf32>
    %184 = vector.shape_cast %183 : vector<1x1x32xf32> to vector<1x32xf32>
    %cst_82 = arith.constant dense<0.000000e+00> : vector<24xf32>
    %185 = vector.multi_reduction <add>, %178, %cst_82 [1] : vector<24x32xf32> to vector<24xf32>
    %186 = vector.shape_cast %185 : vector<24xf32> to vector<24x1xf32>
    %cst_83 = arith.constant 3.200000e+01 : f32
    %187 = vector.broadcast %cst_83 : f32 to vector<24x1xf32>
    %188 = arith.divf %186, %187 : vector<24x1xf32>
    %189 = vector.broadcast %188 : vector<24x1xf32> to vector<24x32xf32>
    %190 = arith.subf %178, %189 : vector<24x32xf32>
    %191 = arith.mulf %190, %190 : vector<24x32xf32>
    %cst_84 = arith.constant dense<0.000000e+00> : vector<24xf32>
    %192 = vector.multi_reduction <add>, %191, %cst_84 [1] : vector<24x32xf32> to vector<24xf32>
    %193 = vector.shape_cast %192 : vector<24xf32> to vector<24x1xf32>
    %cst_85 = arith.constant 3.200000e+01 : f32
    %194 = vector.broadcast %cst_85 : f32 to vector<24x1xf32>
    %195 = arith.divf %193, %194 : vector<24x1xf32>
    %cst_86 = arith.constant 9.99999974E-6 : f32
    %196 = vector.broadcast %cst_86 : f32 to vector<24x1xf32>
    %197 = arith.addf %195, %196 : vector<24x1xf32>
    %198 = math.rsqrt %197 : vector<24x1xf32>
    %199 = vector.broadcast %198 : vector<24x1xf32> to vector<24x32xf32>
    %200 = arith.mulf %190, %199 : vector<24x32xf32>
    %201 = vector.broadcast %181 : vector<1x32xf32> to vector<24x32xf32>
    %202 = arith.mulf %200, %201 : vector<24x32xf32>
    %203 = vector.broadcast %184 : vector<1x32xf32> to vector<24x32xf32>
    %204 = arith.addf %202, %203 : vector<24x32xf32>
    %c1_i32 = arith.constant 1 : i32
    %205 = arith.index_cast %c1_i32 : i32 to index
    %c0_87 = arith.constant 0 : index
    %c0_88 = arith.constant 0 : index
    %206 = vector.load %arg9[%205, %c0_87, %c0_88] : memref<2x32x96xf32, #tpu.memory_space<vmem>>, vector<1x32x96xf32>
    %207 = vector.shape_cast %206 : vector<1x32x96xf32> to vector<32x96xf32>
    %208 = arith.index_cast %c1_i32 : i32 to index
    %c0_89 = arith.constant 0 : index
    %c0_90 = arith.constant 0 : index
    %209 = vector.load %arg10[%208, %c0_89, %c0_90] : memref<2x1x96xf32, #tpu.memory_space<vmem>>, vector<1x1x96xf32>
    %210 = vector.shape_cast %209 : vector<1x1x96xf32> to vector<1x96xf32>
    %211 = arith.index_cast %c1_i32 : i32 to index
    %c0_91 = arith.constant 0 : index
    %c0_92 = arith.constant 0 : index
    %212 = vector.load %arg11[%211, %c0_91, %c0_92] : memref<2x32x32xf32, #tpu.memory_space<vmem>>, vector<1x32x32xf32>
    %213 = vector.shape_cast %212 : vector<1x32x32xf32> to vector<32x32xf32>
    %214 = arith.index_cast %c1_i32 : i32 to index
    %c0_93 = arith.constant 0 : index
    %c0_94 = arith.constant 0 : index
    %215 = vector.load %arg12[%214, %c0_93, %c0_94] : memref<2x1x32xf32, #tpu.memory_space<vmem>>, vector<1x1x32xf32>
    %216 = vector.shape_cast %215 : vector<1x1x32xf32> to vector<1x32xf32>
    %cst_95 = arith.constant dense<0.000000e+00> : vector<24x96xf32>
    %217 = tpu.matmul %204, %207, %cst_95 {dimension_numbers = #tpu.dot_dimension_numbers<[1], [0], [0], [1], [0, 0, 1, 1], [], []>} : vector<24x32xf32>, vector<32x96xf32>, vector<24x96xf32> -> vector<24x96xf32>
    %218 = vector.broadcast %210 : vector<1x96xf32> to vector<24x96xf32>
    %219 = arith.addf %217, %218 : vector<24x96xf32>
    %cst_96 = arith.constant 0.000000e+00 : f32
    %220 = vector.broadcast %cst_96 : f32 to vector<24x32xf32>
    %221 = vector.extract_strided_slice %219 {offsets = [0, 0], sizes = [24, 8], strides = [1, 1]} : vector<24x96xf32> to vector<24x8xf32>
    %222 = vector.extract_strided_slice %219 {offsets = [0, 32], sizes = [24, 8], strides = [1, 1]} : vector<24x96xf32> to vector<24x8xf32>
    %223 = vector.extract_strided_slice %219 {offsets = [0, 64], sizes = [24, 8], strides = [1, 1]} : vector<24x96xf32> to vector<24x8xf32>
    %224 = tpu.transpose %222, [1, 0] : vector<24x8xf32> -> vector<8x24xf32>
    %cst_97 = arith.constant dense<0.000000e+00> : vector<24x24xf32>
    %225 = tpu.matmul %221, %224, %cst_97 {dimension_numbers = #tpu.dot_dimension_numbers<[1], [0], [0], [1], [0, 0, 1, 1], [], []>} : vector<24x8xf32>, vector<8x24xf32>, vector<24x24xf32> -> vector<24x24xf32>
    %cst_98 = arith.constant 0.353553385 : f32
    %226 = vector.broadcast %cst_98 : f32 to vector<24x24xf32>
    %227 = arith.mulf %225, %226 : vector<24x24xf32>
    %cst_99 = arith.constant -1.000000e+30 : f32
    %228 = vector.broadcast %cst_99 : f32 to vector<24x24xf32>
    %229 = arith.select %20, %227, %228 : vector<24x24xi1>, vector<24x24xf32>
    %cst_100 = arith.constant dense<0xFF800000> : vector<24xf32>
    %230 = vector.multi_reduction <maximumf>, %229, %cst_100 [1] : vector<24x24xf32> to vector<24xf32>
    %231 = vector.shape_cast %230 : vector<24xf32> to vector<24x1xf32>
    %232 = vector.broadcast %231 : vector<24x1xf32> to vector<24x24xf32>
    %233 = arith.subf %229, %232 : vector<24x24xf32>
    %234 = math.exp %233 : vector<24x24xf32>
    %cst_101 = arith.constant dense<0.000000e+00> : vector<24xf32>
    %235 = vector.multi_reduction <add>, %234, %cst_101 [1] : vector<24x24xf32> to vector<24xf32>
    %236 = vector.shape_cast %235 : vector<24xf32> to vector<24x1xf32>
    %237 = tpu.reciprocal %236 {approx = true} : vector<24x1xf32> -> vector<24x1xf32>
    %238 = vector.broadcast %237 : vector<24x1xf32> to vector<24x24xf32>
    %239 = arith.mulf %234, %238 : vector<24x24xf32>
    %cst_102 = arith.constant dense<0.000000e+00> : vector<24x8xf32>
    %240 = tpu.matmul %239, %223, %cst_102 {dimension_numbers = #tpu.dot_dimension_numbers<[1], [0], [0], [1], [0, 0, 1, 1], [], []>} : vector<24x24xf32>, vector<24x8xf32>, vector<24x8xf32> -> vector<24x8xf32>
    %241 = vector.extract_strided_slice %213 {offsets = [0, 0], sizes = [8, 32], strides = [1, 1]} : vector<32x32xf32> to vector<8x32xf32>
    %cst_103 = arith.constant dense<0.000000e+00> : vector<24x32xf32>
    %242 = tpu.matmul %240, %241, %cst_103 {dimension_numbers = #tpu.dot_dimension_numbers<[1], [0], [0], [1], [0, 0, 1, 1], [], []>} : vector<24x8xf32>, vector<8x32xf32>, vector<24x32xf32> -> vector<24x32xf32>
    %243 = arith.addf %220, %242 : vector<24x32xf32>
    %244 = vector.extract_strided_slice %219 {offsets = [0, 8], sizes = [24, 8], strides = [1, 1]} : vector<24x96xf32> to vector<24x8xf32>
    %245 = vector.extract_strided_slice %219 {offsets = [0, 40], sizes = [24, 8], strides = [1, 1]} : vector<24x96xf32> to vector<24x8xf32>
    %246 = vector.extract_strided_slice %219 {offsets = [0, 72], sizes = [24, 8], strides = [1, 1]} : vector<24x96xf32> to vector<24x8xf32>
    %247 = tpu.transpose %245, [1, 0] : vector<24x8xf32> -> vector<8x24xf32>
    %cst_104 = arith.constant dense<0.000000e+00> : vector<24x24xf32>
    %248 = tpu.matmul %244, %247, %cst_104 {dimension_numbers = #tpu.dot_dimension_numbers<[1], [0], [0], [1], [0, 0, 1, 1], [], []>} : vector<24x8xf32>, vector<8x24xf32>, vector<24x24xf32> -> vector<24x24xf32>
    %cst_105 = arith.constant 0.353553385 : f32
    %249 = vector.broadcast %cst_105 : f32 to vector<24x24xf32>
    %250 = arith.mulf %248, %249 : vector<24x24xf32>
    %cst_106 = arith.constant -1.000000e+30 : f32
    %251 = vector.broadcast %cst_106 : f32 to vector<24x24xf32>
    %252 = arith.select %20, %250, %251 : vector<24x24xi1>, vector<24x24xf32>
    %cst_107 = arith.constant dense<0xFF800000> : vector<24xf32>
    %253 = vector.multi_reduction <maximumf>, %252, %cst_107 [1] : vector<24x24xf32> to vector<24xf32>
    %254 = vector.shape_cast %253 : vector<24xf32> to vector<24x1xf32>
    %255 = vector.broadcast %254 : vector<24x1xf32> to vector<24x24xf32>
    %256 = arith.subf %252, %255 : vector<24x24xf32>
    %257 = math.exp %256 : vector<24x24xf32>
    %cst_108 = arith.constant dense<0.000000e+00> : vector<24xf32>
    %258 = vector.multi_reduction <add>, %257, %cst_108 [1] : vector<24x24xf32> to vector<24xf32>
    %259 = vector.shape_cast %258 : vector<24xf32> to vector<24x1xf32>
    %260 = tpu.reciprocal %259 {approx = true} : vector<24x1xf32> -> vector<24x1xf32>
    %261 = vector.broadcast %260 : vector<24x1xf32> to vector<24x24xf32>
    %262 = arith.mulf %257, %261 : vector<24x24xf32>
    %cst_109 = arith.constant dense<0.000000e+00> : vector<24x8xf32>
    %263 = tpu.matmul %262, %246, %cst_109 {dimension_numbers = #tpu.dot_dimension_numbers<[1], [0], [0], [1], [0, 0, 1, 1], [], []>} : vector<24x24xf32>, vector<24x8xf32>, vector<24x8xf32> -> vector<24x8xf32>
    %264 = vector.extract_strided_slice %213 {offsets = [8, 0], sizes = [8, 32], strides = [1, 1]} : vector<32x32xf32> to vector<8x32xf32>
    %cst_110 = arith.constant dense<0.000000e+00> : vector<24x32xf32>
    %265 = tpu.matmul %263, %264, %cst_110 {dimension_numbers = #tpu.dot_dimension_numbers<[1], [0], [0], [1], [0, 0, 1, 1], [], []>} : vector<24x8xf32>, vector<8x32xf32>, vector<24x32xf32> -> vector<24x32xf32>
    %266 = arith.addf %243, %265 : vector<24x32xf32>
    %267 = vector.extract_strided_slice %219 {offsets = [0, 16], sizes = [24, 8], strides = [1, 1]} : vector<24x96xf32> to vector<24x8xf32>
    %268 = vector.extract_strided_slice %219 {offsets = [0, 48], sizes = [24, 8], strides = [1, 1]} : vector<24x96xf32> to vector<24x8xf32>
    %269 = vector.extract_strided_slice %219 {offsets = [0, 80], sizes = [24, 8], strides = [1, 1]} : vector<24x96xf32> to vector<24x8xf32>
    %270 = tpu.transpose %268, [1, 0] : vector<24x8xf32> -> vector<8x24xf32>
    %cst_111 = arith.constant dense<0.000000e+00> : vector<24x24xf32>
    %271 = tpu.matmul %267, %270, %cst_111 {dimension_numbers = #tpu.dot_dimension_numbers<[1], [0], [0], [1], [0, 0, 1, 1], [], []>} : vector<24x8xf32>, vector<8x24xf32>, vector<24x24xf32> -> vector<24x24xf32>
    %cst_112 = arith.constant 0.353553385 : f32
    %272 = vector.broadcast %cst_112 : f32 to vector<24x24xf32>
    %273 = arith.mulf %271, %272 : vector<24x24xf32>
    %cst_113 = arith.constant -1.000000e+30 : f32
    %274 = vector.broadcast %cst_113 : f32 to vector<24x24xf32>
    %275 = arith.select %20, %273, %274 : vector<24x24xi1>, vector<24x24xf32>
    %cst_114 = arith.constant dense<0xFF800000> : vector<24xf32>
    %276 = vector.multi_reduction <maximumf>, %275, %cst_114 [1] : vector<24x24xf32> to vector<24xf32>
    %277 = vector.shape_cast %276 : vector<24xf32> to vector<24x1xf32>
    %278 = vector.broadcast %277 : vector<24x1xf32> to vector<24x24xf32>
    %279 = arith.subf %275, %278 : vector<24x24xf32>
    %280 = math.exp %279 : vector<24x24xf32>
    %cst_115 = arith.constant dense<0.000000e+00> : vector<24xf32>
    %281 = vector.multi_reduction <add>, %280, %cst_115 [1] : vector<24x24xf32> to vector<24xf32>
    %282 = vector.shape_cast %281 : vector<24xf32> to vector<24x1xf32>
    %283 = tpu.reciprocal %282 {approx = true} : vector<24x1xf32> -> vector<24x1xf32>
    %284 = vector.broadcast %283 : vector<24x1xf32> to vector<24x24xf32>
    %285 = arith.mulf %280, %284 : vector<24x24xf32>
    %cst_116 = arith.constant dense<0.000000e+00> : vector<24x8xf32>
    %286 = tpu.matmul %285, %269, %cst_116 {dimension_numbers = #tpu.dot_dimension_numbers<[1], [0], [0], [1], [0, 0, 1, 1], [], []>} : vector<24x24xf32>, vector<24x8xf32>, vector<24x8xf32> -> vector<24x8xf32>
    %287 = vector.extract_strided_slice %213 {offsets = [16, 0], sizes = [8, 32], strides = [1, 1]} : vector<32x32xf32> to vector<8x32xf32>
    %cst_117 = arith.constant dense<0.000000e+00> : vector<24x32xf32>
    %288 = tpu.matmul %286, %287, %cst_117 {dimension_numbers = #tpu.dot_dimension_numbers<[1], [0], [0], [1], [0, 0, 1, 1], [], []>} : vector<24x8xf32>, vector<8x32xf32>, vector<24x32xf32> -> vector<24x32xf32>
    %289 = arith.addf %266, %288 : vector<24x32xf32>
    %290 = vector.extract_strided_slice %219 {offsets = [0, 24], sizes = [24, 8], strides = [1, 1]} : vector<24x96xf32> to vector<24x8xf32>
    %291 = vector.extract_strided_slice %219 {offsets = [0, 56], sizes = [24, 8], strides = [1, 1]} : vector<24x96xf32> to vector<24x8xf32>
    %292 = vector.extract_strided_slice %219 {offsets = [0, 88], sizes = [24, 8], strides = [1, 1]} : vector<24x96xf32> to vector<24x8xf32>
    %293 = tpu.transpose %291, [1, 0] : vector<24x8xf32> -> vector<8x24xf32>
    %cst_118 = arith.constant dense<0.000000e+00> : vector<24x24xf32>
    %294 = tpu.matmul %290, %293, %cst_118 {dimension_numbers = #tpu.dot_dimension_numbers<[1], [0], [0], [1], [0, 0, 1, 1], [], []>} : vector<24x8xf32>, vector<8x24xf32>, vector<24x24xf32> -> vector<24x24xf32>
    %cst_119 = arith.constant 0.353553385 : f32
    %295 = vector.broadcast %cst_119 : f32 to vector<24x24xf32>
    %296 = arith.mulf %294, %295 : vector<24x24xf32>
    %cst_120 = arith.constant -1.000000e+30 : f32
    %297 = vector.broadcast %cst_120 : f32 to vector<24x24xf32>
    %298 = arith.select %20, %296, %297 : vector<24x24xi1>, vector<24x24xf32>
    %cst_121 = arith.constant dense<0xFF800000> : vector<24xf32>
    %299 = vector.multi_reduction <maximumf>, %298, %cst_121 [1] : vector<24x24xf32> to vector<24xf32>
    %300 = vector.shape_cast %299 : vector<24xf32> to vector<24x1xf32>
    %301 = vector.broadcast %300 : vector<24x1xf32> to vector<24x24xf32>
    %302 = arith.subf %298, %301 : vector<24x24xf32>
    %303 = math.exp %302 : vector<24x24xf32>
    %cst_122 = arith.constant dense<0.000000e+00> : vector<24xf32>
    %304 = vector.multi_reduction <add>, %303, %cst_122 [1] : vector<24x24xf32> to vector<24xf32>
    %305 = vector.shape_cast %304 : vector<24xf32> to vector<24x1xf32>
    %306 = tpu.reciprocal %305 {approx = true} : vector<24x1xf32> -> vector<24x1xf32>
    %307 = vector.broadcast %306 : vector<24x1xf32> to vector<24x24xf32>
    %308 = arith.mulf %303, %307 : vector<24x24xf32>
    %cst_123 = arith.constant dense<0.000000e+00> : vector<24x8xf32>
    %309 = tpu.matmul %308, %292, %cst_123 {dimension_numbers = #tpu.dot_dimension_numbers<[1], [0], [0], [1], [0, 0, 1, 1], [], []>} : vector<24x24xf32>, vector<24x8xf32>, vector<24x8xf32> -> vector<24x8xf32>
    %310 = vector.extract_strided_slice %213 {offsets = [24, 0], sizes = [8, 32], strides = [1, 1]} : vector<32x32xf32> to vector<8x32xf32>
    %cst_124 = arith.constant dense<0.000000e+00> : vector<24x32xf32>
    %311 = tpu.matmul %309, %310, %cst_124 {dimension_numbers = #tpu.dot_dimension_numbers<[1], [0], [0], [1], [0, 0, 1, 1], [], []>} : vector<24x8xf32>, vector<8x32xf32>, vector<24x32xf32> -> vector<24x32xf32>
    %312 = arith.addf %289, %311 : vector<24x32xf32>
    %313 = vector.broadcast %216 : vector<1x32xf32> to vector<24x32xf32>
    %314 = arith.addf %312, %313 : vector<24x32xf32>
    %315 = arith.addf %204, %314 : vector<24x32xf32>
    %316 = arith.index_cast %c1_i32 : i32 to index
    %c0_125 = arith.constant 0 : index
    %c0_126 = arith.constant 0 : index
    %317 = vector.load %arg13[%316, %c0_125, %c0_126] : memref<2x1x32xf32, #tpu.memory_space<vmem>>, vector<1x1x32xf32>
    %318 = vector.shape_cast %317 : vector<1x1x32xf32> to vector<1x32xf32>
    %319 = arith.index_cast %c1_i32 : i32 to index
    %c0_127 = arith.constant 0 : index
    %c0_128 = arith.constant 0 : index
    %320 = vector.load %arg14[%319, %c0_127, %c0_128] : memref<2x1x32xf32, #tpu.memory_space<vmem>>, vector<1x1x32xf32>
    %321 = vector.shape_cast %320 : vector<1x1x32xf32> to vector<1x32xf32>
    %cst_129 = arith.constant dense<0.000000e+00> : vector<24xf32>
    %322 = vector.multi_reduction <add>, %315, %cst_129 [1] : vector<24x32xf32> to vector<24xf32>
    %323 = vector.shape_cast %322 : vector<24xf32> to vector<24x1xf32>
    %cst_130 = arith.constant 3.200000e+01 : f32
    %324 = vector.broadcast %cst_130 : f32 to vector<24x1xf32>
    %325 = arith.divf %323, %324 : vector<24x1xf32>
    %326 = vector.broadcast %325 : vector<24x1xf32> to vector<24x32xf32>
    %327 = arith.subf %315, %326 : vector<24x32xf32>
    %328 = arith.mulf %327, %327 : vector<24x32xf32>
    %cst_131 = arith.constant dense<0.000000e+00> : vector<24xf32>
    %329 = vector.multi_reduction <add>, %328, %cst_131 [1] : vector<24x32xf32> to vector<24xf32>
    %330 = vector.shape_cast %329 : vector<24xf32> to vector<24x1xf32>
    %cst_132 = arith.constant 3.200000e+01 : f32
    %331 = vector.broadcast %cst_132 : f32 to vector<24x1xf32>
    %332 = arith.divf %330, %331 : vector<24x1xf32>
    %cst_133 = arith.constant 9.99999974E-6 : f32
    %333 = vector.broadcast %cst_133 : f32 to vector<24x1xf32>
    %334 = arith.addf %332, %333 : vector<24x1xf32>
    %335 = math.rsqrt %334 : vector<24x1xf32>
    %336 = vector.broadcast %335 : vector<24x1xf32> to vector<24x32xf32>
    %337 = arith.mulf %327, %336 : vector<24x32xf32>
    %338 = vector.broadcast %318 : vector<1x32xf32> to vector<24x32xf32>
    %339 = arith.mulf %337, %338 : vector<24x32xf32>
    %340 = vector.broadcast %321 : vector<1x32xf32> to vector<24x32xf32>
    %341 = arith.addf %339, %340 : vector<24x32xf32>
    %342 = arith.index_cast %c1_i32 : i32 to index
    %c0_134 = arith.constant 0 : index
    %c0_135 = arith.constant 0 : index
    %343 = vector.load %arg15[%342, %c0_134, %c0_135] : memref<2x32x64xf32, #tpu.memory_space<vmem>>, vector<1x32x64xf32>
    %344 = vector.shape_cast %343 : vector<1x32x64xf32> to vector<32x64xf32>
    %cst_136 = arith.constant dense<0.000000e+00> : vector<24x64xf32>
    %345 = tpu.matmul %341, %344, %cst_136 {dimension_numbers = #tpu.dot_dimension_numbers<[1], [0], [0], [1], [0, 0, 1, 1], [], []>} : vector<24x32xf32>, vector<32x64xf32>, vector<24x64xf32> -> vector<24x64xf32>
    %346 = arith.index_cast %c1_i32 : i32 to index
    %c0_137 = arith.constant 0 : index
    %c0_138 = arith.constant 0 : index
    %347 = vector.load %arg16[%346, %c0_137, %c0_138] : memref<2x1x64xf32, #tpu.memory_space<vmem>>, vector<1x1x64xf32>
    %348 = vector.shape_cast %347 : vector<1x1x64xf32> to vector<1x64xf32>
    %349 = vector.broadcast %348 : vector<1x64xf32> to vector<24x64xf32>
    %350 = arith.addf %345, %349 : vector<24x64xf32>
    %cst_139 = arith.constant 0.000000e+00 : f32
    %351 = vector.broadcast %cst_139 : f32 to vector<24x64xf32>
    %352 = arith.maximumf %350, %351 : vector<24x64xf32>
    %353 = arith.index_cast %c1_i32 : i32 to index
    %c0_140 = arith.constant 0 : index
    %c0_141 = arith.constant 0 : index
    %354 = vector.load %arg17[%353, %c0_140, %c0_141] : memref<2x64x32xf32, #tpu.memory_space<vmem>>, vector<1x64x32xf32>
    %355 = vector.shape_cast %354 : vector<1x64x32xf32> to vector<64x32xf32>
    %cst_142 = arith.constant dense<0.000000e+00> : vector<24x32xf32>
    %356 = tpu.matmul %352, %355, %cst_142 {dimension_numbers = #tpu.dot_dimension_numbers<[1], [0], [0], [1], [0, 0, 1, 1], [], []>} : vector<24x64xf32>, vector<64x32xf32>, vector<24x32xf32> -> vector<24x32xf32>
    %357 = arith.index_cast %c1_i32 : i32 to index
    %c0_143 = arith.constant 0 : index
    %c0_144 = arith.constant 0 : index
    %358 = vector.load %arg18[%357, %c0_143, %c0_144] : memref<2x1x32xf32, #tpu.memory_space<vmem>>, vector<1x1x32xf32>
    %359 = vector.shape_cast %358 : vector<1x1x32xf32> to vector<1x32xf32>
    %360 = vector.broadcast %359 : vector<1x32xf32> to vector<24x32xf32>
    %361 = arith.addf %356, %360 : vector<24x32xf32>
    %362 = arith.addf %341, %361 : vector<24x32xf32>
    %363 = arith.index_cast %c1_i32 : i32 to index
    %c0_145 = arith.constant 0 : index
    %c0_146 = arith.constant 0 : index
    %364 = vector.load %arg19[%363, %c0_145, %c0_146] : memref<2x1x32xf32, #tpu.memory_space<vmem>>, vector<1x1x32xf32>
    %365 = vector.shape_cast %364 : vector<1x1x32xf32> to vector<1x32xf32>
    %366 = arith.index_cast %c1_i32 : i32 to index
    %c0_147 = arith.constant 0 : index
    %c0_148 = arith.constant 0 : index
    %367 = vector.load %arg20[%366, %c0_147, %c0_148] : memref<2x1x32xf32, #tpu.memory_space<vmem>>, vector<1x1x32xf32>
    %368 = vector.shape_cast %367 : vector<1x1x32xf32> to vector<1x32xf32>
    %cst_149 = arith.constant dense<0.000000e+00> : vector<24xf32>
    %369 = vector.multi_reduction <add>, %362, %cst_149 [1] : vector<24x32xf32> to vector<24xf32>
    %370 = vector.shape_cast %369 : vector<24xf32> to vector<24x1xf32>
    %cst_150 = arith.constant 3.200000e+01 : f32
    %371 = vector.broadcast %cst_150 : f32 to vector<24x1xf32>
    %372 = arith.divf %370, %371 : vector<24x1xf32>
    %373 = vector.broadcast %372 : vector<24x1xf32> to vector<24x32xf32>
    %374 = arith.subf %362, %373 : vector<24x32xf32>
    %375 = arith.mulf %374, %374 : vector<24x32xf32>
    %cst_151 = arith.constant dense<0.000000e+00> : vector<24xf32>
    %376 = vector.multi_reduction <add>, %375, %cst_151 [1] : vector<24x32xf32> to vector<24xf32>
    %377 = vector.shape_cast %376 : vector<24xf32> to vector<24x1xf32>
    %cst_152 = arith.constant 3.200000e+01 : f32
    %378 = vector.broadcast %cst_152 : f32 to vector<24x1xf32>
    %379 = arith.divf %377, %378 : vector<24x1xf32>
    %cst_153 = arith.constant 9.99999974E-6 : f32
    %380 = vector.broadcast %cst_153 : f32 to vector<24x1xf32>
    %381 = arith.addf %379, %380 : vector<24x1xf32>
    %382 = math.rsqrt %381 : vector<24x1xf32>
    %383 = vector.broadcast %382 : vector<24x1xf32> to vector<24x32xf32>
    %384 = arith.mulf %374, %383 : vector<24x32xf32>
    %385 = vector.broadcast %365 : vector<1x32xf32> to vector<24x32xf32>
    %386 = arith.mulf %384, %385 : vector<24x32xf32>
    %387 = vector.broadcast %368 : vector<1x32xf32> to vector<24x32xf32>
    %388 = arith.addf %386, %387 : vector<24x32xf32>
    %c2_i32 = arith.constant 2 : i32
    %389 = vector.extract_strided_slice %388 {offsets = [0, 0], sizes = [1, 32], strides = [1, 1]} : vector<24x32xf32> to vector<1x32xf32>
    %c0_154 = arith.constant 0 : index
    %c0_155 = arith.constant 0 : index
    %390 = vector.load %arg21[%c0_154, %c0_155] : memref<32x64xf32, #tpu.memory_space<vmem>>, vector<32x64xf32>
    %cst_156 = arith.constant dense<0.000000e+00> : vector<1x64xf32>
    %391 = tpu.matmul %389, %390, %cst_156 {dimension_numbers = #tpu.dot_dimension_numbers<[1], [0], [0], [1], [0, 0, 1, 1], [], []>} : vector<1x32xf32>, vector<32x64xf32>, vector<1x64xf32> -> vector<1x64xf32>
    %c0_157 = arith.constant 0 : index
    %c0_158 = arith.constant 0 : index
    %392 = vector.load %arg22[%c0_157, %c0_158] : memref<1x64xf32, #tpu.memory_space<vmem>>, vector<1x64xf32>
    %393 = arith.addf %391, %392 : vector<1x64xf32>
    %cst_159 = arith.constant 0.000000e+00 : f32
    %394 = vector.broadcast %cst_159 : f32 to vector<1x64xf32>
    %395 = arith.maximumf %393, %394 : vector<1x64xf32>
    %c0_160 = arith.constant 0 : index
    %c0_161 = arith.constant 0 : index
    %396 = vector.load %arg23[%c0_160, %c0_161] : memref<64x3xf32, #tpu.memory_space<vmem>>, vector<64x3xf32>
    %cst_162 = arith.constant dense<0.000000e+00> : vector<1x3xf32>
    %397 = tpu.matmul %395, %396, %cst_162 {dimension_numbers = #tpu.dot_dimension_numbers<[1], [0], [0], [1], [0, 0, 1, 1], [], []>} : vector<1x64xf32>, vector<64x3xf32>, vector<1x3xf32> -> vector<1x3xf32>
    %c0_163 = arith.constant 0 : index
    %c0_164 = arith.constant 0 : index
    %398 = vector.load %arg24[%c0_163, %c0_164] : memref<1x3xf32, #tpu.memory_space<vmem>>, vector<1x3xf32>
    %399 = arith.addf %397, %398 : vector<1x3xf32>
    %c0_165 = arith.constant 0 : index
    %c0_166 = arith.constant 0 : index
    %c0_167 = arith.constant 0 : index
    %400 = vector.load %arg25[%c0_165, %c0_166, %c0_167] : memref<1x1x3xf32, #tpu.memory_space<vmem>>, vector<1x1x3xf32>
    %401 = vector.shape_cast %400 : vector<1x1x3xf32> to vector<1x3xf32>
    %402 = vector.shape_cast %399 : vector<1x3xf32> to vector<1x1x3xf32>
    tpu.vector_store %arg25[%c0_165, %c0_166, %c0_167], %402 {strides = array<i32>} : memref<1x1x3xf32, #tpu.memory_space<vmem>>, vector<1x1x3xf32>,
    return
  }
  func.func @transform_0(%arg0: i32) -> (i32, i32, i32) {
    %c0_i32 = arith.constant 0 : i32
    %c0_i32_0 = arith.constant 0 : i32
    %c0_i32_1 = arith.constant 0 : i32
    return %arg0, %c0_i32, %c0_i32_0 : i32, i32, i32
  }
  func.func @transform_1(%arg0: i32) -> (i32, i32, i32) {
    %c0_i32 = arith.constant 0 : i32
    %c0_i32_0 = arith.constant 0 : i32
    %c0_i32_1 = arith.constant 0 : i32
    return %arg0, %c0_i32, %c0_i32_0 : i32, i32, i32
  }
  func.func @transform_2(%arg0: i32) -> (i32, i32) {
    %c0_i32 = arith.constant 0 : i32
    %c0_i32_0 = arith.constant 0 : i32
    %c0_i32_1 = arith.constant 0 : i32
    return %c0_i32, %c0_i32_0 : i32, i32
  }
  func.func @transform_3(%arg0: i32) -> (i32, i32) {
    %c0_i32 = arith.constant 0 : i32
    %c0_i32_0 = arith.constant 0 : i32
    %c0_i32_1 = arith.constant 0 : i32
    return %c0_i32, %c0_i32_0 : i32, i32
  }
  func.func @transform_4(%arg0: i32) -> (i32, i32) {
    %c0_i32 = arith.constant 0 : i32
    %c0_i32_0 = arith.constant 0 : i32
    %c0_i32_1 = arith.constant 0 : i32
    return %c0_i32, %c0_i32_0 : i32, i32
  }
  func.func @transform_5(%arg0: i32) -> (i32, i32) {
    %c0_i32 = arith.constant 0 : i32
    %c0_i32_0 = arith.constant 0 : i32
    %c0_i32_1 = arith.constant 0 : i32
    return %c0_i32, %c0_i32_0 : i32, i32
  }
  func.func @transform_6(%arg0: i32) -> (i32, i32) {
    %c0_i32 = arith.constant 0 : i32
    %c0_i32_0 = arith.constant 0 : i32
    %c0_i32_1 = arith.constant 0 : i32
    return %c0_i32, %c0_i32_0 : i32, i32
  }
  func.func @transform_7(%arg0: i32) -> (i32, i32) {
    %c0_i32 = arith.constant 0 : i32
    %c0_i32_0 = arith.constant 0 : i32
    %c0_i32_1 = arith.constant 0 : i32
    return %c0_i32, %c0_i32_0 : i32, i32
  }
  func.func @transform_8(%arg0: i32) -> (i32, i32, i32) {
    %c0_i32 = arith.constant 0 : i32
    %c0_i32_0 = arith.constant 0 : i32
    %c0_i32_1 = arith.constant 0 : i32
    %c0_i32_2 = arith.constant 0 : i32
    return %c0_i32, %c0_i32_0, %c0_i32_1 : i32, i32, i32
  }
  func.func @transform_9(%arg0: i32) -> (i32, i32, i32) {
    %c0_i32 = arith.constant 0 : i32
    %c0_i32_0 = arith.constant 0 : i32
    %c0_i32_1 = arith.constant 0 : i32
    %c0_i32_2 = arith.constant 0 : i32
    return %c0_i32, %c0_i32_0, %c0_i32_1 : i32, i32, i32
  }
  func.func @transform_10(%arg0: i32) -> (i32, i32, i32) {
    %c0_i32 = arith.constant 0 : i32
    %c0_i32_0 = arith.constant 0 : i32
    %c0_i32_1 = arith.constant 0 : i32
    %c0_i32_2 = arith.constant 0 : i32
    return %c0_i32, %c0_i32_0, %c0_i32_1 : i32, i32, i32
  }
  func.func @transform_11(%arg0: i32) -> (i32, i32, i32) {
    %c0_i32 = arith.constant 0 : i32
    %c0_i32_0 = arith.constant 0 : i32
    %c0_i32_1 = arith.constant 0 : i32
    %c0_i32_2 = arith.constant 0 : i32
    return %c0_i32, %c0_i32_0, %c0_i32_1 : i32, i32, i32
  }
  func.func @transform_12(%arg0: i32) -> (i32, i32, i32) {
    %c0_i32 = arith.constant 0 : i32
    %c0_i32_0 = arith.constant 0 : i32
    %c0_i32_1 = arith.constant 0 : i32
    %c0_i32_2 = arith.constant 0 : i32
    return %c0_i32, %c0_i32_0, %c0_i32_1 : i32, i32, i32
  }
  func.func @transform_13(%arg0: i32) -> (i32, i32, i32) {
    %c0_i32 = arith.constant 0 : i32
    %c0_i32_0 = arith.constant 0 : i32
    %c0_i32_1 = arith.constant 0 : i32
    %c0_i32_2 = arith.constant 0 : i32
    return %c0_i32, %c0_i32_0, %c0_i32_1 : i32, i32, i32
  }
  func.func @transform_14(%arg0: i32) -> (i32, i32, i32) {
    %c0_i32 = arith.constant 0 : i32
    %c0_i32_0 = arith.constant 0 : i32
    %c0_i32_1 = arith.constant 0 : i32
    %c0_i32_2 = arith.constant 0 : i32
    return %c0_i32, %c0_i32_0, %c0_i32_1 : i32, i32, i32
  }
  func.func @transform_15(%arg0: i32) -> (i32, i32, i32) {
    %c0_i32 = arith.constant 0 : i32
    %c0_i32_0 = arith.constant 0 : i32
    %c0_i32_1 = arith.constant 0 : i32
    %c0_i32_2 = arith.constant 0 : i32
    return %c0_i32, %c0_i32_0, %c0_i32_1 : i32, i32, i32
  }
  func.func @transform_16(%arg0: i32) -> (i32, i32, i32) {
    %c0_i32 = arith.constant 0 : i32
    %c0_i32_0 = arith.constant 0 : i32
    %c0_i32_1 = arith.constant 0 : i32
    %c0_i32_2 = arith.constant 0 : i32
    return %c0_i32, %c0_i32_0, %c0_i32_1 : i32, i32, i32
  }
  func.func @transform_17(%arg0: i32) -> (i32, i32, i32) {
    %c0_i32 = arith.constant 0 : i32
    %c0_i32_0 = arith.constant 0 : i32
    %c0_i32_1 = arith.constant 0 : i32
    %c0_i32_2 = arith.constant 0 : i32
    return %c0_i32, %c0_i32_0, %c0_i32_1 : i32, i32, i32
  }
  func.func @transform_18(%arg0: i32) -> (i32, i32, i32) {
    %c0_i32 = arith.constant 0 : i32
    %c0_i32_0 = arith.constant 0 : i32
    %c0_i32_1 = arith.constant 0 : i32
    %c0_i32_2 = arith.constant 0 : i32
    return %c0_i32, %c0_i32_0, %c0_i32_1 : i32, i32, i32
  }
  func.func @transform_19(%arg0: i32) -> (i32, i32, i32) {
    %c0_i32 = arith.constant 0 : i32
    %c0_i32_0 = arith.constant 0 : i32
    %c0_i32_1 = arith.constant 0 : i32
    %c0_i32_2 = arith.constant 0 : i32
    return %c0_i32, %c0_i32_0, %c0_i32_1 : i32, i32, i32
  }
  func.func @transform_20(%arg0: i32) -> (i32, i32) {
    %c0_i32 = arith.constant 0 : i32
    %c0_i32_0 = arith.constant 0 : i32
    %c0_i32_1 = arith.constant 0 : i32
    return %c0_i32, %c0_i32_0 : i32, i32
  }
  func.func @transform_21(%arg0: i32) -> (i32, i32) {
    %c0_i32 = arith.constant 0 : i32
    %c0_i32_0 = arith.constant 0 : i32
    %c0_i32_1 = arith.constant 0 : i32
    return %c0_i32, %c0_i32_0 : i32, i32
  }
  func.func @transform_22(%arg0: i32) -> (i32, i32) {
    %c0_i32 = arith.constant 0 : i32
    %c0_i32_0 = arith.constant 0 : i32
    %c0_i32_1 = arith.constant 0 : i32
    return %c0_i32, %c0_i32_0 : i32, i32
  }
  func.func @transform_23(%arg0: i32) -> (i32, i32) {
    %c0_i32 = arith.constant 0 : i32
    %c0_i32_0 = arith.constant 0 : i32
    %c0_i32_1 = arith.constant 0 : i32
    return %c0_i32, %c0_i32_0 : i32, i32
  }
  func.func @transform_24(%arg0: i32) -> (i32, i32, i32) {
    %c0_i32 = arith.constant 0 : i32
    %c0_i32_0 = arith.constant 0 : i32
    %c0_i32_1 = arith.constant 0 : i32
    return %arg0, %c0_i32, %c0_i32_0 : i32, i32, i32
  }
}

</mosaic_0001>

<bundles_post_ra>
// kernel: _lambda_.1
= control target key start
LH: loop header
LB: loop body
LE: loop exit
PB: predicated region body
PF: predicated region fallthrough
CT: control target
= control target key end

     0   :  { %s7598_s0 = inlined_call_operand.vmem [shape: f32[2,16,192], index: 0, kind: input, shape index: {}]   ;;  %s7599_s1 = inlined_call_operand.vmem [shape: f32[2,4,16], index: 1, kind: input, shape index: {}]   ;;  %s7600_s2 = inlined_call_operand.vmem [shape: f32[192,32], index: 2, kind: input, shape index: {}]   ;;  %s7601_s3 = inlined_call_operand.vmem [shape: f32[1,32], index: 3, kind: input, shape index: {}]   ;;  %s7602_s4 = inlined_call_operand.vmem [shape: f32[24,16], index: 4, kind: input, shape index: {}]   ;;  %s7603_s5 = inlined_call_operand.vmem [shape: f32[16,32], index: 5, kind: input, shape index: {}]   ;;  %s7604_s6 = inlined_call_operand.vmem [shape: f32[24,4], index: 6, kind: input, shape index: {}]   ;;  %s7605_s7 = inlined_call_operand.vmem [shape: f32[24,32], index: 7, kind: input, shape index: {}]   ;;  %s7606_s8 = inlined_call_operand.vmem [shape: f32[2,32,96], index: 8, kind: input, shape index: {}]   ;;  %s7607_s9 = inlined_call_operand.vmem [shape: f32[2,1,96], index: 9, kind: input, shape index: {}]   ;;  %s7608_s10 = inlined_call_operand.vmem [shape: f32[2,32,32], index: 10, kind: input, shape index: {}]   ;;  %s7609_s11 = inlined_call_operand.vmem [shape: f32[2,1,32], index: 11, kind: input, shape index: {}, may-alias: {11,13,17,19}]   ;;  %s7610_s12 = inlined_call_operand.vmem [shape: f32[2,1,32], index: 12, kind: input, shape index: {}, may-alias: {12,18}]   ;;  %s7611_s13 = inlined_call_operand.vmem [shape: f32[2,1,32], index: 13, kind: input, shape index: {}, may-alias: {11,13,17,19}]   ;;  %s7612_s14 = inlined_call_operand.vmem [shape: f32[2,32,64], index: 14, kind: input, shape index: {}]   ;;  %s7613_s15 = inlined_call_operand.vmem [shape: f32[2,1,64], index: 15, kind: input, shape index: {}]   ;;  %s7614_s16 = inlined_call_operand.vmem [shape: f32[2,64,32], index: 16, kind: input, shape index: {}]   ;;  %s7615_s17 = inlined_call_operand.vmem [shape: f32[2,1,32], index: 17, kind: input, shape index: {}, may-alias: {11,13,17,19}]   ;;  %s7616_s18 = inlined_call_operand.vmem [shape: f32[2,1,32], index: 18, kind: input, shape index: {}, may-alias: {12,18}]   ;;  %s7617_s19 = inlined_call_operand.vmem [shape: f32[2,1,32], index: 19, kind: input, shape index: {}, may-alias: {11,13,17,19}]   ;;  %s7618_s20 = inlined_call_operand.vmem [shape: f32[32,64], index: 20, kind: input, shape index: {}]   ;;  %s7619_s21 = inlined_call_operand.vmem [shape: f32[1,64], index: 21, kind: input, shape index: {}]   ;;  %s7620_s22 = inlined_call_operand.vmem [shape: f32[64,3], index: 22, kind: input, shape index: {}]   ;;  %s7621_s23 = inlined_call_operand.vmem [shape: f32[1,3], index: 23, kind: input, shape index: {}]   ;;  %s7622_s24 = inlined_call_operand.hbm [shape: f32[2,1,3], index: 24, kind: output, shape index: {}]  }
   0x1   :  { %7663 = sst [smem:[#allocation12_spill]] %s7598_s0 }
   0x2   :  { %7664 = sst [smem:[#allocation13_spill]] %s7599_s1 }
   0x3   :  { %7665 = sst [smem:[#allocation14_spill]] %s7600_s2 }
   0x4   :  { %7666 = sst [smem:[#allocation15_spill]] %s7601_s3 }
   0x5   :  { %7667 = sst [smem:[#allocation16_spill]] %s7602_s4 }
   0x6   :  { %7668 = sst [smem:[#allocation17_spill]] %s7603_s5 }
   0x7   :  { %7669 = sst [smem:[#allocation18_spill]] %s7604_s6 }
   0x8   :  { %7670 = sst [smem:[#allocation19_spill]] %s7605_s7 }
   0x9   :  { %7671 = sst [smem:[#allocation20_spill]] %s7606_s8 }
   0xa   :  { %7672 = sst [smem:[#allocation21_spill]] %s7619_s21 }
   0xb   :  { %7673 = sst [smem:[#allocation22_spill]] %s7621_s23 }
   0xc   :  { %7674 = sst [smem:[#allocation23_spill]] %s7622_s24 }
   0xd   :  { %29 = vsyncpa [#allocation3], 0 }
   0xe   :  { %31 = vsyncpa [#allocation3 + $0x1], 0  ;;  %s6431_s5 = smov 0   ;;  %s6433_s26 = smov 0  }
   0xf   :  { %s6435_s27 = smov 0   ;;  %s6437_s28 = smov 0  }
  0x10 LB: > { %7675 = sst [smem:[#allocation5_spill]] %s6277_s5  ;;  %s6452_s6 = sadd.s32 4294967295, %s6289_s28   ;;  %s6289_s28 = sphi %s6437_s28, %s7716_s28   ;;  %s6285_s27 = sphi %s6435_s27, %s7718_s27   ;;  %s6281_s26 = sphi %s6433_s26, %s7720_s26   ;;  %s6277_s5 = sphi %s6431_s5, %s7719_s5  }
  0x11   : > { %7676 = sst [smem:[#allocation6_spill]] %s6285_s27  ;;  %s4908_s2 = sadd.s32 4294967294, %s6289_s28  }
  0x12   : > { %7677 = sst [smem:[#allocation7_spill]] %s6289_s28  ;;  %s6456_s29 = sadd.s32 1, %s6289_s28  }
  0x13   : > { %7678 = sst [smem:[#allocation8_spill]] %s6456_s29  ;;  %s558_s0 = sadd.s32 1, %s6285_s27 }
  0x14   : > { %s555_s7 = ssub.s32 %s6289_s28, %s6456_s29  ;;  %p568_p0 = scmp.ne.s32.totalorder %s6285_s27, %s6281_s26 }
  0x15   : > { %p556_p1 = scmp.eq.s32.totalorder %s555_s7, 0  ;;  %p569_p2 = scmp.eq.s32.totalorder %s6452_s6, 1 }
  0x16   : > { %p574_p3 = scmp.ne.s32.totalorder %s6281_s26, %s6277_s5  ;;  %p575_p4 = scmp.eq.s32.totalorder %s4908_s2, 1 }
  0x17   : > { %s6467_s30 = scalar_select %p556_p1, %s6285_s27, %s558_s0  }
  0x18   : > { %p6469_p5 = por %p569_p2, %p568_p0  ;;  %p6473_p6 = por %p575_p4, %p574_p3 }
  0x19   : > { %7679 = sst [smem:[#allocation9_spill]] %s6467_s30  ;;  %p4911_p7 = scmp.ge.s32.totalorder %s6289_s28, 1 }
  0x1a   : > { %s7680_s3 = scalar_select %p6469_p5, 1, 0 }
  0x1b   : > { %s7682_s25 = scalar_select %p6473_p6, 1, 0 }
  0x1c   : > { %7681 = sst [smem:[#allocation10_spill]] %s7680_s3  ;;  %p674_p8 = scmp.lt.s32.totalorder %s6289_s28, 3 }
  0x1d   : > { %7683 = sst [smem:[#allocation11_spill]] %s7682_s25 }
  0x1e   : > { %p675_p9 = pnand %p4911_p7, %p674_p8 }
  0x1f   : > { %s7684_s1 = sld [smem:[#allocation14_spill]] (!%p675_p9)  ;;  %p743_p10 = scmp.lt.s32.totalorder (!%p675_p9), %s6452_s6, 1  ;;  %v6291_v3 = vmov (!%p675_p9), 0.0|0.0   ;;  %vm6292_vm0 = vmmov (!%p675_p9), 0   ;;  %v6293_v6 = vmov (!%p675_p9), 0.0   ;;  %vm787_vm1 = vcmask (!%p675_p9), 523264  }
  0x20   : > { %678 = sbr.rel (%p675_p9) target bundleno = 8436 (0x20f4), region = 116  ;;  %5801 = vmatprep.subr.bf16.mxu0 (!%p675_p9), %v6291_v3  ;;  %5837 = vmatprep.subr.bf16.mxu1 (!%p675_p9), %v6291_v3  ;;  %s7685_s25 = sld [smem:[#allocation12_spill]] (!%p675_p9)  ;;  %vm872_vm2 = vcmask (!%p675_p9), 130048   ;;  %vm1057_vm3 = vcmask (!%p675_p9), 1043456   ;;  %vm1047_vm4 = vcmask (!%p675_p9), 31744   ;;  %vm1163_vm5 = vcmask (!%p675_p9), 261120  }
  0x21   : > { %5298 = vmatprep.mubr.msk.f32.mxu1 (!%p675_p9), %vm6292_vm0, %v6293_v6  ;;  %s7688_s21 = sld [smem:[#allocation13_spill]] (!%p675_p9)  ;;  %s7689_s0 = sld [smem:[#allocation15_spill]] (!%p675_p9)  ;;  %vm1262_vm6 = vcmask (!%p675_p9), 64512   ;;  %vm1361_vm9 = vcmask (!%p675_p9), 195584   ;;  %vm4826_vm10 = vcmask (!%p675_p9), 16384  }
  0x22   : > { %s7658_s3 = smov (!%p675_p9), 96   ;;  %vm6703_vm7 = vmpackc.low (!%p675_p9), %vm1262_vm6, %vm1262_vm6  ;;  %s7648_s30 = smov (!%p675_p9), 80  }
  0x23   : > { %s7638_s4 = smov (!%p675_p9), 112   ;;  %s7642_s2 = smov (!%p675_p9), 72  }
  0x24   : > { %s7701_s23 = smov (!%p675_p9), 64  }
  0x25   : > { %v756_v0 = vld [vmem:[%s7684_s1] sm:$0xff] (!%p675_p9)  ;;  %v757_v1 = vld [vmem:[%s7684_s1 + $0x8] sm:$0xff] (!%p675_p9)  ;;  %v758_v2 = vld [vmem:[%s7684_s1 + $0x10] sm:$0xff] (!%p675_p9) }
  0x26   : > { %v5802_v4 = vpack.c.bf16 (!%p675_p9), %v757_v1, %v756_v0  ;;  %v759_v5 = vld [vmem:[%s7684_s1 + $0x18] sm:$0xff] (!%p675_p9)  ;;  %v760_v8 = vld [vmem:[%s7684_s1 + $0x20] sm:$0xff] (!%p675_p9)  ;;  %v761_v9 = vld [vmem:[%s7684_s1 + $0x28] sm:$0xff] (!%p675_p9) }
  0x27   : > { %s744_s8 = scalar_select %p743_p10, %s6452_s6, 1  ;;  %v5805_v7 = vpack.c.bf16 %v759_v5, %v758_v2  ;;  %v5808_v10 = vpack.c.bf16 %v761_v9, %v760_v8  ;;  %v762_v11 = vld [vmem:[%s7684_s1 + $0x30] sm:$0xff]  ;;  %v763_v12 = vld [vmem:[%s7684_s1 + $0x38] sm:$0xff]  ;;  %v764_v18 = vld [vmem:[%s7684_s1 + $0x40] sm:$0xff] }
  0x28   : > { %5803 = vmatpush1.bf16.msra.mxu0 %v5802_v4  ;;  %v5811_v17 = vpack.c.bf16 %v763_v12, %v762_v11  ;;  %v765_v19 = vld [vmem:[%s7684_s1 + $0x48] sm:$0xff]  ;;  %v766_v22 = vld [vmem:[%s7684_s1 + $0x50] sm:$0xff]  ;;  %v767_v23 = vld [vmem:[%s7684_s1 + $0x58] sm:$0xff] }
  0x29   : > { %5804 = vmatprep.subr.bf16.mxu0 %v6291_v3  ;;  %s5089_s27 = sshll.u32 %s744_s8, 5  ;;  %s4914_s28 = sshll.u32 %s744_s8, 2  ;;  %v5814_v21 = vpack.c.bf16 %v765_v19, %v764_v18  ;;  %v5817_v24 = vpack.c.bf16 %v767_v23, %v766_v22  ;;  %v768_v25 = vld [vmem:[%s7684_s1 + $0x60] sm:$0xff]  ;;  %v769_v26 = vld [vmem:[%s7684_s1 + $0x68] sm:$0xff]  ;;  %v770_v28 = vld [vmem:[%s7684_s1 + $0x70] sm:$0xff] }
  0x2a   : > { %s6507_s5 = scalar_lea.vmem %s7685_s25, %s5089_s27  ;;  %s7686_s27 = sld [smem:[#allocation17_spill]]  ;;  %v5820_v27 = vpack.c.bf16 %v769_v26, %v768_v25  ;;  %v771_v29 = vld [vmem:[%s7684_s1 + $0x78] sm:$0xff]  ;;  %v772_v31 = vld [vmem:[%s7684_s1 + $0x80] sm:$0xff]  ;;  %v773_v32 = vld [vmem:[%s7684_s1 + $0x88] sm:$0xff] }
  0x2b   : > { %v753_v13 = vld [vmem:[%s6507_s5 + $0x8] sm:$0xff]  ;;  %s751_s24 = scalar_lea.vmem %s7688_s21, %s4914_s28  ;;  %v5823_v30 = vpack.c.bf16 %v771_v29, %v770_v28  ;;  %v5826_v33 = vpack.c.bf16 %v773_v32, %v772_v31  ;;  %v774_v34 = vld [vmem:[%s7684_s1 + $0x90] sm:$0xff]  ;;  %v775_v35 = vld [vmem:[%s7684_s1 + $0x98] sm:$0xff]  ;;  %s7690_s8 = sld [smem:[#allocation16_spill]] }
  0x2c   : > { %5806 = vmatpush1.bf16.msra.mxu0 %v5805_v7  ;;  %4916 = vmatprep.mubr.msk.f32.mxu0 %vm787_vm1, %v753_v13  ;;  %v869_v20 = vld [vmem:[%s751_s24] sm:$0xf]  ;;  %v5829_v36 = vpack.c.bf16 %v775_v35, %v774_v34  ;;  %v777_v38 = vld [vmem:[%s7684_s1 + $0xa8] sm:$0xff]  ;;  %v778_v40 = vld [vmem:[%s7684_s1 + $0xb0] sm:$0xff]  ;;  %s7691_s21 = sld [smem:[#allocation20_spill]]  ;;  %s7656_s28 = smov 88  }
  0x2d   : > { %5807 = vmatprep.subr.bf16.mxu0 %v6291_v3  ;;  %v776_v37 = vld [vmem:[%s7684_s1 + $0xa0] sm:$0xff]  ;;  %v779_v41 = vld [vmem:[%s7684_s1 + $0xb8] sm:$0xff]  ;;  %v754_v45 = vld [vmem:[%s6507_s5 + $0x10] sm:$0xff]  ;;  %s7640_s25 = smov 104   ;;  %s7712_s1 = sld [smem:[#allocation23_spill]] }
  0x2e   : > { %v5832_v39 = vpack.c.bf16 %v777_v38, %v776_v37  ;;  %v5835_v42 = vpack.c.bf16 %v779_v41, %v778_v40  ;;  %v752_v43 = vld [vmem:[%s6507_s5] sm:$0xff]  ;;  %v755_v44 = vld [vmem:[%s6507_s5 + $0x18] sm:$0xff]  ;;  %s7650_s5 = smov 56   ;;  %v4998_v32 = vld [vmem:[%s7608_s10 + $0x30] sm:$0xff] }
  0x2f   : > { %v4915_v50 = vld [vmem:[%s7689_s0] ss:$0 sm:$0xff]  ;;  %s7654_s0 = smov 120  }
  0x30   : > { %s7687_s29 = smov %s7686_s27  ;;  %v870_v14 = vld [vmem:[%s7686_s27] sm:$0xff]  ;;  %5809 = vmatpush1.bf16.msra.mxu0 %v5808_v10  ;;  %s7692_s27 = sld [smem:[#allocation18_spill]] }
  0x31   : > { %v871_v15 = vld [vmem:[%s7687_s29 + $0x8] sm:$0xff]  ;;  %5810 = vmatprep.subr.bf16.mxu0 %v6291_v3  ;;  %v949_v56 = vld [vmem:[%s7690_s8] sm:$0xff]  ;;  %v951_v58 = vld [vmem:[%s7690_s8 + $0x10] sm:$0xff] }
  0x32   : > { %v5838_v16 = vpack.c.bf16 %v871_v15, %v870_v14  ;;  %v950_v57 = vld [vmem:[%s7690_s8 + $0x8] sm:$0xff]  ;;  %v1147_v59 = vld [vmem:[%s7691_s21] sm:$0xff]  ;;  %v1149_v1 = vld [vmem:[%s7691_s21 + $0x10] sm:$0xff] }
  0x33   : > { %v1148_v60 = vld [vmem:[%s7691_s21 + $0x8] sm:$0xff]  ;;  %v1150_v2 = vld [vmem:[%s7691_s21 + $0x18] sm:$0xff] }
  0x34   : > { %5839 = vmatpush3.bf16.msra.mxu1 %v5838_v16  ;;  %5812 = vmatpush1.bf16.msra.mxu0 %v5811_v17  ;;  %v5844_v62 = vpack.c.bf16 %v1148_v60, %v1147_v59  ;;  %v5847_v4 = vpack.c.bf16 %v1150_v2, %v1149_v1 }
  0x35   : > { %5840 = vmatprep.subr.bf16.mxu1 %v6291_v3  ;;  %5813 = vmatprep.subr.bf16.mxu0 %v6291_v3 }
  0x36   : > { %s7693_s7 = smov %s7692_s27  ;;  %v1044_v61 = vld [vmem:[%s7692_s27] sm:$0xff]  ;;  %s7694_s27 = sld [smem:[#allocation19_spill]] }
  0x37   : > { %5299 = vmatmul.mubr.msk.f32.vlgmr.msra.gmra.mrb[0].mxu1 %vm872_vm2, %v869_v20  ;;  %v1045_v63 = vld [vmem:[%s7693_s7 + $0x8] sm:$0xff]  ;;  %v1046_v0 = vld [vmem:[%s7693_s7 + $0x10] sm:$0xff]  ;;  %v4926_v20 = vld [vmem:[%s7607_s9] ss:$0 sm:$0xff] }
  0x38   : > { %5305 = vmatprep.mubr.msk.f32.mxu1 %vm6292_vm0, %v6293_v6  ;;  %5815 = vmatpush1.bf16.msra.mxu0 %v5814_v21 }
  0x39   : > { %5816 = vmatprep.subr.bf16.mxu0 %v6291_v3 }
  0x3c   : > { %5818 = vmatpush1.bf16.msra.mxu0 %v5817_v24  ;;  %s7695_s24 = smov %s7694_s27  ;;  %v946_v5 = vld [vmem:[%s7694_s27] sm:$0xff]  ;;  %s7652_s27 = smov 64  }
  0x3d   : > { %5819 = vmatprep.subr.bf16.mxu0 %v6291_v3  ;;  %v947_v10 = vld [vmem:[%s7695_s24 + $0x8] sm:$0xff]  ;;  %v948_v14 = vld [vmem:[%s7695_s24 + $0x10] sm:$0xff] }
  0x40   : > { %5821 = vmatpush1.bf16.msra.mxu0 %v5820_v27 }
  0x41   : > { %5822 = vmatprep.subr.bf16.mxu0 %v6291_v3 }
  0x44   : > { %5824 = vmatpush1.bf16.msra.mxu0 %v5823_v30 }
  0x45   : > { %5825 = vmatprep.subr.bf16.mxu0 %v6291_v3 }
  0x48   : > { %5827 = vmatpush1.bf16.msra.mxu0 %v5826_v33 }
  0x49   : > { %5828 = vmatprep.subr.bf16.mxu0 %v6291_v3 }
  0x4c   : > { %5830 = vmatpush1.bf16.msra.mxu0 %v5829_v36 }
  0x4d   : > { %5831 = vmatprep.subr.bf16.mxu0 %v6291_v3 }
  0x50   : > { %5833 = vmatpush1.bf16.msra.mxu0 %v5832_v39 }
  0x51   : > { %5834 = vmatprep.subr.bf16.mxu0 %v6291_v3 }
  0x54   : > { %5836 = vmatpush1.bf16.msra.mxu0 %v5835_v42 }
  0x55   : > { %5853 = vmatprep.subr.bf16.mxu0 %v6291_v3 }
  0x57   : > { %859 = vmatmul.mubr.f32.vlgmr.msra.gmra.mrb[0].mxu0 %v752_v43  ;;  %v1144_v43 = vlaneseq }
  0x58   : > { %4917 = vmatprep.mubr.msk.f32.mxu0 %vm787_vm1, %v755_v44 }
  0x59   : > { %v6738_v44 = vand.u32 127, %v1144_v43 }
  0x5b   : > { %864 = vmatmul.mubr.f32.gmra.mrb[2].mxu0 %v754_v45  ;;  %vm1146_vm8 = vcmp.lt.s32.totalorder %v6738_v44, 17  ;;  %v7378_v44 = vld [vmem:[%s7609_s11 + $0x1] ss:$0 sm:$0xff] }
  0x5c   : > { %5363 = vmatprep.mubr.msk.f32.mxu0 %vm6292_vm0, %v6293_v6 }
 0x10a   : > { %v942_v46 = vpop.f32.mrb[0].mxu1 }
 0x10b   : > { %v5300_v47 = vpop.f32.mrb[1].mxu1 }
 0x12a   : > { %v860_v48 = vpop.f32.mrb[0].mxu0 }
 0x12b   : > { %v862_v49 = vpop.f32.mrb[1].mxu0  ;;  %v861_v52 = vadd.f32 %v4915_v50, %v860_v48 }
 0x12e   : > { %v865_v51 = vpop.f32.mrb[2].mxu0 }
 0x12f   : > { %v866_v53 = vadd.f32 %v4915_v50, %v865_v51  ;;  %v867_v54 = vpop.f32.mrb[3].mxu0 }
 0x131   : > { %v5841_v55 = vpack.c.bf16 %v866_v53, %v861_v52 }
 0x133   : > { %5842 = vmatpush3.bf16.msra.mxu1 %v5841_v55 }
 0x134   : > { %5314 = vmatprep.subr.mxu1 %v6293_v6 }
 0x136   : > { %5306 = vmatmul.mubr.msk.f32.vlgmr.msra.gmra.mrb[2].mxu1 %vm872_vm2, %v949_v56 }
 0x137   : > { %5308 = vmatprep.mubr.msk.f32.mxu1 %vm6292_vm0, %v6293_v6  ;;  %5315 = vmatpush3.msk.msra.mxu1 %vm1057_vm3, %v942_v46 }
 0x138   : > { %5843 = vmatprep.subr.bf16.mxu1 %v6291_v3 }
 0x13a   : > { %5309 = vmatmul.mubr.msk.f32.gmra.mrb[4].mxu1 %vm872_vm2, %v950_v57 }
 0x13b   : > { %5311 = vmatprep.mubr.msk.f32.mxu1 %vm6292_vm0, %v6293_v6 }
 0x13e   : > { %5312 = vmatmul.mubr.msk.f32.gmra.mrb[6].mxu1 %vm872_vm2, %v951_v58 }
 0x13f   : > { %5316 = vmatprep.mubr.msk.f32.mxu1 %vm6292_vm0, %v6293_v6 }
 0x142   : > { %5317 = vmatmul.mubr.msk.f32.vlgmr.msra.gmra.mrb[2].mxu1 %vm1047_vm4, %v1044_v61 }
 0x143   : > { %5319 = vmatprep.mubr.msk.f32.mxu1 %vm6292_vm0, %v6293_v6  ;;  %5845 = vmatpush3.bf16.msra.mxu1 %v5844_v62 }
 0x144   : > { %5846 = vmatprep.subr.bf16.mxu1 %v6291_v3 }
 0x146   : > { %5320 = vmatmul.mubr.msk.f32.gmra.mrb[4].mxu1 %vm1047_vm4, %v1045_v63 }
 0x147   : > { %5322 = vmatprep.mubr.msk.f32.mxu1 %vm6292_vm0, %v6293_v6  ;;  %5848 = vmatpush3.bf16.msra.mxu1 %v5847_v4 }
 0x148   : > { %5849 = vmatprep.subr.bf16.mxu1 %v6291_v3 }
 0x14a   : > { %5323 = vmatmul.mubr.msk.f32.gmra.mrb[6].mxu1 %vm1047_vm4, %v1046_v0 }
 0x14b   : > { %5333 = vmatprep.mubr.msk.f32.mxu1 %vm6292_vm0, %v6293_v6 }
 0x215   : > { %v1127_v7 = vpop.f32.mrb[2].mxu1 }
 0x216   : > { %v6650_v8 = vadd.f32 %v1127_v7, %v946_v5  ;;  %v5318_v9 = vpop.f32.mrb[3].mxu1 }
 0x218   : > { %5334 = vmatmul.mubr.msk.f32.vlgmr.msra.gmra.mrb[8].mxu1 %vm1163_vm5, %v6650_v8 }
 0x219   : > { %v1132_v11 = vpop.f32.mrb[4].mxu1  ;;  %5336 = vmatprep.mubr.msk.f32.mxu1 %vm6292_vm0, %v6293_v6 }
 0x21a   : > { %v6659_v12 = vadd.f32 %v1132_v11, %v947_v10  ;;  %v5321_v13 = vpop.f32.mrb[5].mxu1 }
 0x21c   : > { %5337 = vmatmul.mubr.msk.f32.gmra.mrb[10].mxu1 %vm1163_vm5, %v6659_v12 }
 0x21d   : > { %v1137_v15 = vpop.f32.mrb[6].mxu1  ;;  %5339 = vmatprep.mubr.msk.f32.mxu1 %vm6292_vm0, %v6293_v6 }
 0x21e   : > { %v6668_v16 = vadd.f32 %v1137_v15, %v948_v14  ;;  %v5324_v17 = vpop.f32.mrb[7].mxu1 }
 0x220   : > { %5340 = vmatmul.mubr.msk.f32.gmra.mrb[12].mxu1 %vm1163_vm5, %v6668_v16 }
 0x221   : > { %5348 = vmatprep.mubr.msk.f32.mxu1 %vm6292_vm0, %v6293_v6 }
 0x2eb   : > { %v1239_v18 = vpop.f32.mrb[8].mxu1 }
 0x2ec   : > { %v5335_v19 = vpop.f32.mrb[9].mxu1  ;;  %v6677_v22 = vadd.f32 %v4926_v20, %v1239_v18 }
 0x2ef   : > { %v1244_v21 = vpop.f32.mrb[10].mxu1 }
 0x2f0   : > { %v6679_v23 = vadd.f32 %v4926_v20, %v1244_v21  ;;  %v5338_v24 = vpop.f32.mrb[11].mxu1 }
 0x2f2   : > { %v6683_v25 = vpack.i.bf16 %v6679_v23, %v6677_v22 }
 0x2f3   : > { %v1249_v26 = vpop.f32.mrb[12].mxu1 }
 0x2f4   : > { %6037 = vrot.lane.b32.xlu1 %v6683_v25, %s7656_s28  ;;  %6032 = vrot.lane.b32.xlu0 %v6683_v25, %s7658_s3  ;;  %v5341_v27 = vpop.f32.mrb[13].mxu1  ;;  %v6689_v28 = vadd.f32 %v4926_v20, %v1249_v26 }
 0x2f8   : > { %1503 = vrot.lane.b32.xlu1 %v6689_v28, %s7656_s28  ;;  %1260 = vrot.lane.b32.xlu0 %v6689_v28, %s7658_s3  ;;  %s7702_s28 = smov 56   ;;  %s7703_s3 = smov 80  }
 0x2fc   : > { %1495 = vrot.lane.b32.xlu1 %v6679_v23, %s7654_s0  ;;  %1493 = vrot.lane.b32.xlu0 %v6677_v22, %s7654_s0 }
 0x300   : > { %1497 = vrot.lane.b32.xlu0 %v6689_v28, %s7654_s0  ;;  %s5086_s0 = sshll.u32 %s6452_s6, 4  ;;  %s6305_s6 = smov [#allocation2]  }
 0x301   : > { %s7556_s7 = scalar_lea.hbm %s7712_s1, %s5086_s0 }
 0x366   : > { %v6033_v29 = vpop.permute.xlu0 %6032  ;;  %v6038_v34 = vpop.permute.xlu1 %6037 }
 0x367   : > { %v6035_v30 = vunpack.i.h.bf16 %v6033_v29  ;;  %v6034_v31 = vunpack.i.l.bf16 %v6033_v29  ;;  %v6040_v35 = vunpack.i.h.bf16 %v6038_v34  ;;  %v6039_v36 = vunpack.i.l.bf16 %v6038_v34 }
 0x369   : > { %v5850_v33 = vpack.c.bf16 %v6035_v30, %v6034_v31  ;;  %v5857_v38 = vpack.c.bf16 %v6040_v35, %v6039_v36 }
 0x36a   : > { %v1261_v37 = vpop.permute.xlu0 %1260  ;;  %v1504_v39 = vpop.permute.xlu1 %1503 }
 0x36b   : > { %5852 = vmatpush3.bf16.xpose.msk.msra.mxu1 %vm6703_vm7, %v5850_v33 }
 0x36c   : > { %5346 = vmatprep.subr.mxu1 %v6293_v6 }
 0x36e   : > { %v1494_v40 = vpop.permute.xlu0 %1493  ;;  %v1496_v41 = vpop.permute.xlu1 %1495 }
 0x372   : > { %v1498_v42 = vpop.permute.xlu0 %1497 }
 0x373   : > { %5347 = vmatpush3.xpose.msk.msra.mxu1 %vm1262_vm6, %v1261_v37 }
 0x374   : > { %5856 = vmatprep.subr.bf16.mxu1 %v6291_v3 }
 0x376   : > { %5349 = vmatmul.mubr.msk.f32.vlgmr.msra.gmra.mrb[14].mxu1 %vm1262_vm6, %v6677_v22 }
 0x377   : > { %5859 = vmatpush3.bf16.xpose.msk.msra.mxu1 %vm6703_vm7, %v5857_v38  ;;  %5351 = vmatprep.mubr.msk.f32.mxu1 %vm6292_vm0, %v6293_v6 }
 0x378   : > { %5376 = vmatprep.subr.mxu1 %v6293_v6 }
 0x37a   : > { %5352 = vmatmul.mubr.msk.f32.gmra.mrb[16].mxu1 %vm1262_vm6, %v6679_v23 }
 0x37b   : > { %5354 = vmatprep.mubr.msk.f32.mxu1 %vm6292_vm0, %v6293_v6 }
 0x37e   : > { %5355 = vmatmul.mubr.msk.f32.gmra.mrb[18].mxu1 %vm1262_vm6, %v6689_v28 }
 0x37f   : > { %5377 = vmatpush3.xpose.msk.msra.mxu1 %vm1262_vm6, %v1504_v39  ;;  %5378 = vmatprep.mubr.msk.f32.mxu1 %vm6292_vm0, %v6293_v6 }
 0x380   : > { %5965 = vmatprep.subr.bf16.mxu1 %v6291_v3 }
 0x382   : > { %5379 = vmatmul.mubr.msk.f32.vlgmr.msra.gmra.mrb[20].mxu1 %vm1262_vm6, %v1494_v40 }
 0x383   : > { %5381 = vmatprep.mubr.msk.f32.mxu1 %vm6292_vm0, %v6293_v6 }
 0x386   : > { %5382 = vmatmul.mubr.msk.f32.gmra.mrb[22].mxu1 %vm1262_vm6, %v1496_v41 }
 0x387   : > { %5384 = vmatprep.mubr.msk.f32.mxu1 %vm6292_vm0, %v6293_v6 }
 0x38a   : > { %5385 = vmatmul.mubr.msk.f32.gmra.mrb[24].mxu1 %vm1262_vm6, %v1498_v42 }
 0x38b   : > { %5396 = vmatprep.mubr.msk.f32.mxu1 %vm6292_vm0, %v6293_v6 }
 0x449   : > { %v1341_v45 = vpop.f32.mrb[14].mxu1 }
 0x44a   : > { %v1355_v46 = vmul.f32 0.35355338, %v1341_v45  ;;  %v5350_v47 = vpop.f32.mrb[15].mxu1 }
 0x44c   : > { %v1358_v48 = vsel %vm1146_vm8, %v1355_v46, -1e+30 }
 0x44d   : > { %v1346_v49 = vpop.f32.mrb[16].mxu1  ;;  %v1362_v50 = vsel %vm1361_vm9, %v1358_v48, -inf }
 0x44e   : > { %v1356_v51 = vmul.f32 0.35355338, %v1346_v49  ;;  %1363 = vmax.xlane.f32.xlu1 %v1362_v50  ;;  %v5353_v52 = vpop.f32.mrb[17].mxu1 }
 0x450   : > { %v1359_v53 = vsel %vm1146_vm8, %v1356_v51, -1e+30 }
 0x451   : > { %v1351_v54 = vpop.f32.mrb[18].mxu1  ;;  %v1365_v55 = vsel %vm1361_vm9, %v1359_v53, -inf }
 0x452   : > { %v1357_v56 = vmul.f32 0.35355338, %v1351_v54  ;;  %1366 = vmax.xlane.f32.xlu0 %v1365_v55  ;;  %v5356_v57 = vpop.f32.mrb[19].mxu1 }
 0x454   : > { %v1360_v58 = vsel %vm1146_vm8, %v1357_v56, -1e+30 }
 0x455   : > { %v1583_v59 = vpop.f32.mrb[20].mxu1  ;;  %v1368_v60 = vsel %vm1361_vm9, %v1360_v58, -inf }
 0x456   : > { %v1597_v61 = vmul.f32 0.35355338, %v1583_v59  ;;  %1369 = vmax.xlane.f32.xlu0 %v1368_v60  ;;  %v5380_v62 = vpop.f32.mrb[21].mxu1 }
 0x458   : > { %v1600_v63 = vsel %vm1146_vm8, %v1597_v61, -1e+30 }
 0x459   : > { %v1588_v0 = vpop.f32.mrb[22].mxu1  ;;  %v1603_v1 = vsel %vm1361_vm9, %v1600_v63, -inf }
 0x45a   : > { %v1598_v2 = vmul.f32 0.35355338, %v1588_v0  ;;  %1604 = vmax.xlane.f32.xlu1 %v1603_v1  ;;  %v5383_v4 = vpop.f32.mrb[23].mxu1 }
 0x45c   : > { %v1601_v5 = vsel %vm1146_vm8, %v1598_v2, -1e+30 }
 0x45d   : > { %v1593_v7 = vpop.f32.mrb[24].mxu1  ;;  %v1606_v9 = vsel %vm1361_vm9, %v1601_v5, -inf }
 0x45e   : > { %v1599_v10 = vmul.f32 0.35355338, %v1593_v7  ;;  %1607 = vmax.xlane.f32.xlu0 %v1606_v9  ;;  %v5386_v11 = vpop.f32.mrb[25].mxu1 }
 0x460   : > { %v1602_v13 = vsel %vm1146_vm8, %v1599_v10, -1e+30 }
 0x461   : > { %v1609_v14 = vsel %vm1361_vm9, %v1602_v13, -inf }
 0x462   : > { %1610 = vmax.xlane.f32.xlu1 %v1609_v14 }
 0x473   : > { %6042 = vrot.lane.b32.xlu1 %v6683_v25, %s7652_s27 }
 0x4db   : > { %v1364_v15 = vpop.xlane.xlu1 %1363 }
 0x4dc   : > { %v1371_v17 = vsub.f32 %v1358_v48, %v1364_v15 }
 0x4de   : > { %v1374_v18 = vmul.f32 1.442695, %v1371_v17 }
 0x4df   : > { %v1367_v19 = vpop.xlane.xlu0 %1366 }
 0x4e0   : > { %6111 = vpow2.f32 %v1374_v18  ;;  %v1372_v20 = vsub.f32 %v1359_v53, %v1367_v19 }
 0x4e2   : > { %v1376_v21 = vmul.f32 1.442695, %v1372_v20 }
 0x4e3   : > { %v1370_v24 = vpop.xlane.xlu0 %1369 }
 0x4e4   : > { %6113 = vpow2.f32 %v1376_v21  ;;  %v1373_v26 = vsub.f32 %v1360_v58, %v1370_v24  ;;  %v1152_v21 = vld [vmem:[%s7608_s10] sm:$0xff]  ;;  %v1153_v24 = vld [vmem:[%s7608_s10 + $0x8] sm:$0xff] }
 0x4e6   : > { %v1378_v27 = vmul.f32 1.442695, %v1373_v26 }
 0x4e7   : > { %v1605_v29 = vpop.xlane.xlu1 %1604 }
 0x4e8   : > { %6115 = vpow2.f32 %v1378_v27  ;;  %v1612_v30 = vsub.f32 %v1600_v63, %v1605_v29 }
 0x4ea   : > { %v6761_v31 = vpop.eup %6111  ;;  %v1615_v33 = vmul.f32 1.442695, %v1612_v30 }
 0x4eb   : > { %v1608_v34 = vpop.xlane.xlu0 %1607  ;;  %v1380_v35 = vsel %vm1361_vm9, %v6761_v31, 0.0 }
 0x4ec   : > { %6117 = vpow2.f32 %v1615_v33  ;;  %v1613_v36 = vsub.f32 %v1601_v5, %v1608_v34  ;;  %1381 = vadd.xlane.f32.xlu0 %v1380_v35 }
 0x4ee   : > { %v6765_v37 = vpop.eup %6113  ;;  %v1617_v38 = vmul.f32 1.442695, %v1613_v36 }
 0x4ef   : > { %v1611_v39 = vpop.xlane.xlu1 %1610  ;;  %v1383_v40 = vsel %vm1361_vm9, %v6765_v37, 0.0 }
 0x4f0   : > { %6119 = vpow2.f32 %v1617_v38  ;;  %v1614_v41 = vsub.f32 %v1602_v13, %v1611_v39  ;;  %1384 = vadd.xlane.f32.xlu1 %v1383_v40 }
 0x4f2   : > { %v6769_v42 = vpop.eup %6115  ;;  %v1619_v43 = vmul.f32 1.442695, %v1614_v41 }
 0x4f3   : > { %v6043_v45 = vpop.permute.xlu1 %6042  ;;  %v1386_v46 = vsel %vm1361_vm9, %v6769_v42, 0.0 }
 0x4f4   : > { %6121 = vpow2.f32 %v1619_v43  ;;  %v6045_v47 = vunpack.i.h.bf16 %v6043_v45  ;;  %v6044_v48 = vunpack.i.l.bf16 %v6043_v45  ;;  %1387 = vadd.xlane.f32.xlu0 %v1386_v46 }
 0x4f6   : > { %v6773_v49 = vpop.eup %6117  ;;  %v5854_v50 = vpack.c.bf16 %v6045_v47, %v6044_v48 }
 0x4f7   : > { %v1621_v51 = vsel %vm1361_vm9, %v6773_v49, 0.0 }
 0x4f8   : > { %1622 = vadd.xlane.f32.xlu1 %v1621_v51  ;;  %5855 = vmatpush3.bf16.msra.mxu0 %v5854_v50 }
 0x4f9   : > { %5361 = vmatprep.subr.mxu0 %v6293_v6 }
 0x4fa   : > { %v6120_v52 = vpop.eup %6119 }
 0x4fb   : > { %v1624_v53 = vsel %vm1361_vm9, %v6120_v52, 0.0 }
 0x4fc   : > { %1625 = vadd.xlane.f32.xlu0 %v1624_v53 }
 0x4fe   : > { %v6122_v54 = vpop.eup %6121 }
 0x4ff   : > { %v1627_v55 = vsel %vm1361_vm9, %v6122_v54, 0.0 }
 0x500   : > { %1628 = vadd.xlane.f32.xlu0 %v1627_v55 }
 0x509   : > { %6047 = vrot.lane.b32.xlu1 %v6683_v25, %s7650_s5 }
 0x50d   : > { %1640 = vrot.lane.b32.xlu1 %v6689_v28, %s7650_s5  ;;  %s7711_s5 = sld [smem:[#allocation22_spill]] }
 0x511   : > { %6052 = vrot.lane.b32.xlu1 %v6683_v25, %s7648_s30 }
 0x515   : > { %1912 = vrot.lane.b32.xlu1 %v6677_v22, %s7638_s4 }
 0x516   : > { %1399 = vrot.lane.b32.xlu0 %v6689_v28, %s7652_s27  ;;  %s7698_s27 = smov 96  }
 0x519   : > { %1916 = vrot.lane.b32.xlu1 %v6689_v28, %s7638_s4 }
 0x51a   : > { %1922 = vrot.lane.b32.xlu0 %v6689_v28, %s7648_s30  ;;  %s7699_s30 = smov 88  }
 0x51e   : > { %1914 = vrot.lane.b32.xlu0 %v6679_v23, %s7638_s4  ;;  %s7646_s4 = smov 48  }
 0x579   : > { %v1382_v56 = vpop.xlane.xlu0 %1381 }
 0x57a   : > { %6123 = vrcp.f32 %v1382_v56 }
 0x57d   : > { %v1385_v57 = vpop.xlane.xlu1 %1384 }
 0x57e   : > { %6125 = vrcp.f32 %v1385_v57 }
 0x581   : > { %v1388_v58 = vpop.xlane.xlu0 %1387 }
 0x584   : > { %v6124_v2 = vpop.eup %6123 }
 0x585   : > { %v1623_v59 = vpop.xlane.xlu1 %1622  ;;  %v1392_v4 = vmul.f32 %v6124_v2, %v6761_v31 }
 0x588   : > { %v6126_v9 = vpop.eup %6125 }
 0x589   : > { %v1626_v60 = vpop.xlane.xlu0 %1625  ;;  %v6048_v61 = vpop.permute.xlu1 %6047  ;;  %v1393_v13 = vmul.f32 %v6126_v9, %v6765_v37 }
 0x58a   : > { %6127 = vrcp.f32 %v1626_v60  ;;  %v6050_v62 = vunpack.i.h.bf16 %v6048_v61  ;;  %v6049_v63 = vunpack.i.l.bf16 %v6048_v61 }
 0x58b   : > { %6129 = vrcp.f32 %v1388_v58 }
 0x58c   : > { %v5861_v0 = vpack.c.bf16 %v6050_v62, %v6049_v63 }
 0x58d   : > { %v1629_v1 = vpop.xlane.xlu0 %1628  ;;  %v1641_v5 = vpop.permute.xlu1 %1640 }
 0x58e   : > { %6131 = vrcp.f32 %v1629_v1  ;;  %5967 = vmatpush3.bf16.msra.mxu1 %v5861_v0 }
 0x58f   : > { %5966 = vmatprep.subr.mxu1 %v6293_v6  ;;  %6133 = vrcp.f32 %v1623_v59 }
 0x591   : > { %v1400_v7 = vpop.permute.xlu0 %1399  ;;  %v6053_v29 = vpop.permute.xlu1 %6052 }
 0x592   : > { %5362 = vmatpush3.msra.mxu0 %v1400_v7  ;;  %5968 = vmatpush3.msra.mxu1 %v1641_v5  ;;  %v6055_v35 = vunpack.i.h.bf16 %v6053_v29  ;;  %v6054_v36 = vunpack.i.l.bf16 %v6053_v29 }
 0x593   : > { %5364 = vmatmul.mubr.msk.f32.vlgmr.msra.gmra.mrb[4].mxu0 %vm1361_vm9, %v1392_v4  ;;  %5860 = vmatprep.subr.bf16.mxu0 %v6291_v3 }
 0x594   : > { %v6128_v10 = vpop.eup %6127  ;;  %5862 = vmatpush3.bf16.msra.mxu0 %v5861_v0  ;;  %5366 = vmatprep.mubr.msk.f32.mxu0 %vm6292_vm0, %v6293_v6  ;;  %v5864_v41 = vpack.c.bf16 %v6055_v35, %v6054_v36 }
 0x595   : > { %v1634_v11 = vmul.f32 %v6128_v10, %v6120_v52  ;;  %5391 = vmatprep.subr.mxu0 %v6293_v6  ;;  %5402 = vmatprep.subr.mxu1 %v6293_v6  ;;  %v6130_v14 = vpop.eup %6129  ;;  %v1923_v45 = vpop.permute.xlu0 %1922 }
 0x596   : > { %v1394_v17 = vmul.f32 %v6130_v14, %v6769_v42  ;;  %v1913_v46 = vpop.permute.xlu1 %1912 }
 0x597   : > { %5367 = vmatmul.mubr.msk.f32.gmra.mrb[6].mxu0 %vm1361_vm9, %v1393_v13  ;;  %5397 = vmatmul.mubr.msk.f32.vlgmr.msra.gmra.mrb[26].mxu1 %vm1361_vm9, %v1634_v11 }
 0x598   : > { %v6132_v15 = vpop.eup %6131  ;;  %5392 = vmatpush3.msra.mxu0 %v1641_v5  ;;  %5369 = vmatprep.mubr.msk.f32.mxu0 %vm6292_vm0, %v6293_v6 }
 0x599   : > { %5399 = vmatprep.mubr.msk.f32.mxu1 %vm6292_vm0, %v6293_v6  ;;  %v1635_v18 = vmul.f32 %v6132_v15, %v6122_v54  ;;  %5413 = vmatprep.subr.mxu0 %v6293_v6  ;;  %v6134_v19 = vpop.eup %6133  ;;  %v1915_v47 = vpop.permute.xlu0 %1914 }
 0x59a   : > { %v1633_v20 = vmul.f32 %v6134_v19, %v6773_v49  ;;  %5403 = vmatpush3.msra.mxu1 %v1153_v24  ;;  %v1917_v48 = vpop.permute.xlu1 %1916 }
 0x59b   : > { %5370 = vmatmul.mubr.msk.f32.gmra.mrb[8].mxu0 %vm1361_vm9, %v1394_v17  ;;  %5400 = vmatmul.mubr.msk.f32.gmra.mrb[28].mxu1 %vm1361_vm9, %v1635_v18 }
 0x59c   : > { %5393 = vmatprep.mubr.msk.f32.mxu0 %vm6292_vm0, %v6293_v6  ;;  %5404 = vmatprep.mubr.msk.f32.mxu1 %vm6292_vm0, %v6293_v6 }
 0x59d   : > { %5863 = vmatprep.subr.bf16.mxu1 %v6291_v3 }
 0x59f   : > { %5394 = vmatmul.mubr.msk.f32.vlgmr.msra.gmra.mrb[10].mxu0 %vm1361_vm9, %v1633_v20 }
 0x5a0   : > { %5415 = vmatprep.mubr.msk.f32.mxu0 %vm6292_vm0, %v6293_v6  ;;  %5414 = vmatpush3.msra.mxu0 %v1152_v21 }
 0x5a1   : > { %5867 = vmatprep.subr.bf16.mxu0 %v6291_v3 }
 0x666   : > { %v1479_v26 = vpop.f32.mrb[4].mxu0 }
 0x667   : > { %v5365_v27 = vpop.f32.mrb[5].mxu0  ;;  %5416 = vmatmul.mubr.msk.f32.vlgmr.msra.gmra.mrb[12].mxu0 %vm1262_vm6, %v1479_v26 }
 0x668   : > { %5418 = vmatprep.mubr.msk.f32.mxu0 %vm6292_vm0, %v6293_v6 }
 0x66a   : > { %v1484_v30 = vpop.f32.mrb[6].mxu0  ;;  %v1725_v31 = vpop.f32.mrb[26].mxu1 }
 0x66b   : > { %v5368_v33 = vpop.f32.mrb[7].mxu0  ;;  %v5398_v34 = vpop.f32.mrb[27].mxu1  ;;  %5419 = vmatmul.mubr.msk.f32.gmra.mrb[14].mxu0 %vm1262_vm6, %v1484_v30 }
 0x66c   : > { %5421 = vmatprep.mubr.msk.f32.mxu0 %vm6292_vm0, %v6293_v6 }
 0x66e   : > { %v1489_v37 = vpop.f32.mrb[8].mxu0  ;;  %v1730_v38 = vpop.f32.mrb[28].mxu1 }
 0x66f   : > { %v5371_v39 = vpop.f32.mrb[9].mxu0  ;;  %v5401_v40 = vpop.f32.mrb[29].mxu1  ;;  %5422 = vmatmul.mubr.msk.f32.gmra.mrb[16].mxu0 %vm1262_vm6, %v1489_v37 }
 0x670   : > { %5445 = vmatprep.mubr.msk.f32.mxu0 %vm6292_vm0, %v6293_v6 }
 0x672   : > { %v1720_v42 = vpop.f32.mrb[10].mxu0 }
 0x673   : > { %v5395_v43 = vpop.f32.mrb[11].mxu0  ;;  %5405 = vmatmul.mubr.msk.f32.vlgmr.msra.gmra.mrb[30].mxu1 %vm1262_vm6, %v1720_v42 }
 0x674   : > { %5866 = vmatpush3.bf16.xpose.msk.msra.mxu1 %vm6703_vm7, %v5864_v41  ;;  %5407 = vmatprep.mubr.msk.f32.mxu1 %vm6292_vm0, %v6293_v6 }
 0x675   : > { %5428 = vmatprep.subr.mxu1 %v6293_v6 }
 0x677   : > { %5408 = vmatmul.mubr.msk.f32.gmra.mrb[32].mxu1 %vm1262_vm6, %v1725_v31 }
 0x678   : > { %5410 = vmatprep.mubr.msk.f32.mxu1 %vm6292_vm0, %v6293_v6 }
 0x67b   : > { %5411 = vmatmul.mubr.msk.f32.gmra.mrb[34].mxu1 %vm1262_vm6, %v1730_v38 }
 0x67c   : > { %5429 = vmatpush3.xpose.msk.msra.mxu1 %vm1262_vm6, %v1923_v45  ;;  %5430 = vmatprep.mubr.msk.f32.mxu1 %vm6292_vm0, %v6293_v6 }
 0x67d   : > { %5454 = vmatprep.subr.mxu1 %v6293_v6 }
 0x67f   : > { %5431 = vmatmul.mubr.msk.f32.vlgmr.msra.gmra.mrb[36].mxu1 %vm1262_vm6, %v1913_v46 }
 0x680   : > { %5433 = vmatprep.mubr.msk.f32.mxu1 %vm6292_vm0, %v6293_v6 }
 0x683   : > { %5434 = vmatmul.mubr.msk.f32.gmra.mrb[38].mxu1 %vm1262_vm6, %v1915_v47 }
 0x684   : > { %5436 = vmatprep.mubr.msk.f32.mxu1 %vm6292_vm0, %v6293_v6 }
 0x687   : > { %5437 = vmatmul.mubr.msk.f32.gmra.mrb[40].mxu1 %vm1262_vm6, %v1917_v48 }
 0x688   : > { %5456 = vmatprep.mubr.msk.f32.mxu1 %vm6292_vm0, %v6293_v6 }
 0x73a   : > { %v1898_v49 = vpop.f32.mrb[12].mxu0 }
 0x73b   : > { %v5417_v50 = vpop.f32.mrb[13].mxu0 }
 0x73e   : > { %v1903_v51 = vpop.f32.mrb[14].mxu0 }
 0x73f   : > { %v5420_v52 = vpop.f32.mrb[15].mxu0 }
 0x742   : > { %v1908_v53 = vpop.f32.mrb[16].mxu0 }
 0x743   : > { %v5423_v54 = vpop.f32.mrb[17].mxu0 }
 0x746   : > { %v1809_v55 = vpop.f32.mrb[30].mxu1 }
 0x747   : > { %v6863_v56 = vadd.f32 %v1898_v49, %v1809_v55  ;;  %v5406_v57 = vpop.f32.mrb[31].mxu1 }
 0x74a   : > { %v1814_v58 = vpop.f32.mrb[32].mxu1 }
 0x74b   : > { %v6865_v59 = vadd.f32 %v1903_v51, %v1814_v58  ;;  %v5409_v60 = vpop.f32.mrb[33].mxu1 }
 0x74e   : > { %v1819_v61 = vpop.f32.mrb[34].mxu1 }
 0x74f   : > { %v6867_v62 = vadd.f32 %v1908_v53, %v1819_v61  ;;  %v5412_v63 = vpop.f32.mrb[35].mxu1 }
 0x752   : > { %v2002_v0 = vpop.f32.mrb[36].mxu1 }
 0x753   : > { %v2016_v1 = vmul.f32 0.35355338, %v2002_v0  ;;  %v5432_v2 = vpop.f32.mrb[37].mxu1  ;;  %v1154_v0 = vld [vmem:[%s7608_s10 + $0x10] sm:$0xff] }
 0x754   : > { %5455 = vmatpush3.msra.mxu1 %v1154_v0 }
 0x755   : > { %v2019_v4 = vsel %vm1146_vm8, %v2016_v1, -1e+30  ;;  %5874 = vmatprep.subr.bf16.mxu1 %v6291_v3 }
 0x756   : > { %v2007_v5 = vpop.f32.mrb[38].mxu1  ;;  %v2022_v7 = vsel %vm1361_vm9, %v2019_v4, -inf }
 0x757   : > { %v2017_v9 = vmul.f32 0.35355338, %v2007_v5  ;;  %2023 = vmax.xlane.f32.xlu0 %v2022_v7  ;;  %v5435_v10 = vpop.f32.mrb[39].mxu1 }
 0x759   : > { %v2020_v11 = vsel %vm1146_vm8, %v2017_v9, -1e+30 }
 0x75a   : > { %v2012_v13 = vpop.f32.mrb[40].mxu1  ;;  %v2025_v14 = vsel %vm1361_vm9, %v2020_v11, -inf }
 0x75b   : > { %v2018_v15 = vmul.f32 0.35355338, %v2012_v13  ;;  %2026 = vmax.xlane.f32.xlu1 %v2025_v14  ;;  %v5438_v17 = vpop.f32.mrb[41].mxu1 }
 0x75d   : > { %v2021_v18 = vsel %vm1146_vm8, %v2018_v15, -1e+30 }
 0x75e   : > { %v2028_v19 = vsel %vm1361_vm9, %v2021_v18, -inf }
 0x75f   : > { %2029 = vmax.xlane.f32.xlu0 %v2028_v19 }
 0x76c   : > { %6057 = vrot.lane.b32.xlu1 %v6683_v25, %s7646_s4 }
 0x770   : > { %6062 = vrot.lane.b32.xlu1 %v6683_v25, %s7642_s2 }
 0x7e4   : > { %v2024_v20 = vpop.xlane.xlu0 %2023 }
 0x7e5   : > { %v2031_v21 = vsub.f32 %v2019_v4, %v2024_v20 }
 0x7e7   : > { %v2034_v24 = vmul.f32 1.442695, %v2031_v21 }
 0x7e8   : > { %v2027_v26 = vpop.xlane.xlu1 %2026 }
 0x7e9   : > { %6135 = vpow2.f32 %v2034_v24  ;;  %v2032_v27 = vsub.f32 %v2020_v11, %v2027_v26 }
 0x7eb   : > { %v2036_v29 = vmul.f32 1.442695, %v2032_v27 }
 0x7ec   : > { %v6058_v30 = vpop.permute.xlu1 %6057  ;;  %v2030_v39 = vpop.xlane.xlu0 %2029 }
 0x7ed   : > { %6137 = vpow2.f32 %v2036_v29  ;;  %v6060_v31 = vunpack.i.h.bf16 %v6058_v30  ;;  %v6059_v33 = vunpack.i.l.bf16 %v6058_v30  ;;  %v2033_v40 = vsub.f32 %v2021_v18, %v2030_v39 }
 0x7ef   : > { %v5868_v34 = vpack.c.bf16 %v6060_v31, %v6059_v33  ;;  %v2038_v41 = vmul.f32 1.442695, %v2033_v40 }
 0x7f0   : > { %v6063_v45 = vpop.permute.xlu1 %6062 }
 0x7f1   : > { %5869 = vmatpush3.bf16.msra.mxu0 %v5868_v34  ;;  %6139 = vpow2.f32 %v2038_v41  ;;  %v6064_v49 = vunpack.i.l.bf16 %v6063_v45 }
 0x7f2   : > { %5443 = vmatprep.subr.mxu0 %v6293_v6 }
 0x7f3   : > { %v6136_v35 = vpop.eup %6135 }
 0x7f4   : > { %v2040_v36 = vsel %vm1361_vm9, %v6136_v35, 0.0 }
 0x7f5   : > { %2041 = vadd.xlane.f32.xlu0 %v2040_v36 }
 0x7f7   : > { %v6138_v37 = vpop.eup %6137 }
 0x7f8   : > { %v2043_v38 = vsel %vm1361_vm9, %v6138_v37, 0.0 }
 0x7f9   : > { %2044 = vadd.xlane.f32.xlu1 %v2043_v38 }
 0x7fb   : > { %v6140_v42 = vpop.eup %6139 }
 0x7fc   : > { %v2046_v43 = vsel %vm1361_vm9, %v6140_v42, 0.0 }
 0x80a   : > { %2255 = vrot.lane.b32.xlu1 %v6689_v28, %s7642_s2  ;;  %s7700_s2 = smov 120  }
 0x80b   : > { %2059 = vrot.lane.b32.xlu0 %v6689_v28, %s7646_s4  ;;  %s7704_s4 = smov 112  }
 0x80e   : > { %2247 = vrot.lane.b32.xlu1 %v6679_v23, %s7640_s25  ;;  %v6065_v23 = vunpack.i.h.bf16 %v6063_v45 }
 0x810   : > { %v5871_v52 = vpack.c.bf16 %v6065_v23, %v6064_v49 }
 0x82a   : > { %2047 = vadd.xlane.f32.xlu0 %v2046_v43 }
 0x840   : > { %2245 = vrot.lane.b32.xlu0 %v6677_v22, %s7640_s25 }
 0x844   : > { %2249 = vrot.lane.b32.xlu0 %v6689_v28, %s7640_s25  ;;  %s7644_s25 = smov 40  }
 0x882   : > { %v2042_v46 = vpop.xlane.xlu0 %2041 }
 0x883   : > { %6141 = vrcp.f32 %v2042_v46 }
 0x886   : > { %v2045_v47 = vpop.xlane.xlu1 %2044  ;;  %v2060_v48 = vpop.permute.xlu0 %2059 }
 0x887   : > { %6143 = vrcp.f32 %v2045_v47  ;;  %5444 = vmatpush3.msra.mxu0 %v2060_v48 }
 0x888   : > { %5870 = vmatprep.subr.bf16.mxu0 %v6291_v3 }
 0x88a   : > { %v2256_v54 = vpop.permute.xlu1 %2255 }
 0x88d   : > { %v6142_v50 = vpop.eup %6141 }
 0x88e   : > { %v2052_v51 = vmul.f32 %v6142_v50, %v6136_v35  ;;  %v2248_v61 = vpop.permute.xlu1 %2247 }
 0x890   : > { %5446 = vmatmul.mubr.msk.f32.vlgmr.msra.gmra.mrb[18].mxu0 %vm1361_vm9, %v2052_v51 }
 0x891   : > { %v6144_v22 = vpop.eup %6143  ;;  %5873 = vmatpush3.bf16.xpose.msk.msra.mxu0 %vm6703_vm7, %v5871_v52  ;;  %5448 = vmatprep.mubr.msk.f32.mxu0 %vm6292_vm0, %v6293_v6 }
 0x892   : > { %v2053_v53 = vmul.f32 %v6144_v22, %v6138_v37  ;;  %5469 = vmatprep.subr.mxu0 %v6293_v6 }
 0x894   : > { %5449 = vmatmul.mubr.msk.f32.gmra.mrb[20].mxu0 %vm1361_vm9, %v2053_v53 }
 0x895   : > { %5451 = vmatprep.mubr.msk.f32.mxu0 %vm6292_vm0, %v6293_v6 }
 0x899   : > { %5470 = vmatpush3.xpose.msk.msra.mxu0 %vm1262_vm6, %v2256_v54 }
 0x89a   : > { %5495 = vmatprep.subr.mxu0 %v6293_v6 }
 0x8b7   : > { %v2048_v55 = vpop.xlane.xlu0 %2047 }
 0x8b8   : > { %6145 = vrcp.f32 %v2048_v55 }
 0x8bb   : > { %v2246_v60 = vpop.permute.xlu0 %2245 }
 0x8bf   : > { %v2250_v63 = vpop.permute.xlu0 %2249 }
 0x8c2   : > { %v6146_v57 = vpop.eup %6145 }
 0x8c3   : > { %v2054_v58 = vmul.f32 %v6146_v57, %v6140_v42 }
 0x8c5   : > { %5452 = vmatmul.mubr.msk.f32.gmra.mrb[22].mxu0 %vm1361_vm9, %v2054_v58 }
 0x8c6   : > { %5471 = vmatprep.mubr.msk.f32.mxu0 %vm6292_vm0, %v6293_v6 }
 0x8c9   : > { %5472 = vmatmul.mubr.msk.f32.vlgmr.msra.gmra.mrb[24].mxu0 %vm1262_vm6, %v2246_v60 }
 0x8ca   : > { %5474 = vmatprep.mubr.msk.f32.mxu0 %vm6292_vm0, %v6293_v6 }
 0x8cd   : > { %5475 = vmatmul.mubr.msk.f32.gmra.mrb[26].mxu0 %vm1262_vm6, %v2248_v61 }
 0x8ce   : > { %5477 = vmatprep.mubr.msk.f32.mxu0 %vm6292_vm0, %v6293_v6 }
 0x8d1   : > { %5478 = vmatmul.mubr.msk.f32.gmra.mrb[28].mxu0 %vm1262_vm6, %v2250_v63 }
 0x8d2   : > { %5497 = vmatprep.mubr.msk.f32.mxu0 %vm6292_vm0, %v6293_v6 }
 0x963   : > { %v2139_v1 = vpop.f32.mrb[18].mxu0 }
 0x964   : > { %v5447_v2 = vpop.f32.mrb[19].mxu0  ;;  %5457 = vmatmul.mubr.msk.f32.vlgmr.msra.gmra.mrb[42].mxu1 %vm1262_vm6, %v2139_v1 }
 0x965   : > { %5459 = vmatprep.mubr.msk.f32.mxu1 %vm6292_vm0, %v6293_v6 }
 0x967   : > { %v2144_v4 = vpop.f32.mrb[20].mxu0 }
 0x968   : > { %v5450_v5 = vpop.f32.mrb[21].mxu0  ;;  %5460 = vmatmul.mubr.msk.f32.gmra.mrb[44].mxu1 %vm1262_vm6, %v2144_v4 }
 0x969   : > { %5462 = vmatprep.mubr.msk.f32.mxu1 %vm6292_vm0, %v6293_v6 }
 0x998   : > { %v2149_v7 = vpop.f32.mrb[22].mxu0 }
 0x999   : > { %v5453_v9 = vpop.f32.mrb[23].mxu0  ;;  %5463 = vmatmul.mubr.msk.f32.gmra.mrb[46].mxu1 %vm1262_vm6, %v2149_v7 }
 0x99a   : > { %5486 = vmatprep.mubr.msk.f32.mxu1 %vm6292_vm0, %v6293_v6 }
 0x99c   : > { %v2335_v10 = vpop.f32.mrb[24].mxu0 }
 0x99d   : > { %v2349_v11 = vmul.f32 0.35355338, %v2335_v10  ;;  %v5473_v13 = vpop.f32.mrb[25].mxu0 }
 0x99f   : > { %v2352_v14 = vsel %vm1146_vm8, %v2349_v11, -1e+30 }
 0x9a0   : > { %v2340_v15 = vpop.f32.mrb[26].mxu0  ;;  %v2355_v17 = vsel %vm1361_vm9, %v2352_v14, -inf }
 0x9a1   : > { %v2350_v18 = vmul.f32 0.35355338, %v2340_v15  ;;  %2356 = vmax.xlane.f32.xlu1 %v2355_v17  ;;  %v5476_v19 = vpop.f32.mrb[27].mxu0 }
 0x9a3   : > { %v2353_v20 = vsel %vm1146_vm8, %v2350_v18, -1e+30 }
 0x9a4   : > { %v2345_v21 = vpop.f32.mrb[28].mxu0  ;;  %v2358_v24 = vsel %vm1361_vm9, %v2353_v20, -inf }
 0x9a5   : > { %v2351_v26 = vmul.f32 0.35355338, %v2345_v21  ;;  %2359 = vmax.xlane.f32.xlu0 %v2358_v24  ;;  %v5479_v27 = vpop.f32.mrb[29].mxu0 }
 0x9a7   : > { %v2354_v29 = vsel %vm1146_vm8, %v2351_v26, -1e+30 }
 0x9a8   : > { %v2361_v30 = vsel %vm1361_vm9, %v2354_v29, -inf }
 0x9a9   : > { %2362 = vmax.xlane.f32.xlu0 %v2361_v30 }
 0xa2e   : > { %v2357_v31 = vpop.xlane.xlu1 %2356 }
 0xa2f   : > { %v2364_v33 = vsub.f32 %v2352_v14, %v2357_v31  ;;  %v4978_v14 = vld [vmem:[%s7609_s11] ss:$0 sm:$0xff] }
 0xa31   : > { %v2367_v34 = vmul.f32 1.442695, %v2364_v33 }
 0xa32   : > { %v2360_v35 = vpop.xlane.xlu0 %2359 }
 0xa33   : > { %6147 = vpow2.f32 %v2367_v34  ;;  %v2365_v36 = vsub.f32 %v2353_v20, %v2360_v35 }
 0xa35   : > { %v2369_v37 = vmul.f32 1.442695, %v2365_v36 }
 0xa36   : > { %v2363_v38 = vpop.xlane.xlu0 %2362 }
 0xa37   : > { %6149 = vpow2.f32 %v2369_v37  ;;  %v2366_v39 = vsub.f32 %v2354_v29, %v2363_v38  ;;  %v2228_v40 = vpop.f32.mrb[42].mxu1 }
 0xa38   : > { %v6943_v41 = vadd.f32 %v2228_v40, %v6863_v56  ;;  %v5458_v42 = vpop.f32.mrb[43].mxu1 }
 0xa39   : > { %v2371_v43 = vmul.f32 1.442695, %v2366_v39 }
 0xa3b   : > { %6151 = vpow2.f32 %v2371_v43  ;;  %v2233_v45 = vpop.f32.mrb[44].mxu1 }
 0xa3c   : > { %v6946_v46 = vadd.f32 %v2233_v45, %v6865_v59  ;;  %v5461_v47 = vpop.f32.mrb[45].mxu1  ;;  %v1155_v59 = vld [vmem:[%s7608_s10 + $0x18] sm:$0xff] }
 0xa3d   : > { %v6148_v48 = vpop.eup %6147  ;;  %5496 = vmatpush3.msra.mxu0 %v1155_v59 }
 0xa3e   : > { %v2373_v23 = vsel %vm1361_vm9, %v6148_v48, 0.0  ;;  %5883 = vmatprep.subr.bf16.mxu0 %v6291_v3 }
 0xa3f   : > { %2374 = vadd.xlane.f32.xlu1 %v2373_v23 }
 0xa41   : > { %v6150_v49 = vpop.eup %6149 }
 0xa42   : > { %v2376_v50 = vsel %vm1361_vm9, %v6150_v49, 0.0 }
 0xa43   : > { %2377 = vadd.xlane.f32.xlu0 %v2376_v50 }
 0xa45   : > { %v6152_v51 = vpop.eup %6151 }
 0xa46   : > { %v2379_v56 = vsel %vm1361_vm9, %v6152_v51, 0.0 }
 0xa47   : > { %2380 = vadd.xlane.f32.xlu1 %v2379_v56  ;;  %v2651_v56 = vld [vmem:[%s7612_s14 + $0x8] sm:$0xff] }
 0xa58   : > { %2392 = vrot.lane.b32.xlu1 %v6689_v28, %s7644_s25 }
 0xa59   : > { %6067 = vrot.lane.b32.xlu0 %v6683_v25, %s7644_s25 }
 0xa6c   : > { %v2238_v52 = vpop.f32.mrb[46].mxu1 }
 0xa6d   : > { %v2244_v22 = vadd.f32 %v2238_v52, %v6867_v62  ;;  %v5464_v53 = vpop.f32.mrb[47].mxu1  ;;  %v2652_v52 = vld [vmem:[%s7612_s14 + $0x10] sm:$0xff] }
 0xacc   : > { %v2375_v54 = vpop.xlane.xlu1 %2374 }
 0xacd   : > { %6153 = vrcp.f32 %v2375_v54  ;;  %v2753_v54 = vld [vmem:[%s7614_s16] sm:$0xff] }
 0xad0   : > { %v2378_v55 = vpop.xlane.xlu0 %2377 }
 0xad1   : > { %6155 = vrcp.f32 %v2378_v55  ;;  %v2754_v55 = vld [vmem:[%s7614_s16 + $0x8] sm:$0xff] }
 0xad4   : > { %v2381_v57 = vpop.xlane.xlu1 %2380  ;;  %v6068_v28 = vpop.permute.xlu0 %6067 }
 0xad5   : > { %v6070_v58 = vunpack.i.h.bf16 %v6068_v28  ;;  %v6069_v60 = vunpack.i.l.bf16 %v6068_v28  ;;  %6157 = vrcp.f32 %v2381_v57  ;;  %v2755_v57 = vld [vmem:[%s7614_s16 + $0x10] sm:$0xff]  ;;  %v5884_v28 = vpack.c.bf16 %v2754_v55, %v2753_v54 }
 0xad7   : > { %v5875_v25 = vpack.c.bf16 %v6070_v58, %v6069_v60  ;;  %v6154_v61 = vpop.eup %6153  ;;  %v2756_v58 = vld [vmem:[%s7614_s16 + $0x18] sm:$0xff] }
 0xad8   : > { %v2385_v63 = vmul.f32 %v6154_v61, %v6148_v48  ;;  %v2393_v0 = vpop.permute.xlu1 %2392  ;;  %v5887_v60 = vpack.c.bf16 %v2756_v58, %v2755_v57  ;;  %v2758_v61 = vld [vmem:[%s7614_s16 + $0x28] sm:$0xff] }
 0xad9   : > { %5876 = vmatpush3.bf16.msra.mxu1 %v5875_v25  ;;  %v2757_v25 = vld [vmem:[%s7614_s16 + $0x20] sm:$0xff] }
 0xada   : > { %5484 = vmatprep.subr.mxu1 %v6293_v6 }
 0xadb   : > { %v6156_v1 = vpop.eup %6155 }
 0xadc   : > { %v2386_v62 = vmul.f32 %v6156_v1, %v6150_v49 }
 0xadd   : > { %5485 = vmatpush3.msra.mxu1 %v2393_v0 }
 0xade   : > { %5487 = vmatmul.mubr.msk.f32.vlgmr.msra.gmra.mrb[48].mxu1 %vm1361_vm9, %v2385_v63  ;;  %5877 = vmatprep.subr.bf16.mxu1 %v6291_v3  ;;  %v5890_v63 = vpack.c.bf16 %v2758_v61, %v2757_v25 }
 0xadf   : > { %5489 = vmatprep.mubr.msk.f32.mxu1 %vm6292_vm0, %v6293_v6  ;;  %v6158_v2 = vpop.eup %6157 }
 0xae0   : > { %v2387_v4 = vmul.f32 %v6158_v2, %v6152_v51  ;;  %v2650_v51 = vld [vmem:[%s7612_s14] sm:$0xff] }
 0xae1   : > { %v5878_v59 = vpack.c.bf16 %v2651_v56, %v2650_v51 }
 0xae2   : > { %5490 = vmatmul.mubr.msk.f32.gmra.mrb[50].mxu1 %vm1361_vm9, %v2386_v62 }
 0xae3   : > { %5492 = vmatprep.mubr.msk.f32.mxu1 %vm6292_vm0, %v6293_v6  ;;  %5879 = vmatpush3.bf16.msra.mxu1 %v5878_v59 }
 0xae4   : > { %5880 = vmatprep.subr.bf16.mxu1 %v6291_v3 }
 0xae6   : > { %5493 = vmatmul.mubr.msk.f32.gmra.mrb[52].mxu1 %vm1361_vm9, %v2387_v4 }
 0xae7   : > { %5514 = vmatprep.mubr.msk.f32.mxu1 %vm6292_vm0, %v6293_v6 }
 0xbb1   : > { %v2472_v5 = vpop.f32.mrb[48].mxu1 }
 0xbb2   : > { %v5488_v7 = vpop.f32.mrb[49].mxu1  ;;  %5498 = vmatmul.mubr.msk.f32.vlgmr.msra.gmra.mrb[30].mxu0 %vm1262_vm6, %v2472_v5 }
 0xbb3   : > { %5500 = vmatprep.mubr.msk.f32.mxu0 %vm6292_vm0, %v6293_v6  ;;  %5885 = vmatpush3.bf16.msra.mxu0 %v5884_v28 }
 0xbb4   : > { %5886 = vmatprep.subr.bf16.mxu0 %v6291_v3 }
 0xbb5   : > { %v2477_v9 = vpop.f32.mrb[50].mxu1 }
 0xbb6   : > { %v5491_v10 = vpop.f32.mrb[51].mxu1  ;;  %5501 = vmatmul.mubr.msk.f32.gmra.mrb[32].mxu0 %vm1262_vm6, %v2477_v9 }
 0xbb7   : > { %5503 = vmatprep.mubr.msk.f32.mxu0 %vm6292_vm0, %v6293_v6  ;;  %5888 = vmatpush3.bf16.msra.mxu0 %v5887_v60 }
 0xbb8   : > { %5889 = vmatprep.subr.bf16.mxu0 %v6291_v3 }
 0xbb9   : > { %v2482_v11 = vpop.f32.mrb[52].mxu1 }
 0xbba   : > { %v5494_v13 = vpop.f32.mrb[53].mxu1  ;;  %5504 = vmatmul.mubr.msk.f32.gmra.mrb[34].mxu0 %vm1262_vm6, %v2482_v11 }
 0xbbb   : > { %5539 = vmatprep.mubr.msk.f32.mxu0 %vm6292_vm0, %v6293_v6  ;;  %5891 = vmatpush3.bf16.msra.mxu0 %v5890_v63  ;;  %v4979_v13 = vld [vmem:[%s7610_s12] ss:$0 sm:$0xff] }
 0xbbc   : > { %5892 = vmatprep.subr.bf16.mxu0 %v6291_v3 }
 0xc85   : > { %v2561_v15 = vpop.f32.mrb[30].mxu0 }
 0xc86   : > { %v2575_v17 = vadd.f32 %v2561_v15, %v6943_v41  ;;  %v5499_v18 = vpop.f32.mrb[31].mxu0  ;;  %v4980_v15 = vld [vmem:[%s7611_s13] ss:$0 sm:$0xff] }
 0xc88   : > { %v2584_v19 = vadd.f32 %v4978_v14, %v2575_v17 }
 0xc89   : > { %v2566_v20 = vpop.f32.mrb[32].mxu0 }
 0xc8a   : > { %v2576_v21 = vadd.f32 %v2566_v20, %v6946_v46  ;;  %v5502_v24 = vpop.f32.mrb[33].mxu0  ;;  %v2587_v26 = vadd.f32 %v6650_v8, %v2584_v19 }
 0xc8c   : > { %v2585_v27 = vadd.f32 %v4978_v14, %v2576_v21  ;;  %v2592_v29 = vsel %vm1163_vm5, %v2587_v26, 0.0 }
 0xc8d   : > { %2593 = vadd.xlane.f32.xlu1 %v2592_v29  ;;  %v2571_v30 = vpop.f32.mrb[34].mxu0 }
 0xc8e   : > { %v2577_v31 = vadd.f32 %v2571_v30, %v2244_v22  ;;  %v5505_v33 = vpop.f32.mrb[35].mxu0  ;;  %v2588_v34 = vadd.f32 %v6659_v12, %v2585_v27  ;;  %v2653_v22 = vld [vmem:[%s7612_s14 + $0x18] sm:$0xff] }
 0xc8f   : > { %v5881_v53 = vpack.c.bf16 %v2653_v22, %v2652_v52  ;;  %v2760_v33 = vld [vmem:[%s7614_s16 + $0x38] sm:$0xff] }
 0xc90   : > { %v2586_v35 = vadd.f32 %v4978_v14, %v2577_v31  ;;  %v2595_v36 = vsel %vm1163_vm5, %v2588_v34, 0.0  ;;  %v2759_v31 = vld [vmem:[%s7614_s16 + $0x30] sm:$0xff] }
 0xc91   : > { %2596 = vadd.xlane.f32.xlu0 %v2595_v36  ;;  %5882 = vmatpush3.bf16.msra.mxu1 %v5881_v53 }
 0xc92   : > { %v2589_v37 = vadd.f32 %v6668_v16, %v2586_v35  ;;  %5895 = vmatprep.subr.bf16.mxu1 %v6291_v3  ;;  %v4981_v35 = vld [vmem:[%s7613_s15] ss:$0 sm:$0xff] }
 0xc94   : > { %v2598_v38 = vsel %vm1163_vm5, %v2589_v37, 0.0 }
 0xc95   : > { %2599 = vadd.xlane.f32.xlu0 %v2598_v38 }
 0xd1a   : > { %v2594_v39 = vpop.xlane.xlu1 %2593 }
 0xd1b   : > { %v2602_v8 = vmul.f32 0.03125, %v2594_v39 }
 0xd1d   : > { %v2605_v40 = vsub.f32 %v2587_v26, %v2602_v8 }
 0xd1e   : > { %v2597_v41 = vpop.xlane.xlu0 %2596 }
 0xd1f   : > { %v2603_v42 = vmul.f32 0.03125, %v2597_v41  ;;  %v2608_v43 = vmul.f32 %v2605_v40, %v2605_v40 }
 0xd21   : > { %v2606_v45 = vsub.f32 %v2588_v34, %v2603_v42  ;;  %v2611_v46 = vsel %vm1163_vm5, %v2608_v43, 0.0  ;;  %v5893_v34 = vpack.c.bf16 %v2760_v33, %v2759_v31 }
 0xd22   : > { %2612 = vadd.xlane.f32.xlu1 %v2611_v46  ;;  %v2600_v12 = vpop.xlane.xlu0 %2599 }
 0xd23   : > { %v2604_v47 = vmul.f32 0.03125, %v2600_v12  ;;  %v2609_v48 = vmul.f32 %v2606_v45, %v2606_v45  ;;  %5894 = vmatpush3.bf16.msra.mxu0 %v5893_v34 }
 0xd24   : > { %5905 = vmatprep.subr.bf16.mxu0 %v6291_v3 }
 0xd25   : > { %v2607_v23 = vsub.f32 %v2589_v37, %v2604_v47  ;;  %v2614_v49 = vsel %vm1163_vm5, %v2609_v48, 0.0  ;;  %v4985_v47 = vld [vmem:[%s7615_s17] ss:$0 sm:$0xff] }
 0xd26   : > { %2615 = vadd.xlane.f32.xlu0 %v2614_v49 }
 0xd27   : > { %v2610_v16 = vmul.f32 %v2607_v23, %v2607_v23 }
 0xd29   : > { %v2617_v50 = vsel %vm1163_vm5, %v2610_v16, 0.0 }
 0xd2a   : > { %2618 = vadd.xlane.f32.xlu1 %v2617_v50 }
 0xdaf   : > { %v2613_v0 = vpop.xlane.xlu1 %2612 }
 0xdb0   : > { %v2620_v1 = vmul.f32 0.03125, %v2613_v0 }
 0xdb2   : > { %v2623_v62 = vadd.f32 1e-05, %v2620_v1 }
 0xdb3   : > { %v2616_v2 = vpop.xlane.xlu0 %2615 }
 0xdb4   : > { %6159 = vrsqrt.f32 %v2623_v62  ;;  %v2621_v4 = vmul.f32 0.03125, %v2616_v2 }
 0xdb6   : > { %v2624_v5 = vadd.f32 1e-05, %v2621_v4 }
 0xdb7   : > { %v2619_v7 = vpop.xlane.xlu1 %2618 }
 0xdb8   : > { %6161 = vrsqrt.f32 %v2624_v5  ;;  %v2622_v9 = vmul.f32 0.03125, %v2619_v7 }
 0xdba   : > { %v2625_v10 = vadd.f32 1e-05, %v2622_v9 }
 0xdbc   : > { %6163 = vrsqrt.f32 %v2625_v10 }
 0xdbe   : > { %v6160_v11 = vpop.eup %6159 }
 0xdbf   : > { %v2629_v14 = vmul.f32 %v6160_v11, %v2605_v40 }
 0xdc1   : > { %v2638_v17 = vmul.f32 %v4979_v13, %v2629_v14  ;;  %v4992_v14 = vld [vmem:[%s7691_s21 + $0x28] sm:$0xff] }
 0xdc2   : > { %v6162_v18 = vpop.eup %6161 }
 0xdc3   : > { %v2647_v19 = vadd.f32 %v4980_v15, %v2638_v17  ;;  %v2630_v20 = vmul.f32 %v6162_v18, %v2606_v45  ;;  %v4993_v17 = vld [vmem:[%s7691_s21 + $0x30] sm:$0xff]  ;;  %v4994_v18 = vld [vmem:[%s7691_s21 + $0x38] sm:$0xff] }
 0xdc5   : > { %5515 = vmatmul.mubr.msk.f32.vlgmr.msra.gmra.mrb[54].mxu1 %vm1163_vm5, %v2647_v19  ;;  %v2639_v21 = vmul.f32 %v4979_v13, %v2630_v20 }
 0xdc6   : > { %v6164_v24 = vpop.eup %6163  ;;  %5517 = vmatprep.mubr.msk.f32.mxu1 %vm6292_vm0, %v6293_v6 }
 0xdc7   : > { %v2648_v26 = vadd.f32 %v4980_v15, %v2639_v21  ;;  %v2631_v27 = vmul.f32 %v6164_v24, %v2607_v23 }
 0xdc9   : > { %5518 = vmatmul.mubr.msk.f32.gmra.mrb[56].mxu1 %vm1163_vm5, %v2648_v26  ;;  %v2640_v29 = vmul.f32 %v4979_v13, %v2631_v27  ;;  %v4991_v13 = vld [vmem:[%s7691_s21 + $0x20] sm:$0xff] }
 0xdca   : > { %5520 = vmatprep.mubr.msk.f32.mxu1 %vm6292_vm0, %v6293_v6 }
 0xdcb   : > { %v2649_v30 = vadd.f32 %v4980_v15, %v2640_v29  ;;  %v5896_v15 = vpack.c.bf16 %v4992_v14, %v4991_v13 }
 0xdcd   : > { %5521 = vmatmul.mubr.msk.f32.gmra.mrb[58].mxu1 %vm1163_vm5, %v2649_v30 }
 0xdce   : > { %5556 = vmatprep.mubr.msk.f32.mxu1 %vm6292_vm0, %v6293_v6  ;;  %5897 = vmatpush3.bf16.msra.mxu1 %v5896_v15 }
 0xdcf   : > { %5898 = vmatprep.subr.bf16.mxu1 %v6291_v3 }
 0xe98   : > { %v2736_v36 = vpop.f32.mrb[54].mxu1 }
 0xe99   : > { %v2737_v37 = vadd.f32 %v4981_v35, %v2736_v36  ;;  %v5516_v38 = vpop.f32.mrb[55].mxu1 }
 0xe9b   : > { %v2750_v39 = vmax.f32 %v2737_v37, 0.0  ;;  %v4990_v37 = vld [vmem:[%s7617_s19] ss:$0 sm:$0xff] }
 0xe9c   : > { %v2741_v8 = vpop.f32.mrb[56].mxu1 }
 0xe9d   : > { %v2742_v40 = vadd.f32 %v4981_v35, %v2741_v8  ;;  %v5519_v41 = vpop.f32.mrb[57].mxu1  ;;  %5540 = vmatmul.mubr.msk.f32.vlgmr.msra.gmra.mrb[36].mxu0 %vm787_vm1, %v2750_v39 }
 0xe9e   : > { %5542 = vmatprep.mubr.msk.f32.mxu0 %vm6292_vm0, %v6293_v6 }
 0xe9f   : > { %v2751_v42 = vmax.f32 %v2742_v40, 0.0 }
 0xea0   : > { %v2746_v43 = vpop.f32.mrb[58].mxu1 }
 0xea1   : > { %v2747_v45 = vadd.f32 %v4981_v35, %v2746_v43  ;;  %v5522_v46 = vpop.f32.mrb[59].mxu1  ;;  %5543 = vmatmul.mubr.msk.f32.gmra.mrb[38].mxu0 %vm787_vm1, %v2751_v42  ;;  %v4989_v35 = vld [vmem:[%s7616_s18] ss:$0 sm:$0xff] }
 0xea2   : > { %5545 = vmatprep.mubr.msk.f32.mxu0 %vm6292_vm0, %v6293_v6 }
 0xea3   : > { %v2752_v12 = vmax.f32 %v2747_v45, 0.0 }
 0xea5   : > { %5546 = vmatmul.mubr.msk.f32.gmra.mrb[40].mxu0 %vm787_vm1, %v2752_v12 }
 0xea6   : > { %5586 = vmatprep.mubr.msk.f32.mxu0 %vm6292_vm0, %v6293_v6 }
 0xf70   : > { %v2843_v48 = vpop.f32.mrb[36].mxu0 }
 0xf71   : > { %v2844_v23 = vadd.f32 %v4985_v47, %v2843_v48  ;;  %v5541_v49 = vpop.f32.mrb[37].mxu0 }
 0xf73   : > { %v2857_v16 = vadd.f32 %v2844_v23, %v2647_v19  ;;  %v5899_v19 = vpack.c.bf16 %v4994_v18, %v4993_v17  ;;  %v5001_v23 = vld [vmem:[%s7607_s9 + $0x1] ss:$0 sm:$0xff] }
 0xf74   : > { %v2848_v50 = vpop.f32.mrb[38].mxu0 }
 0xf75   : > { %v2849_v51 = vadd.f32 %v4985_v47, %v2848_v50  ;;  %v5544_v56 = vpop.f32.mrb[39].mxu0  ;;  %v2862_v59 = vsel %vm1163_vm5, %v2857_v16, 0.0  ;;  %5900 = vmatpush3.bf16.msra.mxu1 %v5899_v19 }
 0xf76   : > { %2863 = vadd.xlane.f32.xlu0 %v2862_v59  ;;  %5901 = vmatprep.subr.bf16.mxu1 %v6291_v3 }
 0xf77   : > { %v2858_v52 = vadd.f32 %v2849_v51, %v2648_v26 }
 0xf78   : > { %v2853_v22 = vpop.f32.mrb[40].mxu0 }
 0xf79   : > { %v2854_v53 = vadd.f32 %v4985_v47, %v2853_v22  ;;  %v5547_v54 = vpop.f32.mrb[41].mxu0  ;;  %v2865_v55 = vsel %vm1163_vm5, %v2858_v52, 0.0 }
 0xf7a   : > { %2866 = vadd.xlane.f32.xlu1 %v2865_v55 }
 0xf7b   : > { %v2859_v57 = vadd.f32 %v2854_v53, %v2649_v30 }
 0xf7d   : > { %v2868_v28 = vsel %vm1163_vm5, %v2859_v57, 0.0 }
 0xf7e   : > { %2869 = vadd.xlane.f32.xlu0 %v2868_v28 }
0x1003   : > { %v2864_v58 = vpop.xlane.xlu0 %2863 }
0x1004   : > { %v2871_v60 = vmul.f32 0.03125, %v2864_v58 }
0x1006   : > { %v2874_v25 = vsub.f32 %v2857_v16, %v2871_v60 }
0x1007   : > { %v2867_v61 = vpop.xlane.xlu1 %2866 }
0x1008   : > { %v2872_v63 = vmul.f32 0.03125, %v2867_v61  ;;  %v2877_v0 = vmul.f32 %v2874_v25, %v2874_v25 }
0x100a   : > { %v2875_v1 = vsub.f32 %v2858_v52, %v2872_v63  ;;  %v2880_v62 = vsel %vm1163_vm5, %v2877_v0, 0.0 }
0x100b   : > { %2881 = vadd.xlane.f32.xlu1 %v2880_v62  ;;  %v2870_v2 = vpop.xlane.xlu0 %2869 }
0x100c   : > { %v2873_v4 = vmul.f32 0.03125, %v2870_v2  ;;  %v2878_v5 = vmul.f32 %v2875_v1, %v2875_v1 }
0x100e   : > { %v2876_v7 = vsub.f32 %v2859_v57, %v2873_v4  ;;  %v2883_v9 = vsel %vm1163_vm5, %v2878_v5, 0.0 }
0x100f   : > { %2884 = vadd.xlane.f32.xlu0 %v2883_v9 }
0x1010   : > { %v2879_v10 = vmul.f32 %v2876_v7, %v2876_v7 }
0x1012   : > { %v2886_v11 = vsel %vm1163_vm5, %v2879_v10, 0.0 }
0x1013   : > { %2887 = vadd.xlane.f32.xlu1 %v2886_v11 }
0x1098   : > { %v2882_v20 = vpop.xlane.xlu1 %2881 }
0x1099   : > { %v2889_v21 = vmul.f32 0.03125, %v2882_v20 }
0x109b   : > { %v2892_v24 = vadd.f32 1e-05, %v2889_v21 }
0x109c   : > { %v2885_v26 = vpop.xlane.xlu0 %2884 }
0x109d   : > { %6165 = vrsqrt.f32 %v2892_v24  ;;  %v2890_v27 = vmul.f32 0.03125, %v2885_v26 }
0x109f   : > { %v2893_v29 = vadd.f32 1e-05, %v2890_v27 }
0x10a0   : > { %v2888_v30 = vpop.xlane.xlu1 %2887 }
0x10a1   : > { %6167 = vrsqrt.f32 %v2893_v29  ;;  %v2891_v31 = vmul.f32 0.03125, %v2888_v30 }
0x10a3   : > { %v2894_v33 = vadd.f32 1e-05, %v2891_v31 }
0x10a5   : > { %6169 = vrsqrt.f32 %v2894_v33 }
0x10a7   : > { %v6166_v34 = vpop.eup %6165 }
0x10a8   : > { %v2898_v36 = vmul.f32 %v6166_v34, %v2874_v25 }
0x10aa   : > { %v2907_v38 = vmul.f32 %v4989_v35, %v2898_v36 }
0x10ab   : > { %v6168_v39 = vpop.eup %6167 }
0x10ac   : > { %v7092_v8 = vadd.f32 %v4990_v37, %v2907_v38  ;;  %v2899_v40 = vmul.f32 %v6168_v39, %v2875_v1 }
0x10ae   : > { %5557 = vmatmul.mubr.msk.f32.vlgmr.msra.gmra.mrb[60].mxu1 %vm1163_vm5, %v7092_v8  ;;  %v2908_v41 = vmul.f32 %v4989_v35, %v2899_v40 }
0x10af   : > { %v6170_v42 = vpop.eup %6169  ;;  %5559 = vmatprep.mubr.msk.f32.mxu1 %vm6292_vm0, %v6293_v6 }
0x10b0   : > { %v7098_v43 = vadd.f32 %v4990_v37, %v2908_v41  ;;  %v2900_v45 = vmul.f32 %v6170_v42, %v2876_v7 }
0x10b2   : > { %5560 = vmatmul.mubr.msk.f32.gmra.mrb[62].mxu1 %vm1163_vm5, %v7098_v43  ;;  %v2909_v46 = vmul.f32 %v4989_v35, %v2900_v45 }
0x10b3   : > { %5562 = vmatprep.mubr.msk.f32.mxu1 %vm6292_vm0, %v6293_v6 }
0x10b4   : > { %v7104_v12 = vadd.f32 %v4990_v37, %v2909_v46 }
0x10b6   : > { %5563 = vmatmul.mubr.msk.f32.gmra.mrb[64].mxu1 %vm1163_vm5, %v7104_v12 }
0x10b7   : > { %5571 = vmatprep.mubr.msk.f32.mxu1 %vm6292_vm0, %v6293_v6 }
0x1181   : > { %v3014_v47 = vpop.f32.mrb[60].mxu1 }
0x1182   : > { %v5558_v48 = vpop.f32.mrb[61].mxu1  ;;  %v7113_v16 = vadd.f32 %v5001_v23, %v3014_v47 }
0x1185   : > { %v3019_v49 = vpop.f32.mrb[62].mxu1 }
0x1186   : > { %v7115_v50 = vadd.f32 %v5001_v23, %v3019_v49  ;;  %v5561_v51 = vpop.f32.mrb[63].mxu1 }
0x1188   : > { %v7119_v56 = vpack.i.bf16 %v7115_v50, %v7113_v16 }
0x1189   : > { %v3024_v59 = vpop.f32.mrb[64].mxu1 }
0x118a   : > { %v7121_v52 = vadd.f32 %v5001_v23, %v3024_v59  ;;  %6072 = vrot.lane.b32.xlu0 %v7119_v56, %s7698_s27  ;;  %v5564_v22 = vpop.f32.mrb[65].mxu1 }
0x118c   : > { %3035 = vrot.lane.b32.xlu1 %v7121_v52, %s7698_s27 }
0x118e   : > { %3276 = vrot.lane.b32.xlu0 %v7121_v52, %s7699_s30 }
0x1190   : > { %6077 = vrot.lane.b32.xlu1 %v7119_v56, %s7699_s30  ;;  %s7705_s30 = smov 48  }
0x1192   : > { %3268 = vrot.lane.b32.xlu0 %v7115_v50, %s7700_s2 }
0x1194   : > { %3266 = vrot.lane.b32.xlu1 %v7113_v16, %s7700_s2 }
0x1198   : > { %3270 = vrot.lane.b32.xlu1 %v7121_v52, %s7700_s2  ;;  %s7706_s2 = smov 72  }
0x11fc   : > { %v6073_v53 = vpop.permute.xlu0 %6072 }
0x11fd   : > { %v6075_v54 = vunpack.i.h.bf16 %v6073_v53  ;;  %v6074_v55 = vunpack.i.l.bf16 %v6073_v53 }
0x11fe   : > { %v3036_v57 = vpop.permute.xlu1 %3035 }
0x11ff   : > { %v5902_v28 = vpack.c.bf16 %v6075_v54, %v6074_v55 }
0x1200   : > { %v3277_v63 = vpop.permute.xlu0 %3276 }
0x1201   : > { %5904 = vmatpush3.bf16.xpose.msk.msra.mxu1 %vm6703_vm7, %v5902_v28 }
0x1202   : > { %5569 = vmatprep.subr.mxu1 %v6293_v6  ;;  %v6078_v58 = vpop.permute.xlu1 %6077 }
0x1203   : > { %v6080_v60 = vunpack.i.h.bf16 %v6078_v58  ;;  %v6079_v25 = vunpack.i.l.bf16 %v6078_v58 }
0x1204   : > { %v3269_v1 = vpop.permute.xlu0 %3268 }
0x1205   : > { %v5909_v61 = vpack.c.bf16 %v6080_v60, %v6079_v25 }
0x1206   : > { %v3267_v0 = vpop.permute.xlu1 %3266 }
0x1209   : > { %5570 = vmatpush3.xpose.msk.msra.mxu1 %vm1262_vm6, %v3036_v57 }
0x120a   : > { %5908 = vmatprep.subr.bf16.mxu1 %v6291_v3  ;;  %v3271_v62 = vpop.permute.xlu1 %3270 }
0x120c   : > { %5572 = vmatmul.mubr.msk.f32.vlgmr.msra.gmra.mrb[66].mxu1 %vm1262_vm6, %v7113_v16 }
0x120d   : > { %5911 = vmatpush3.bf16.xpose.msk.msra.mxu1 %vm6703_vm7, %v5909_v61  ;;  %5574 = vmatprep.mubr.msk.f32.mxu1 %vm6292_vm0, %v6293_v6 }
0x120e   : > { %5599 = vmatprep.subr.mxu1 %v6293_v6 }
0x1210   : > { %5575 = vmatmul.mubr.msk.f32.gmra.mrb[68].mxu1 %vm1262_vm6, %v7115_v50 }
0x1211   : > { %5577 = vmatprep.mubr.msk.f32.mxu1 %vm6292_vm0, %v6293_v6 }
0x1214   : > { %5578 = vmatmul.mubr.msk.f32.gmra.mrb[70].mxu1 %vm1262_vm6, %v7121_v52 }
0x1215   : > { %5600 = vmatpush3.xpose.msk.msra.mxu1 %vm1262_vm6, %v3277_v63  ;;  %5601 = vmatprep.mubr.msk.f32.mxu1 %vm6292_vm0, %v6293_v6 }
0x1216   : > { %5625 = vmatprep.subr.mxu1 %v6293_v6 }
0x1218   : > { %5602 = vmatmul.mubr.msk.f32.vlgmr.msra.gmra.mrb[72].mxu1 %vm1262_vm6, %v3267_v0 }
0x1219   : > { %5604 = vmatprep.mubr.msk.f32.mxu1 %vm6292_vm0, %v6293_v6 }
0x121c   : > { %5605 = vmatmul.mubr.msk.f32.gmra.mrb[74].mxu1 %vm1262_vm6, %v3269_v1 }
0x121d   : > { %5607 = vmatprep.mubr.msk.f32.mxu1 %vm6292_vm0, %v6293_v6 }
0x1220   : > { %5608 = vmatmul.mubr.msk.f32.gmra.mrb[76].mxu1 %vm1262_vm6, %v3271_v62 }
0x1221   : > { %5627 = vmatprep.mubr.msk.f32.mxu1 %vm6292_vm0, %v6293_v6 }
0x12df   : > { %v3115_v2 = vpop.f32.mrb[66].mxu1 }
0x12e0   : > { %v3129_v4 = vmul.f32 0.35355338, %v3115_v2  ;;  %v5573_v5 = vpop.f32.mrb[67].mxu1 }
0x12e2   : > { %v3132_v7 = vsel %vm1146_vm8, %v3129_v4, -1e+30 }
0x12e3   : > { %v3120_v9 = vpop.f32.mrb[68].mxu1  ;;  %v3135_v10 = vsel %vm1361_vm9, %v3132_v7, -inf }
0x12e4   : > { %v3130_v11 = vmul.f32 0.35355338, %v3120_v9  ;;  %3136 = vmax.xlane.f32.xlu0 %v3135_v10  ;;  %v5576_v13 = vpop.f32.mrb[69].mxu1 }
0x12e6   : > { %v3133_v14 = vsel %vm1146_vm8, %v3130_v11, -1e+30 }
0x12e7   : > { %v3125_v15 = vpop.f32.mrb[70].mxu1  ;;  %v3138_v17 = vsel %vm1361_vm9, %v3133_v14, -inf }
0x12e8   : > { %v3131_v18 = vmul.f32 0.35355338, %v3125_v15  ;;  %3139 = vmax.xlane.f32.xlu1 %v3138_v17  ;;  %v5579_v19 = vpop.f32.mrb[71].mxu1 }
0x12ea   : > { %v3134_v20 = vsel %vm1146_vm8, %v3131_v18, -1e+30 }
0x12eb   : > { %v3356_v21 = vpop.f32.mrb[72].mxu1  ;;  %v3141_v24 = vsel %vm1361_vm9, %v3134_v20, -inf }
0x12ec   : > { %v3370_v26 = vmul.f32 0.35355338, %v3356_v21  ;;  %3142 = vmax.xlane.f32.xlu0 %v3141_v24  ;;  %v5603_v27 = vpop.f32.mrb[73].mxu1 }
0x12ee   : > { %v3373_v29 = vsel %vm1146_vm8, %v3370_v26, -1e+30 }
0x12ef   : > { %v3361_v30 = vpop.f32.mrb[74].mxu1  ;;  %v3376_v31 = vsel %vm1361_vm9, %v3373_v29, -inf }
0x12f0   : > { %v3371_v33 = vmul.f32 0.35355338, %v3361_v30  ;;  %3377 = vmax.xlane.f32.xlu0 %v3376_v31  ;;  %v5606_v34 = vpop.f32.mrb[75].mxu1 }
0x12f2   : > { %v3374_v35 = vsel %vm1146_vm8, %v3371_v33, -1e+30 }
0x12f3   : > { %v3366_v36 = vpop.f32.mrb[76].mxu1  ;;  %v3379_v37 = vsel %vm1361_vm9, %v3374_v35, -inf }
0x12f4   : > { %v3372_v38 = vmul.f32 0.35355338, %v3366_v36  ;;  %3380 = vmax.xlane.f32.xlu1 %v3379_v37  ;;  %v5609_v39 = vpop.f32.mrb[77].mxu1 }
0x12f6   : > { %v3375_v40 = vsel %vm1146_vm8, %v3372_v38, -1e+30 }
0x12f7   : > { %v3382_v41 = vsel %vm1361_vm9, %v3375_v40, -inf }
0x12f8   : > { %3383 = vmax.xlane.f32.xlu0 %v3382_v41 }
0x1305   : > { %3172 = vrot.lane.b32.xlu1 %v7121_v52, %s7701_s23 }
0x130e   : > { %6082 = vrot.lane.b32.xlu0 %v7119_v56, %s7701_s23  ;;  %s7707_s23 = smov 104  }
0x1371   : > { %v3137_v42 = vpop.xlane.xlu0 %3136 }
0x1372   : > { %v3144_v45 = vsub.f32 %v3132_v7, %v3137_v42 }
0x1374   : > { %v3147_v46 = vmul.f32 1.442695, %v3144_v45 }
0x1375   : > { %v3140_v47 = vpop.xlane.xlu1 %3139 }
0x1376   : > { %6171 = vpow2.f32 %v3147_v46  ;;  %v3145_v48 = vsub.f32 %v3133_v14, %v3140_v47 }
0x1378   : > { %v3149_v23 = vmul.f32 1.442695, %v3145_v48 }
0x1379   : > { %v3143_v49 = vpop.xlane.xlu0 %3142 }
0x137a   : > { %6173 = vpow2.f32 %v3149_v23  ;;  %v3146_v51 = vsub.f32 %v3134_v20, %v3143_v49  ;;  %v4996_v23 = vld [vmem:[%s7608_s10 + $0x20] sm:$0xff]  ;;  %v4997_v49 = vld [vmem:[%s7608_s10 + $0x28] sm:$0xff] }
0x137b   : > { %5626 = vmatpush3.msra.mxu1 %v4997_v49 }
0x137c   : > { %v3151_v59 = vmul.f32 1.442695, %v3146_v51  ;;  %5915 = vmatprep.subr.bf16.mxu1 %v6291_v3 }
0x137d   : > { %v3378_v22 = vpop.xlane.xlu0 %3377 }
0x137e   : > { %6175 = vpow2.f32 %v3151_v59  ;;  %v3385_v53 = vsub.f32 %v3373_v29, %v3378_v22 }
0x1380   : > { %v6172_v54 = vpop.eup %6171  ;;  %v3388_v55 = vmul.f32 1.442695, %v3385_v53 }
0x1381   : > { %v3381_v57 = vpop.xlane.xlu1 %3380  ;;  %v3153_v28 = vsel %vm1361_vm9, %v6172_v54, 0.0 }
0x1382   : > { %6177 = vpow2.f32 %v3388_v55  ;;  %v3386_v58 = vsub.f32 %v3374_v35, %v3381_v57  ;;  %3154 = vadd.xlane.f32.xlu1 %v3153_v28 }
0x1384   : > { %v6174_v60 = vpop.eup %6173  ;;  %v3390_v25 = vmul.f32 1.442695, %v3386_v58 }
0x1385   : > { %v3384_v61 = vpop.xlane.xlu0 %3383  ;;  %v3156_v63 = vsel %vm1361_vm9, %v6174_v60, 0.0  ;;  %v3173_v14 = vpop.permute.xlu1 %3172 }
0x1386   : > { %6179 = vpow2.f32 %v3390_v25  ;;  %v3387_v0 = vsub.f32 %v3375_v40, %v3384_v61  ;;  %3157 = vadd.xlane.f32.xlu0 %v3156_v63 }
0x1388   : > { %v6176_v1 = vpop.eup %6175  ;;  %v3392_v62 = vmul.f32 1.442695, %v3387_v0 }
0x1389   : > { %v6083_v2 = vpop.permute.xlu0 %6082  ;;  %v3159_v4 = vsel %vm1361_vm9, %v6176_v1, 0.0 }
0x138a   : > { %6181 = vpow2.f32 %v3392_v62  ;;  %v6085_v5 = vunpack.i.h.bf16 %v6083_v2  ;;  %v6084_v7 = vunpack.i.l.bf16 %v6083_v2  ;;  %3160 = vadd.xlane.f32.xlu1 %v3159_v4 }
0x138c   : > { %v6178_v9 = vpop.eup %6177  ;;  %v5906_v10 = vpack.c.bf16 %v6085_v5, %v6084_v7 }
0x138d   : > { %v3394_v11 = vsel %vm1361_vm9, %v6178_v9, 0.0 }
0x138e   : > { %3395 = vadd.xlane.f32.xlu0 %v3394_v11  ;;  %5907 = vmatpush3.bf16.msra.mxu0 %v5906_v10 }
0x138f   : > { %5584 = vmatprep.subr.mxu0 %v6293_v6 }
0x1390   : > { %v6180_v13 = vpop.eup %6179 }
0x1391   : > { %v3397_v15 = vsel %vm1361_vm9, %v6180_v13, 0.0 }
0x1392   : > { %3398 = vadd.xlane.f32.xlu1 %v3397_v15  ;;  %5585 = vmatpush3.msra.mxu0 %v3173_v14 }
0x1393   : > { %5912 = vmatprep.subr.bf16.mxu0 %v6291_v3 }
0x1394   : > { %v6182_v17 = vpop.eup %6181 }
0x1395   : > { %v3400_v18 = vsel %vm1361_vm9, %v6182_v17, 0.0 }
0x1396   : > { %3401 = vadd.xlane.f32.xlu1 %v3400_v18 }
0x13a4   : > { %6087 = vrot.lane.b32.xlu0 %v7119_v56, %s7702_s28 }
0x13a7   : > { %3413 = vrot.lane.b32.xlu1 %v7121_v52, %s7702_s28 }
0x13a8   : > { %6092 = vrot.lane.b32.xlu0 %v7119_v56, %s7703_s3 }
0x13ab   : > { %3695 = vrot.lane.b32.xlu1 %v7121_v52, %s7703_s3  ;;  %s741_s3 = sand.u32 1, %s6281_s26  }
0x13ac   : > { %3685 = vrot.lane.b32.xlu0 %v7113_v16, %s7704_s4  ;;  %s742_s27 = scalar_lea.vmem [#allocation2], %s741_s3 }
0x13af   : > { %3687 = vrot.lane.b32.xlu1 %v7115_v50, %s7704_s4 }
0x13b0   : > { %3689 = vrot.lane.b32.xlu0 %v7121_v52, %s7704_s4  ;;  %s7708_s4 = smov 40  }
0x140f   : > { %v3155_v19 = vpop.xlane.xlu1 %3154 }
0x1410   : > { %6183 = vrcp.f32 %v3155_v19 }
0x1413   : > { %v3158_v20 = vpop.xlane.xlu0 %3157 }
0x1414   : > { %6185 = vrcp.f32 %v3158_v20 }
0x1417   : > { %v3161_v21 = vpop.xlane.xlu1 %3160 }
0x1418   : > { %6187 = vrcp.f32 %v3161_v21 }
0x141a   : > { %v6184_v24 = vpop.eup %6183 }
0x141b   : > { %v3165_v26 = vmul.f32 %v6184_v24, %v6172_v54  ;;  %v3396_v27 = vpop.xlane.xlu0 %3395 }
0x141c   : > { %6189 = vrcp.f32 %v3396_v27 }
0x141d   : > { %5587 = vmatmul.mubr.msk.f32.vlgmr.msra.gmra.mrb[42].mxu0 %vm1361_vm9, %v3165_v26 }
0x141e   : > { %v6186_v29 = vpop.eup %6185  ;;  %5589 = vmatprep.mubr.msk.f32.mxu0 %vm6292_vm0, %v6293_v6 }
0x141f   : > { %v3399_v30 = vpop.xlane.xlu1 %3398  ;;  %v6088_v31 = vpop.permute.xlu0 %6087  ;;  %v3166_v33 = vmul.f32 %v6186_v29, %v6174_v60 }
0x1420   : > { %6191 = vrcp.f32 %v3399_v30  ;;  %v6090_v34 = vunpack.i.h.bf16 %v6088_v31  ;;  %v6089_v35 = vunpack.i.l.bf16 %v6088_v31 }
0x1421   : > { %5590 = vmatmul.mubr.msk.f32.gmra.mrb[44].mxu0 %vm1361_vm9, %v3166_v33 }
0x1422   : > { %v6188_v36 = vpop.eup %6187  ;;  %v5913_v37 = vpack.c.bf16 %v6090_v34, %v6089_v35  ;;  %5592 = vmatprep.mubr.msk.f32.mxu0 %vm6292_vm0, %v6293_v6 }
0x1423   : > { %v3402_v38 = vpop.xlane.xlu1 %3401  ;;  %v3167_v39 = vmul.f32 %v6188_v36, %v6176_v1  ;;  %v6093_v53 = vpop.permute.xlu0 %6092 }
0x1424   : > { %6193 = vrcp.f32 %v3402_v38  ;;  %5914 = vmatpush3.bf16.msra.mxu0 %v5913_v37  ;;  %v6095_v55 = vunpack.i.h.bf16 %v6093_v53  ;;  %v6094_v57 = vunpack.i.l.bf16 %v6093_v53 }
0x1425   : > { %5593 = vmatmul.mubr.msk.f32.gmra.mrb[46].mxu0 %vm1361_vm9, %v3167_v39  ;;  %5614 = vmatprep.subr.mxu0 %v6293_v6 }
0x1426   : > { %v6190_v40 = vpop.eup %6189  ;;  %5616 = vmatprep.mubr.msk.f32.mxu0 %vm6292_vm0, %v6293_v6  ;;  %v5916_v60 = vpack.c.bf16 %v6095_v55, %v6094_v57 }
0x1427   : > { %v3406_v41 = vmul.f32 %v6190_v40, %v6178_v9  ;;  %v3414_v42 = vpop.permute.xlu1 %3413  ;;  %v3686_v4 = vpop.permute.xlu0 %3685 }
0x1428   : > { %5615 = vmatpush3.msra.mxu0 %v3414_v42 }
0x1429   : > { %5617 = vmatmul.mubr.msk.f32.vlgmr.msra.gmra.mrb[48].mxu0 %vm1361_vm9, %v3406_v41  ;;  %5636 = vmatprep.subr.mxu0 %v6293_v6 }
0x142a   : > { %v6192_v45 = vpop.eup %6191  ;;  %5619 = vmatprep.mubr.msk.f32.mxu0 %vm6292_vm0, %v6293_v6  ;;  %5637 = vmatpush3.msra.mxu0 %v4996_v23 }
0x142b   : > { %v3407_v46 = vmul.f32 %v6192_v45, %v6180_v13  ;;  %5919 = vmatprep.subr.bf16.mxu0 %v6291_v3  ;;  %v3696_v62 = vpop.permute.xlu1 %3695  ;;  %v3690_v7 = vpop.permute.xlu0 %3689 }
0x142d   : > { %5620 = vmatmul.mubr.msk.f32.gmra.mrb[50].mxu0 %vm1361_vm9, %v3407_v46 }
0x142e   : > { %v6194_v47 = vpop.eup %6193  ;;  %5622 = vmatprep.mubr.msk.f32.mxu0 %vm6292_vm0, %v6293_v6 }
0x142f   : > { %v3408_v48 = vmul.f32 %v6194_v47, %v6182_v17  ;;  %v3688_v5 = vpop.permute.xlu1 %3687 }
0x1431   : > { %5623 = vmatmul.mubr.msk.f32.gmra.mrb[52].mxu0 %vm1361_vm9, %v3408_v48 }
0x1432   : > { %5638 = vmatprep.mubr.msk.f32.mxu0 %vm6292_vm0, %v6293_v6 }
0x14f0   : > { %v3252_v51 = vpop.f32.mrb[42].mxu0 }
0x14f1   : > { %v5588_v59 = vpop.f32.mrb[43].mxu0  ;;  %5639 = vmatmul.mubr.msk.f32.vlgmr.msra.gmra.mrb[54].mxu0 %vm1262_vm6, %v3252_v51 }
0x14f2   : > { %5641 = vmatprep.mubr.msk.f32.mxu0 %vm6292_vm0, %v6293_v6 }
0x14f4   : > { %v3257_v22 = vpop.f32.mrb[44].mxu0 }
0x14f5   : > { %v5591_v54 = vpop.f32.mrb[45].mxu0  ;;  %5642 = vmatmul.mubr.msk.f32.gmra.mrb[56].mxu0 %vm1262_vm6, %v3257_v22 }
0x14f6   : > { %5644 = vmatprep.mubr.msk.f32.mxu0 %vm6292_vm0, %v6293_v6 }
0x14f8   : > { %v3262_v28 = vpop.f32.mrb[46].mxu0 }
0x14f9   : > { %v5594_v58 = vpop.f32.mrb[47].mxu0  ;;  %5645 = vmatmul.mubr.msk.f32.gmra.mrb[58].mxu0 %vm1262_vm6, %v3262_v28 }
0x14fa   : > { %5668 = vmatprep.mubr.msk.f32.mxu0 %vm6292_vm0, %v6293_v6 }
0x14fc   : > { %v3493_v25 = vpop.f32.mrb[48].mxu0 }
0x14fd   : > { %v5618_v61 = vpop.f32.mrb[49].mxu0  ;;  %5628 = vmatmul.mubr.msk.f32.vlgmr.msra.gmra.mrb[78].mxu1 %vm1262_vm6, %v3493_v25 }
0x14fe   : > { %5918 = vmatpush3.bf16.xpose.msk.msra.mxu1 %vm6703_vm7, %v5916_v60  ;;  %5630 = vmatprep.mubr.msk.f32.mxu1 %vm6292_vm0, %v6293_v6 }
0x14ff   : > { %5651 = vmatprep.subr.mxu1 %v6293_v6 }
0x1500   : > { %v3498_v63 = vpop.f32.mrb[50].mxu0 }
0x1501   : > { %v5621_v0 = vpop.f32.mrb[51].mxu0  ;;  %5631 = vmatmul.mubr.msk.f32.gmra.mrb[80].mxu1 %vm1262_vm6, %v3498_v63 }
0x1502   : > { %5633 = vmatprep.mubr.msk.f32.mxu1 %vm6292_vm0, %v6293_v6 }
0x1504   : > { %v3503_v1 = vpop.f32.mrb[52].mxu0 }
0x1505   : > { %v5624_v2 = vpop.f32.mrb[53].mxu0  ;;  %5634 = vmatmul.mubr.msk.f32.gmra.mrb[82].mxu1 %vm1262_vm6, %v3503_v1 }
0x1506   : > { %5652 = vmatpush3.xpose.msk.msra.mxu1 %vm1262_vm6, %v3696_v62  ;;  %5653 = vmatprep.mubr.msk.f32.mxu1 %vm6292_vm0, %v6293_v6 }
0x1507   : > { %5677 = vmatprep.subr.mxu1 %v6293_v6 }
0x1509   : > { %5654 = vmatmul.mubr.msk.f32.vlgmr.msra.gmra.mrb[84].mxu1 %vm1262_vm6, %v3686_v4 }
0x150a   : > { %5656 = vmatprep.mubr.msk.f32.mxu1 %vm6292_vm0, %v6293_v6  ;;  %5678 = vmatpush3.msra.mxu1 %v4998_v32 }
0x150b   : > { %5926 = vmatprep.subr.bf16.mxu1 %v6291_v3 }
0x150d   : > { %5657 = vmatmul.mubr.msk.f32.gmra.mrb[86].mxu1 %vm1262_vm6, %v3688_v5 }
0x150e   : > { %5659 = vmatprep.mubr.msk.f32.mxu1 %vm6292_vm0, %v6293_v6 }
0x1511   : > { %5660 = vmatmul.mubr.msk.f32.gmra.mrb[88].mxu1 %vm1262_vm6, %v3690_v7 }
0x1512   : > { %5679 = vmatprep.mubr.msk.f32.mxu1 %vm6292_vm0, %v6293_v6 }
0x15c4   : > { %v3671_v9 = vpop.f32.mrb[54].mxu0 }
0x15c5   : > { %v5640_v10 = vpop.f32.mrb[55].mxu0 }
0x15c8   : > { %v3676_v11 = vpop.f32.mrb[56].mxu0 }
0x15c9   : > { %v5643_v13 = vpop.f32.mrb[57].mxu0 }
0x15cc   : > { %v3681_v14 = vpop.f32.mrb[58].mxu0 }
0x15cd   : > { %v5646_v15 = vpop.f32.mrb[59].mxu0 }
0x15d0   : > { %v3582_v17 = vpop.f32.mrb[78].mxu1 }
0x15d1   : > { %v7272_v18 = vadd.f32 %v3671_v9, %v3582_v17  ;;  %v5629_v19 = vpop.f32.mrb[79].mxu1 }
0x15d4   : > { %v3587_v20 = vpop.f32.mrb[80].mxu1 }
0x15d5   : > { %v7274_v21 = vadd.f32 %v3676_v11, %v3587_v20  ;;  %v5632_v24 = vpop.f32.mrb[81].mxu1 }
0x15d8   : > { %v3592_v26 = vpop.f32.mrb[82].mxu1 }
0x15d9   : > { %v7276_v27 = vadd.f32 %v3681_v14, %v3592_v26  ;;  %v5635_v29 = vpop.f32.mrb[83].mxu1 }
0x15dc   : > { %v3775_v30 = vpop.f32.mrb[84].mxu1 }
0x15dd   : > { %v3789_v31 = vmul.f32 0.35355338, %v3775_v30  ;;  %v5655_v33 = vpop.f32.mrb[85].mxu1 }
0x15df   : > { %v3792_v34 = vsel %vm1146_vm8, %v3789_v31, -1e+30 }
0x15e0   : > { %v3780_v35 = vpop.f32.mrb[86].mxu1  ;;  %v3795_v36 = vsel %vm1361_vm9, %v3792_v34, -inf }
0x15e1   : > { %v3790_v37 = vmul.f32 0.35355338, %v3780_v35  ;;  %3796 = vmax.xlane.f32.xlu1 %v3795_v36  ;;  %v5658_v38 = vpop.f32.mrb[87].mxu1 }
0x15e3   : > { %v3793_v39 = vsel %vm1146_vm8, %v3790_v37, -1e+30 }
0x15e4   : > { %v3785_v40 = vpop.f32.mrb[88].mxu1  ;;  %v3798_v41 = vsel %vm1361_vm9, %v3793_v39, -inf }
0x15e5   : > { %v3791_v42 = vmul.f32 0.35355338, %v3785_v40  ;;  %3799 = vmax.xlane.f32.xlu0 %v3798_v41  ;;  %v5661_v45 = vpop.f32.mrb[89].mxu1 }
0x15e7   : > { %v3794_v46 = vsel %vm1146_vm8, %v3791_v42, -1e+30 }
0x15e8   : > { %v3801_v47 = vsel %vm1361_vm9, %v3794_v46, -inf }
0x15e9   : > { %3802 = vmax.xlane.f32.xlu0 %v3801_v47 }
0x166e   : > { %v3797_v48 = vpop.xlane.xlu1 %3796 }
0x166f   : > { %v3804_v23 = vsub.f32 %v3792_v34, %v3797_v48 }
0x1671   : > { %v3807_v49 = vmul.f32 1.442695, %v3804_v23 }
0x1672   : > { %v3800_v51 = vpop.xlane.xlu0 %3799 }
0x1673   : > { %6195 = vpow2.f32 %v3807_v49  ;;  %v3805_v59 = vsub.f32 %v3793_v39, %v3800_v51 }
0x1675   : > { %v3809_v22 = vmul.f32 1.442695, %v3805_v59 }
0x1676   : > { %v3803_v28 = vpop.xlane.xlu0 %3802 }
0x1677   : > { %6197 = vpow2.f32 %v3809_v22  ;;  %v3806_v58 = vsub.f32 %v3794_v46, %v3803_v28 }
0x1679   : > { %v3811_v60 = vmul.f32 1.442695, %v3806_v58 }
0x167b   : > { %6199 = vpow2.f32 %v3811_v60 }
0x167d   : > { %v6196_v53 = vpop.eup %6195 }
0x167e   : > { %v3813_v54 = vsel %vm1361_vm9, %v6196_v53, 0.0 }
0x167f   : > { %3814 = vadd.xlane.f32.xlu1 %v3813_v54 }
0x1681   : > { %v6198_v55 = vpop.eup %6197 }
0x1682   : > { %v3816_v57 = vsel %vm1361_vm9, %v6198_v55, 0.0 }
0x1683   : > { %3817 = vadd.xlane.f32.xlu0 %v3816_v57 }
0x1685   : > { %v6200_v25 = vpop.eup %6199 }
0x1686   : > { %v3819_v61 = vsel %vm1361_vm9, %v6200_v25, 0.0 }
0x1690   : > { %3832 = vrot.lane.b32.xlu1 %v7121_v52, %s7705_s30 }
0x1694   : > { %6102 = vrot.lane.b32.xlu1 %v7119_v56, %s7706_s2 }
0x1699   : > { %6097 = vrot.lane.b32.xlu0 %v7119_v56, %s7705_s30  ;;  %s4841_s30 = sshll.u32 %s742_s27, 4  ;;  %s7558_s30 = int_to_ptr.vmem [resolvable:$true] %s4841_s30 }
0x169a   : > { %s6227_s25 = scalar_lea.vmem %s7558_s30, 16 }
0x169b   : > { %p6228_p11 = scmp.ne.s32.totalorder %s7558_s30, %s6227_s25 }
0x169d   : > { %4028 = vrot.lane.b32.xlu0 %v7121_v52, %s7706_s2  ;;  %p6229_p12 = pnand %p6228_p11, %p6469_p5 }
0x169f   : > { %p6230_p13 = pneg %p6229_p12 }
0x16b8   : > { %3820 = vadd.xlane.f32.xlu1 %v3819_v61 }
0x16c9   : > { %4018 = vrot.lane.b32.xlu1 %v7113_v16, %s7707_s23 }
0x170c   : > { %v3815_v63 = vpop.xlane.xlu1 %3814 }
0x170d   : > { %6201 = vrcp.f32 %v3815_v63 }
0x1710   : > { %v3818_v0 = vpop.xlane.xlu0 %3817  ;;  %v3833_v62 = vpop.permute.xlu1 %3832 }
0x1711   : > { %6203 = vrcp.f32 %v3818_v0 }
0x1714   : > { %v6098_v1 = vpop.permute.xlu0 %6097  ;;  %v6103_v9 = vpop.permute.xlu1 %6102 }
0x1715   : > { %v6100_v2 = vunpack.i.h.bf16 %v6098_v1  ;;  %v6099_v4 = vunpack.i.l.bf16 %v6098_v1  ;;  %v6105_v13 = vunpack.i.h.bf16 %v6103_v9  ;;  %v6104_v14 = vunpack.i.l.bf16 %v6103_v9 }
0x1717   : > { %v5920_v5 = vpack.c.bf16 %v6100_v2, %v6099_v4  ;;  %v6202_v7 = vpop.eup %6201  ;;  %v5923_v15 = vpack.c.bf16 %v6105_v13, %v6104_v14 }
0x1718   : > { %v3825_v10 = vmul.f32 %v6202_v7, %v6196_v53  ;;  %v4029_v17 = vpop.permute.xlu0 %4028 }
0x1719   : > { %5921 = vmatpush3.bf16.msra.mxu0 %v5920_v5 }
0x171a   : > { %5666 = vmatprep.subr.mxu0 %v6293_v6 }
0x171b   : > { %v6204_v11 = vpop.eup %6203 }
0x171c   : > { %v3826_v16 = vmul.f32 %v6204_v11, %v6198_v55 }
0x171d   : > { %5667 = vmatpush3.msra.mxu0 %v3833_v62  ;;  %v4999_v62 = vld [vmem:[%s7608_s10 + $0x38] sm:$0xff] }
0x171e   : > { %5669 = vmatmul.mubr.msk.f32.vlgmr.msra.gmra.mrb[60].mxu0 %vm1361_vm9, %v3825_v10  ;;  %5922 = vmatprep.subr.bf16.mxu0 %v6291_v3 }
0x171f   : > { %5671 = vmatprep.mubr.msk.f32.mxu0 %vm6292_vm0, %v6293_v6 }
0x1722   : > { %5672 = vmatmul.mubr.msk.f32.gmra.mrb[62].mxu0 %vm1361_vm9, %v3826_v16 }
0x1723   : > { %5674 = vmatprep.mubr.msk.f32.mxu0 %vm6292_vm0, %v6293_v6 }
0x1724   : > { %5925 = vmatpush3.bf16.xpose.msk.msra.mxu0 %vm6703_vm7, %v5923_v15 }
0x1725   : > { %5692 = vmatprep.subr.mxu0 %v6293_v6 }
0x172c   : > { %5693 = vmatpush3.xpose.msk.msra.mxu0 %vm1262_vm6, %v4029_v17 }
0x172d   : > { %5718 = vmatprep.subr.mxu0 %v6293_v6 }
0x1745   : > { %v3821_v19 = vpop.xlane.xlu1 %3820 }
0x1746   : > { %6205 = vrcp.f32 %v3821_v19 }
0x1749   : > { %v4019_v26 = vpop.permute.xlu1 %4018 }
0x1750   : > { %v6206_v20 = vpop.eup %6205 }
0x1751   : > { %v3827_v24 = vmul.f32 %v6206_v20, %v6200_v25 }
0x1753   : > { %5675 = vmatmul.mubr.msk.f32.gmra.mrb[64].mxu0 %vm1361_vm9, %v3827_v24 }
0x1754   : > { %5694 = vmatprep.mubr.msk.f32.mxu0 %vm6292_vm0, %v6293_v6 }
0x1757   : > { %5695 = vmatmul.mubr.msk.f32.vlgmr.msra.gmra.mrb[66].mxu0 %vm1262_vm6, %v4019_v26 }
0x1758   : > { %5697 = vmatprep.mubr.msk.f32.mxu0 %vm6292_vm0, %v6293_v6  ;;  %5719 = vmatpush3.msra.mxu0 %v4999_v62 }
0x1759   : > { %5935 = vmatprep.subr.bf16.mxu0 %v6291_v3 }
0x17f1   : > { %v3912_v29 = vpop.f32.mrb[60].mxu0 }
0x17f2   : > { %v5670_v30 = vpop.f32.mrb[61].mxu0  ;;  %5680 = vmatmul.mubr.msk.f32.vlgmr.msra.gmra.mrb[90].mxu1 %vm1262_vm6, %v3912_v29 }
0x17f3   : > { %5682 = vmatprep.mubr.msk.f32.mxu1 %vm6292_vm0, %v6293_v6 }
0x17f5   : > { %v3917_v31 = vpop.f32.mrb[62].mxu0 }
0x17f6   : > { %v5673_v33 = vpop.f32.mrb[63].mxu0  ;;  %5683 = vmatmul.mubr.msk.f32.gmra.mrb[92].mxu1 %vm1262_vm6, %v3917_v31 }
0x17f7   : > { %5685 = vmatprep.mubr.msk.f32.mxu1 %vm6292_vm0, %v6293_v6 }
0x1826   : > { %v3922_v34 = vpop.f32.mrb[64].mxu0 }
0x1827   : > { %v5676_v35 = vpop.f32.mrb[65].mxu0  ;;  %5686 = vmatmul.mubr.msk.f32.gmra.mrb[94].mxu1 %vm1262_vm6, %v3922_v34 }
0x1828   : > { %5709 = vmatprep.mubr.msk.f32.mxu1 %vm6292_vm0, %v6293_v6 }
0x182a   : > { %v4108_v36 = vpop.f32.mrb[66].mxu0 }
0x182b   : > { %v4122_v37 = vmul.f32 0.35355338, %v4108_v36  ;;  %v5696_v38 = vpop.f32.mrb[67].mxu0 }
0x182d   : > { %v4125_v39 = vsel %vm1146_vm8, %v4122_v37, -1e+30 }
0x182e   : > { %v4128_v40 = vsel %vm1361_vm9, %v4125_v39, -inf }
0x182f   : > { %4129 = vmax.xlane.f32.xlu0 %v4128_v40 }
0x1845   : > { %6107 = vrot.lane.b32.xlu0 %v7119_v56, %s7708_s4 }
0x1849   : > { %4020 = vrot.lane.b32.xlu0 %v7115_v50, %s7707_s23 }
0x18bc   : > { %v4130_v41 = vpop.xlane.xlu0 %4129 }
0x18bd   : > { %v4137_v42 = vsub.f32 %v4125_v39, %v4130_v41 }
0x18bf   : > { %v4140_v45 = vmul.f32 1.442695, %v4137_v42 }
0x18c0   : > { %v6108_v46 = vpop.permute.xlu0 %6107 }
0x18c1   : > { %6207 = vpow2.f32 %v4140_v45  ;;  %v6110_v47 = vunpack.i.h.bf16 %v6108_v46  ;;  %v6109_v48 = vunpack.i.l.bf16 %v6108_v46 }
0x18c3   : > { %v5927_v23 = vpack.c.bf16 %v6110_v47, %v6109_v48  ;;  %v5058_v48 = vld [vmem:[%s7612_s14 + $0x20] sm:$0xff] }
0x18c4   : > { %v4021_v49 = vpop.permute.xlu0 %4020 }
0x18c5   : > { %v4001_v51 = vpop.f32.mrb[90].mxu1  ;;  %5698 = vmatmul.mubr.msk.f32.gmra.mrb[68].mxu0 %vm1262_vm6, %v4021_v49  ;;  %5928 = vmatpush3.bf16.msra.mxu1 %v5927_v23  ;;  %v5059_v23 = vld [vmem:[%s7612_s14 + $0x28] sm:$0xff] }
0x18c6   : > { %v4015_v59 = vadd.f32 %v4001_v51, %v7272_v18  ;;  %v5681_v22 = vpop.f32.mrb[91].mxu1  ;;  %5707 = vmatprep.subr.mxu1 %v6293_v6  ;;  %5700 = vmatprep.mubr.msk.f32.mxu0 %vm6292_vm0, %v6293_v6  ;;  %v5930_v49 = vpack.c.bf16 %v5059_v23, %v5058_v48  ;;  %v5060_v51 = vld [vmem:[%s7612_s14 + $0x30] sm:$0xff] }
0x18c9   : > { %v4006_v50 = vpop.f32.mrb[92].mxu1 }
0x18ca   : > { %v7345_v56 = vadd.f32 %v4006_v50, %v7274_v21  ;;  %v5684_v53 = vpop.f32.mrb[93].mxu1  ;;  %v5067_v50 = vld [vmem:[%s7614_s16 + $0x40] sm:$0xff] }
0x18cb   : > { %v6208_v54 = vpop.eup %6207  ;;  %v5068_v53 = vld [vmem:[%s7614_s16 + $0x48] sm:$0xff] }
0x18cc   : > { %v4146_v55 = vsel %vm1361_vm9, %v6208_v54, 0.0 }
0x18cd   : > { %4147 = vadd.xlane.f32.xlu1 %v4146_v55  ;;  %v5936_v55 = vpack.c.bf16 %v5068_v53, %v5067_v50 }
0x18de   : > { %4165 = vrot.lane.b32.xlu1 %v7121_v52, %s7708_s4  ;;  %s4829_s4 = scalar_lea.sflag [#allocation3], %s741_s3 }
0x18e2   : > { %4022 = vrot.lane.b32.xlu1 %v7121_v52, %s7707_s23  ;;  %s7709_s23 = sld [smem:[#allocation21_spill]] }
0x18fa   : > { %v4011_v18 = vpop.f32.mrb[94].mxu1 }
0x18fb   : > { %v7353_v57 = vadd.f32 %v4011_v18, %v7276_v27  ;;  %v5687_v28 = vpop.f32.mrb[95].mxu1  ;;  %v5070_v18 = vld [vmem:[%s7614_s16 + $0x58] sm:$0xff] }
0x195a   : > { %v4148_v58 = vpop.xlane.xlu1 %4147 }
0x195b   : > { %6209 = vrcp.f32 %v4148_v58  ;;  %v5071_v58 = vld [vmem:[%s7614_s16 + $0x60] sm:$0xff] }
0x195e   : > { %v4166_v21 = vpop.permute.xlu1 %4165 }
0x195f   : > { %5708 = vmatpush3.msra.mxu1 %v4166_v21  ;;  %v5072_v21 = vld [vmem:[%s7614_s16 + $0x68] sm:$0xff] }
0x1960   : > { %5929 = vmatprep.subr.bf16.mxu1 %v6291_v3 }
0x1962   : > { %v4023_v60 = vpop.permute.xlu1 %4022 }
0x1963   : > { %5701 = vmatmul.mubr.msk.f32.gmra.mrb[70].mxu0 %vm1262_vm6, %v4023_v60  ;;  %v5942_v60 = vpack.c.bf16 %v5072_v21, %v5071_v58 }
0x1964   : > { %5720 = vmatprep.mubr.msk.f32.mxu0 %vm6292_vm0, %v6293_v6 }
0x1965   : > { %v6210_v25 = vpop.eup %6209 }
0x1966   : > { %v4158_v61 = vmul.f32 %v6210_v25, %v6208_v54  ;;  %v5069_v54 = vld [vmem:[%s7614_s16 + $0x50] sm:$0xff] }
0x1967   : > { %v5939_v28 = vpack.c.bf16 %v5070_v18, %v5069_v54 }
0x1968   : > { %5710 = vmatmul.mubr.msk.f32.vlgmr.msra.gmra.mrb[96].mxu1 %vm1361_vm9, %v4158_v61 }
0x1969   : > { %5712 = vmatprep.mubr.msk.f32.mxu1 %vm6292_vm0, %v6293_v6  ;;  %5931 = vmatpush3.bf16.msra.mxu1 %v5930_v49 }
0x196a   : > { %5932 = vmatprep.subr.bf16.mxu1 %v6291_v3 }
0x1998   : > { %v4113_v52 = vpop.f32.mrb[68].mxu0 }
0x1999   : > { %v4123_v27 = vmul.f32 0.35355338, %v4113_v52  ;;  %v5699_v63 = vpop.f32.mrb[69].mxu0 }
0x199a   : > { %v7430_v63 = vld [vmem:[%s7610_s12 + $0x1] ss:$0 sm:$0xff] }
0x199b   : > { %v4126_v0 = vsel %vm1146_vm8, %v4123_v27, -1e+30 }
0x199c   : > { %v4131_v1 = vsel %vm1361_vm9, %v4126_v0, -inf }
0x199d   : > { %4132 = vmax.xlane.f32.xlu0 %v4131_v1  ;;  %v7435_v1 = vld [vmem:[%s7611_s13 + $0x1] ss:$0 sm:$0xff] }
0x1a2a   : > { %v4133_v13 = vpop.xlane.xlu0 %4132 }
0x1a2b   : > { %v4138_v14 = vsub.f32 %v4126_v0, %v4133_v13 }
0x1a2d   : > { %v4142_v15 = vmul.f32 1.442695, %v4138_v14  ;;  %v7458_v14 = vld [vmem:[%s7613_s15 + $0x1] ss:$0 sm:$0xff] }
0x1a2f   : > { %6211 = vpow2.f32 %v4142_v15 }
0x1a36   : > { %v4118_v2 = vpop.f32.mrb[70].mxu0 }
0x1a37   : > { %v4124_v4 = vmul.f32 0.35355338, %v4118_v2  ;;  %v5702_v5 = vpop.f32.mrb[71].mxu0 }
0x1a39   : > { %v4127_v7 = vsel %vm1146_vm8, %v4124_v4, -1e+30  ;;  %v6212_v31 = vpop.eup %6211 }
0x1a3a   : > { %v4134_v9 = vsel %vm1361_vm9, %v4127_v7, -inf  ;;  %v4149_v33 = vsel %vm1361_vm9, %v6212_v31, 0.0 }
0x1a3b   : > { %4135 = vmax.xlane.f32.xlu1 %v4134_v9  ;;  %v4245_v10 = vpop.f32.mrb[96].mxu1 }
0x1a3c   : > { %v5711_v11 = vpop.f32.mrb[97].mxu1  ;;  %5721 = vmatmul.mubr.msk.f32.vlgmr.msra.gmra.mrb[72].mxu0 %vm1262_vm6, %v4245_v10  ;;  %v5073_v10 = vld [vmem:[%s7614_s16 + $0x70] sm:$0xff] }
0x1a3d   : > { %5723 = vmatprep.mubr.msk.f32.mxu0 %vm6292_vm0, %v6293_v6  ;;  %5937 = vmatpush3.bf16.msra.mxu0 %v5936_v55  ;;  %v5074_v11 = vld [vmem:[%s7614_s16 + $0x78] sm:$0xff] }
0x1a3e   : > { %5938 = vmatprep.subr.bf16.mxu0 %v6291_v3  ;;  %v5945_v13 = vpack.c.bf16 %v5074_v11, %v5073_v10  ;;  %v4745_v10 = vld [vmem:[%s7620_s22 + $0x8] sm:$0xff]  ;;  %v4746_v11 = vld [vmem:[%s7620_s22 + $0x10] sm:$0xff] }
0x1a41   : > { %5940 = vmatpush3.bf16.msra.mxu0 %v5939_v28 }
0x1a42   : > { %5941 = vmatprep.subr.bf16.mxu0 %v6291_v3 }
0x1a45   : > { %5943 = vmatpush3.bf16.msra.mxu0 %v5942_v60 }
0x1a46   : > { %5944 = vmatprep.subr.bf16.mxu0 %v6291_v3 }
0x1a49   : > { %5946 = vmatpush3.bf16.msra.mxu0 %v5945_v13 }
0x1a4a   : > { %5953 = vmatprep.subr.bf16.mxu0 %v6291_v3 }
0x1ac8   : > { %v4136_v16 = vpop.xlane.xlu1 %4135 }
0x1ac9   : > { %v4139_v17 = vsub.f32 %v4127_v7, %v4136_v16 }
0x1acb   : > { %v4144_v19 = vmul.f32 1.442695, %v4139_v17 }
0x1acd   : > { %6213 = vpow2.f32 %v4144_v19 }
0x1ad7   : > { %v6214_v34 = vpop.eup %6213 }
0x1ad8   : > { %v4152_v35 = vsel %vm1361_vm9, %v6214_v34, 0.0 }
0x1b0f   : > { %v4334_v20 = vpop.f32.mrb[72].mxu0 }
0x1b10   : > { %v4348_v24 = vadd.f32 %v4334_v20, %v4015_v59  ;;  %v5722_v26 = vpop.f32.mrb[73].mxu0  ;;  %v5061_v59 = vld [vmem:[%s7612_s14 + $0x38] sm:$0xff] }
0x1b11   : > { %v5933_v22 = vpack.c.bf16 %v5061_v59, %v5060_v51 }
0x1b12   : > { %v4357_v32 = vadd.f32 %v7378_v44, %v4348_v24 }
0x1b13   : > { %5934 = vmatpush3.bf16.msra.mxu1 %v5933_v22 }
0x1b14   : > { %v4360_v29 = vadd.f32 %v4357_v32, %v7092_v8  ;;  %5947 = vmatprep.subr.bf16.mxu1 %v6291_v3 }
0x1b16   : > { %v4367_v30 = vsel %vm1163_vm5, %v4360_v29, 0.0 }
0x1b17   : > { %4368 = vadd.xlane.f32.xlu0 %v4367_v30 }
0x1b1b   : > { %4150 = vadd.xlane.f32.xlu0 %v4149_v33 }
0x1b1f   : > { %4153 = vadd.xlane.f32.xlu0 %v4152_v35 }
0x1ba4   : > { %v4369_v36 = vpop.xlane.xlu0 %4368 }
0x1ba5   : > { %v4376_v37 = vmul.f32 0.03125, %v4369_v36 }
0x1ba7   : > { %v4379_v38 = vsub.f32 %v4360_v29, %v4376_v37 }
0x1ba8   : > { %v4151_v39 = vpop.xlane.xlu0 %4150 }
0x1ba9   : > { %6215 = vrcp.f32 %v4151_v39  ;;  %v4382_v40 = vmul.f32 %v4379_v38, %v4379_v38 }
0x1bab   : > { %v4385_v41 = vsel %vm1163_vm5, %v4382_v40, 0.0 }
0x1bac   : > { %4386 = vadd.xlane.f32.xlu1 %v4385_v41  ;;  %v4154_v8 = vpop.xlane.xlu0 %4153 }
0x1bad   : > { %6217 = vrcp.f32 %v4154_v8 }
0x1bb3   : > { %v6216_v42 = vpop.eup %6215 }
0x1bb4   : > { %v4159_v45 = vmul.f32 %v6216_v42, %v6212_v31 }
0x1bb6   : > { %5713 = vmatmul.mubr.msk.f32.gmra.mrb[98].mxu1 %vm1361_vm9, %v4159_v45 }
0x1bb7   : > { %v6218_v46 = vpop.eup %6217  ;;  %5715 = vmatprep.mubr.msk.f32.mxu1 %vm6292_vm0, %v6293_v6 }
0x1bb8   : > { %v4160_v47 = vmul.f32 %v6218_v46, %v6214_v34 }
0x1bba   : > { %5716 = vmatmul.mubr.msk.f32.gmra.mrb[100].mxu1 %vm1361_vm9, %v4160_v47 }
0x1bbb   : > { %5737 = vmatprep.mubr.msk.f32.mxu1 %vm6292_vm0, %v6293_v6 }
0x1c39   : > { %v4387_v25 = vpop.xlane.xlu1 %4386 }
0x1c3a   : > { %v4394_v61 = vmul.f32 0.03125, %v4387_v25 }
0x1c3c   : > { %v4397_v52 = vadd.f32 1e-05, %v4394_v61 }
0x1c3e   : > { %6219 = vrsqrt.f32 %v4397_v52 }
0x1c48   : > { %v6220_v27 = vpop.eup %6219 }
0x1c49   : > { %v4403_v0 = vmul.f32 %v6220_v27, %v4379_v38 }
0x1c4b   : > { %v4412_v62 = vmul.f32 %v7430_v63, %v4403_v0 }
0x1c4d   : > { %v4421_v2 = vadd.f32 %v7435_v1, %v4412_v62 }
0x1c4f   : > { %5738 = vmatmul.mubr.msk.f32.vlgmr.msra.gmra.mrb[102].mxu1 %vm1163_vm5, %v4421_v2 }
0x1c50   : > { %5740 = vmatprep.mubr.msk.f32.mxu1 %vm6292_vm0, %v6293_v6 }
0x1c89   : > { %v4250_v4 = vpop.f32.mrb[98].mxu1 }
0x1c8a   : > { %v5714_v5 = vpop.f32.mrb[99].mxu1  ;;  %5724 = vmatmul.mubr.msk.f32.gmra.mrb[74].mxu0 %vm1262_vm6, %v4250_v4  ;;  %v4666_v4 = vld [vmem:[%s7618_s20 + $0x8] sm:$0xff] }
0x1c8b   : > { %5726 = vmatprep.mubr.msk.f32.mxu0 %vm6292_vm0, %v6293_v6 }
0x1c8d   : > { %v4255_v7 = vpop.f32.mrb[100].mxu1 }
0x1c8e   : > { %v5717_v9 = vpop.f32.mrb[101].mxu1  ;;  %5727 = vmatmul.mubr.msk.f32.gmra.mrb[76].mxu0 %vm1262_vm6, %v4255_v7 }
0x1c8f   : > { %5762 = vmatprep.mubr.msk.f32.mxu0 %vm6292_vm0, %v6293_v6  ;;  %v4744_v9 = vld [vmem:[%s7620_s22] sm:$0xff] }
0x1c90   : > { %v5954_v13 = vpack.c.bf16 %v4745_v10, %v4744_v9 }
0x1d22   : > { %v4512_v16 = vpop.f32.mrb[102].mxu1 }
0x1d23   : > { %v4513_v15 = vadd.f32 %v7458_v14, %v4512_v16  ;;  %v5739_v17 = vpop.f32.mrb[103].mxu1  ;;  %v4747_v16 = vld [vmem:[%s7620_s22 + $0x18] sm:$0xff] }
0x1d24   : > { %v4748_v17 = vld [vmem:[%s7620_s22 + $0x20] sm:$0xff] }
0x1d25   : > { %v4526_v19 = vmax.f32 %v4513_v15, 0.0  ;;  %v5957_v15 = vpack.c.bf16 %v4747_v16, %v4746_v11 }
0x1d27   : > { %5763 = vmatmul.mubr.msk.f32.vlgmr.msra.gmra.mrb[78].mxu0 %vm787_vm1, %v4526_v19  ;;  %v4749_v19 = vld [vmem:[%s7620_s22 + $0x28] sm:$0xff] }
0x1d28   : > { %5765 = vmatprep.mubr.msk.f32.mxu0 %vm6292_vm0, %v6293_v6  ;;  %5955 = vmatpush3.bf16.msra.mxu0 %v5954_v13 }
0x1d29   : > { %5956 = vmatprep.subr.bf16.mxu0 %v6291_v3 }
0x1d2c   : > { %5958 = vmatpush3.bf16.msra.mxu0 %v5957_v15 }
0x1d2d   : > { %5959 = vmatprep.subr.bf16.mxu0 %v6291_v3 }
0x1d5d   : > { %v4339_v20 = vpop.f32.mrb[74].mxu0 }
0x1d5e   : > { %v4349_v24 = vadd.f32 %v4339_v20, %v7345_v56  ;;  %v5725_v26 = vpop.f32.mrb[75].mxu0  ;;  %v5960_v20 = vpack.c.bf16 %v4749_v19, %v4748_v17 }
0x1d60   : > { %v4358_v32 = vadd.f32 %v7378_v44, %v4349_v24  ;;  %5961 = vmatpush3.bf16.msra.mxu0 %v5960_v20 }
0x1d61   : > { %v4344_v29 = vpop.f32.mrb[76].mxu0  ;;  %5962 = vmatprep.subr.bf16.mxu0 %v6291_v3 }
0x1d62   : > { %v4350_v30 = vadd.f32 %v4344_v29, %v7353_v57  ;;  %v5728_v31 = vpop.f32.mrb[77].mxu0  ;;  %v4361_v33 = vadd.f32 %v4358_v32, %v7098_v43  ;;  %v5076_v43 = vld [vmem:[%s7615_s17 + $0x1] ss:$0 sm:$0xff] }
0x1d64   : > { %v4359_v34 = vadd.f32 %v7378_v44, %v4350_v30  ;;  %v4370_v35 = vsel %vm1163_vm5, %v4361_v33, 0.0  ;;  %v5082_v30 = vld [vmem:[%s7616_s18 + $0x1] ss:$0 sm:$0xff] }
0x1d65   : > { %4371 = vadd.xlane.f32.xlu1 %v4370_v35 }
0x1d66   : > { %v4362_v36 = vadd.f32 %v4359_v34, %v7104_v12 }
0x1d68   : > { %v4373_v37 = vsel %vm1163_vm5, %v4362_v36, 0.0 }
0x1d69   : > { %4374 = vadd.xlane.f32.xlu0 %v4373_v37 }
0x1df2   : > { %v4372_v56 = vpop.xlane.xlu1 %4371 }
0x1df3   : > { %v4377_v38 = vmul.f32 0.03125, %v4372_v56 }
0x1df5   : > { %v4380_v39 = vsub.f32 %v4361_v33, %v4377_v38  ;;  %v5083_v33 = vld [vmem:[%s7617_s19 + $0x1] ss:$0 sm:$0xff] }
0x1df6   : > { %v4375_v40 = vpop.xlane.xlu0 %4374 }
0x1df7   : > { %v4378_v41 = vmul.f32 0.03125, %v4375_v40  ;;  %v4383_v8 = vmul.f32 %v4380_v39, %v4380_v39 }
0x1df9   : > { %v4388_v57 = vsel %vm1163_vm5, %v4383_v8, 0.0  ;;  %v4381_v42 = vsub.f32 %v4362_v36, %v4378_v41  ;;  %v4750_v8 = vld [vmem:[%s7620_s22 + $0x30] sm:$0xff] }
0x1dfa   : > { %4389 = vadd.xlane.f32.xlu0 %v4388_v57  ;;  %v4621_v44 = vpop.f32.mrb[78].mxu0 }
0x1dfb   : > { %v4622_v45 = vadd.f32 %v5076_v43, %v4621_v44  ;;  %v5764_v12 = vpop.f32.mrb[79].mxu0  ;;  %v4384_v48 = vmul.f32 %v4381_v42, %v4381_v42  ;;  %v4751_v43 = vld [vmem:[%s7620_s22 + $0x38] sm:$0xff] }
0x1dfc   : > { %v5963_v57 = vpack.c.bf16 %v4751_v43, %v4750_v8 }
0x1dfd   : > { %v4633_v46 = vadd.f32 %v4622_v45, %v4421_v2  ;;  %v4391_v23 = vsel %vm1163_vm5, %v4384_v48, 0.0  ;;  %v4665_v2 = vld [vmem:[%s7618_s20] sm:$0xff] }
0x1dfe   : > { %v5948_v5 = vpack.c.bf16 %v4666_v4, %v4665_v2  ;;  %5964 = vmatpush3.bf16.msra.mxu0 %v5963_v57 }
0x1dff   : > { %v4638_v47 = vsel %vm1163_vm5, %v4633_v46, 0.0 }
0x1e00   : > { %4639 = vadd.xlane.f32.xlu1 %v4638_v47  ;;  %5949 = vmatpush3.bf16.msra.mxu1 %v5948_v5 }
0x1e01   : > { %5950 = vmatprep.subr.bf16.mxu1 %v6291_v3 }
0x1e04   : > { %4392 = vadd.xlane.f32.xlu1 %v4391_v23  ;;  %v4752_v23 = vld [vmem:[%s7711_s5] sm:$0x1]  ;;  %s6231_s5 = sshll.u32 %s6305_s6, 4  ;;  %s6232_s5 = int_to_ptr.vmem [resolvable:$false] %s6231_s5 }
0x1e05   : > { %s6233_s8 = scalar_lea.vmem %s6232_s5, 32  ;;  %p6234_p0 = scmp.lt.s32.totalorder %s7558_s30, %s6232_s5 }
0x1e06   : > { %p6235_p1 = scmp.lt.s32.totalorder %s6233_s8, %s6227_s25 }
0x1e08   : > { %p6236_p2 = por %p6235_p1, %p6234_p0 }
0x1e0a   : > { %p6237_p3 = pnand %p6236_p2, %p6230_p13 }
0x1e87   : > { %v4390_v49 = vpop.xlane.xlu0 %4389 }
0x1e88   : > { %v4395_v51 = vmul.f32 0.03125, %v4390_v49 }
0x1e8a   : > { %v4398_v59 = vadd.f32 1e-05, %v4395_v51 }
0x1e8c   : > { %6221 = vrsqrt.f32 %v4398_v59 }
0x1e8d   : > { %v4640_v22 = vpop.xlane.xlu1 %4639 }
0x1e8e   : > { %v4641_v50 = vmul.f32 0.03125, %v4640_v22 }
0x1e90   : > { %v4642_v53 = vsub.f32 %v4633_v46, %v4641_v50 }
0x1e91   : > { %v4393_v54 = vpop.xlane.xlu1 %4392 }
0x1e92   : > { %v4396_v55 = vmul.f32 0.03125, %v4393_v54  ;;  %v4643_v18 = vmul.f32 %v4642_v53, %v4642_v53 }
0x1e94   : > { %v4399_v28 = vadd.f32 1e-05, %v4396_v55  ;;  %v4644_v58 = vsel %vm1163_vm5, %v4643_v18, 0.0 }
0x1e95   : > { %4645 = vadd.xlane.f32.xlu0 %v4644_v58 }
0x1e96   : > { %v6222_v21 = vpop.eup %6221  ;;  %6223 = vrsqrt.f32 %v4399_v28 }
0x1e97   : > { %v4404_v60 = vmul.f32 %v6222_v21, %v4380_v39 }
0x1e99   : > { %v4413_v25 = vmul.f32 %v7430_v63, %v4404_v60 }
0x1e9b   : > { %v4422_v61 = vadd.f32 %v7435_v1, %v4413_v25 }
0x1e9d   : > { %5741 = vmatmul.mubr.msk.f32.gmra.mrb[104].mxu1 %vm1163_vm5, %v4422_v61 }
0x1e9e   : > { %5743 = vmatprep.mubr.msk.f32.mxu1 %vm6292_vm0, %v6293_v6 }
0x1ea0   : > { %v6224_v52 = vpop.eup %6223 }
0x1ea1   : > { %v4405_v27 = vmul.f32 %v6224_v52, %v4381_v42 }
0x1ea3   : > { %v4414_v0 = vmul.f32 %v7430_v63, %v4405_v27  ;;  %v4667_v63 = vld [vmem:[%s7618_s20 + $0x10] sm:$0xff] }
0x1ea5   : > { %v4423_v62 = vadd.f32 %v7435_v1, %v4414_v0  ;;  %v4668_v1 = vld [vmem:[%s7618_s20 + $0x18] sm:$0xff] }
0x1ea6   : > { %v5951_v7 = vpack.c.bf16 %v4668_v1, %v4667_v63 }
0x1ea7   : > { %5744 = vmatmul.mubr.msk.f32.gmra.mrb[106].mxu1 %vm1163_vm5, %v4423_v62 }
0x1ea8   : > { %5779 = vmatprep.mubr.msk.f32.mxu1 %vm6292_vm0, %v6293_v6  ;;  %5952 = vmatpush3.bf16.msra.mxu1 %v5951_v7 }
0x1f22   : > { %v4646_v24 = vpop.xlane.xlu0 %4645 }
0x1f23   : > { %v4647_v26 = vmul.f32 0.03125, %v4646_v24 }
0x1f25   : > { %v4648_v32 = vadd.f32 1e-05, %v4647_v26 }
0x1f27   : > { %6225 = vrsqrt.f32 %v4648_v32 }
0x1f31   : > { %v6226_v29 = vpop.eup %6225 }
0x1f32   : > { %v4650_v31 = vmul.f32 %v6226_v29, %v4642_v53 }
0x1f34   : > { %v4657_v34 = vmul.f32 %v5082_v30, %v4650_v31 }
0x1f36   : > { %v4664_v35 = vadd.f32 %v5083_v33, %v4657_v34 }
0x1f38   : > { %5780 = vmatmul.mubr.msk.f32.vlgmr.msra.gmra.mrb[108].mxu1 %vm1163_vm5, %v4664_v35 }
0x1f70   : > { %v4517_v36 = vpop.f32.mrb[104].mxu1 }
0x1f71   : > { %v4518_v3 = vadd.f32 %v7458_v14, %v4517_v36  ;;  %v5742_v37 = vpop.f32.mrb[105].mxu1 }
0x1f73   : > { %v4527_v56 = vmax.f32 %v4518_v3, 0.0 }
0x1f75   : > { %5766 = vmatmul.mubr.msk.f32.gmra.mrb[80].mxu0 %vm787_vm1, %v4527_v56 }
0x1f76   : > { %5768 = vmatprep.mubr.msk.f32.mxu0 %vm6292_vm0, %v6293_v6 }
0x1f7a   : > { %v4522_v38 = vpop.f32.mrb[106].mxu1 }
0x1f7b   : > { %v4523_v39 = vadd.f32 %v7458_v14, %v4522_v38  ;;  %v5745_v40 = vpop.f32.mrb[107].mxu1  ;;  %v4669_v14 = vld [vmem:[%s7709_s23] sm:$0x1] }
0x1f7d   : > { %v4528_v41 = vmax.f32 %v4523_v39, 0.0 }
0x1f7f   : > { %5769 = vmatmul.mubr.msk.f32.gmra.mrb[82].mxu0 %vm787_vm1, %v4528_v41 }
0x1f80   : > { %5798 = vmatprep.mubr.msk.f32.mxu0 %vm6292_vm0, %v6293_v6 }
0x200b   : > { %v4739_v44 = vpop.f32.mrb[108].mxu1 }
0x200c   : > { %v4740_v42 = vadd.f32 %v4739_v44, %v4669_v14  ;;  %v5781_v45 = vpop.f32.mrb[109].mxu1 }
0x200e   : > { %v4743_v12 = vmax.f32 %v4740_v42, 0.0 }
0x2010   : > { %5799 = vmatmul.mubr.msk.f32.vlgmr.msra.gmra.mrb[84].mxu0 %vm787_vm1, %v4743_v12 }
0x2048   : > { %v4626_v6 = vpop.f32.mrb[80].mxu0 }
0x2049   : > { %v5767_v46 = vpop.f32.mrb[81].mxu0 }
0x2052   : > { %v4630_v47 = vpop.f32.mrb[82].mxu0 }
0x2053   : > { %v5770_v48 = vpop.f32.mrb[83].mxu0 }
0x20e3   : > { %v4822_v49 = vpop.f32.mrb[84].mxu0 }
0x20e4   : > { %v4823_v51 = vadd.f32 %v4822_v49, %v4752_v23  ;;  %v5800_v59 = vpop.f32.mrb[85].mxu0 }
0x20e6   : > { %4827 = vst.msk [vmem:[%s742_s27] sm:$0x1] %vm4826_vm10, %v4823_v51 }
0x20e7   : > { %6240 = shalt.err (!%p6237_p3)
}
0x20e8   : > { %s6241_s3 = scalar_lea.hbm %s7556_s7, 16  ;;  %s6245_s2 = scalar_lea.hbm %s7712_s1, 32 }
0x20e9   : > { %p6242_p4 = scmp.ne.s32.totalorder %s7556_s7, %s6241_s3  ;;  %p6246_p9 = scmp.lt.u32.totalorder %s7556_s7, %s7712_s1 }
0x20ea   : > { %p6247_p10 = scmp.lt.u32.totalorder %s6245_s2, %s6241_s3  ;;  %p6249_p12 = scmp.lt.u32.totalorder %s6241_s3, %s7556_s7 }
0x20eb   : > { %p6243_p7 = pnand %p6242_p4, %p6469_p5 }
0x20ec   : > { %p6248_p11 = por %p6247_p10, %p6246_p9 }
0x20ed   : > { %p6244_p8 = pneg %p6243_p7 }
0x20ee   : > { %p6250_p13 = por %p6249_p12, %p6248_p11 }
0x20f0   : > { %p6251_p0 = pnand %p6250_p13, %p6244_p8 }
0x20f2   : > { %6254 = shalt.err (!%p6251_p0)
}
0x20f3   : > { %5978 = dma.vmem_to_hbm [thread:$0]  (%p6469_p5), %s7558_s30, 16, %s7556_s7, %s4829_s4  }
0x20f4 PF: > { %s7713_s8 = sld [smem:[#allocation7_spill]]  ;;  %s7714_s25 = sld [smem:[#allocation5_spill]] }
0x20fa   : > { %p5984_p1 = scmp.ge.s32.totalorder %s7713_s8, 2  ;;  %s4853_s0 = sand.u32 1, %s7714_s25  }
0x20fb   : > { %s4854_s27 = scalar_lea.sflag [#allocation3], %s4853_s0 }
0x20fc   : > { %p5981_p2 = pnand %p5984_p1, %p6473_p6 }
0x20fe   : > { %6272 = dma.done.wait (!%p5981_p2), %s4854_s27, 16  }
0x20ff   : > { %6274 = vsyncadd (!%p5981_p2), %s4854_s27, 4294967280  ;;  %s7716_s28 = sld [smem:[#allocation8_spill]]  ;;  %s7717_s3 = sld [smem:[#allocation6_spill]] }
0x2100   : > { %s7718_s27 = sld [smem:[#allocation9_spill]]  ;;  %s7719_s5 = smov %s6281_s26 }
0x2105   : > { %p34_p3 = scmp.ge.s32.totalorder %s7716_s28, 4   ;;  %s7720_s26 = smov %s7717_s3 }
0x2107   :  { %36 = sbr.rel (!%p34_p3) target bundleno = 16 (0x10), region = 166 }
0x210e   :  { %4858 = vsyncpa [#allocation3], 1 }
0x210f   :  { %4860 = vsyncpa [#allocation3 + $0x1], 1 }

</bundles_post_ra>
